<compile_context>
chip_gen: v5e
topology: v5e:2x2
jax: 0.10.0
libtpu: 0.0.40
codegen_flags: <defaults>
</compile_context>

<pallas_src>
import math
from functools import partial

import jax
import jax.numpy as jnp
from jax.experimental import pallas as pl
from jax.experimental.pallas import tpu as pltpu

_LN_EPS = 1e-5
_NEG_INF = -1e9

# Rows in the per-layer (16, D) parameter pack.
_PK_BQ_S, _PK_BK_S, _PK_BV_S = 0, 1, 2
_PK_BO_S = 3
_PK_BQ_C = 4
_PK_BK_C, _PK_BV_C = 5, 6
_PK_BO_C = 7
_PK_BROI = 8
_PK_BFFN2 = 9
_PK_LN1G, _PK_LN1B = 10, 11
_PK_LN2G, _PK_LN2B = 12, 13
_PK_LN3G, _PK_LN3B = 14, 15
_PK_ROWS = 16

# Rows in the detector (5, D) parameter pack.
_DK_BROI = 0
_DK_PNG, _DK_PNB = 1, 2
_DK_BB1, _DK_BB2 = 3, 4
_DK_ROWS = 5


# ----------------------------------------------------------------------------
# Fused decoder-layer (+ detector) kernel
# ----------------------------------------------------------------------------
def _decoder_layer_kernel(*refs, num_heads, eps, sig_eps, num_classes, cpad,
                          has_kpad, has_dnmask, has_detector, has_roi,
                          has_prenorm):
    it = iter(refs)
    tgt_ref = next(it)          # (1, Nq, D)  f32
    qpos_ref = next(it)         # (1, Nq, D)  f32
    mem_ref = next(it)          # (1, Lk, D)  bf16
    wqkv_ref = next(it)         # (D, 3D)     bf16 (self-attn QKV, scale folded in Wq)
    wkv_ref = next(it)          # (D, 2D)     bf16 (cross-attn KV)
    wstk_ref = next(it)         # (4, D, D)   bf16 [o_self, q_cross, o_cross, roi]
    wffn1_ref = next(it)        # (D, F)      bf16
    wffn2_ref = next(it)        # (F, D)      bf16
    bffn1_ref = next(it)        # (1, F)      f32
    pk_ref = next(it)           # (16, D)     f32
    kpad_ref = next(it) if has_kpad else None     # (1, 1, Lk) f32 additive
    dnm_ref = next(it) if has_dnmask else None    # (Nq, Nq)   f32 additive
    if has_detector:
        refw_ref = next(it)     # (1, Nq, 4)  f32
        wheads_ref = next(it)   # (D, C+4)    bf16 [W_cls | W_box3]
        bheads_ref = next(it)   # (1, C+4)    f32
        wdet_ref = next(it)     # (3, D, D)   bf16 [roi_det, box1, box2]
        dpk_ref = next(it)      # (5, D)      f32
    out_ref = next(it)          # (1, Nq, D)
    det_ref = next(it) if has_detector else None  # (1, Nq, cpad)

    Nq, D = tgt_ref.shape[1], tgt_ref.shape[2]
    Lk = mem_ref.shape[1]
    H = num_heads
    Dh = D // H

    pk = pk_ref[...]                                    # (16, D) f32

    def row(i):
        return pk[i:i + 1]                              # (1, D) broadcast row

    def mm(a, w):
        return jnp.dot(a.astype(jnp.bfloat16), w.astype(jnp.bfloat16),
                       preferred_element_type=jnp.float32)

    def ln(x, g, b):
        mu = jnp.mean(x, axis=-1, keepdims=True)
        var = jnp.mean((x - mu) ** 2, axis=-1, keepdims=True)
        return (x - mu) * jax.lax.rsqrt(var + eps) * g + b

    def attention(q, k, v, bias):
        # q: (Lq, D) f32 (already scaled); k, v: (Lk, D) f32
        # bias: (Lq, Lk) f32 additive or None (combined/broadcast once).
        qb = q.astype(jnp.bfloat16)
        kb = k.astype(jnp.bfloat16)
        vb = v.astype(jnp.bfloat16)
        outs = []
        # TODO(synk): at production D (>=256) replace the per-head lane slices
        # with a head-batched (H, L, Dh) dot_general and move the accumulator
        # to VMEM scratch; at D=32 the slice path avoids relayout cost.
        for h in range(H):
            sl = slice(h * Dh, (h + 1) * Dh)
            s = jax.lax.dot_general(qb[:, sl], kb[:, sl],
                                    (((1,), (1,)), ((), ())),
                                    preferred_element_type=jnp.float32)
            if bias is not None:
                s = s + bias
            s = s - jnp.max(s, axis=-1, keepdims=True)
            p = jnp.exp(s)
            p = p * pl.reciprocal(jnp.sum(p, axis=-1, keepdims=True),
                                  approx=True)
            outs.append(jnp.dot(p.astype(jnp.bfloat16), vb[:, sl],
                                preferred_element_type=jnp.float32))
        return jnp.concatenate(outs, axis=-1)           # (Lq, D) f32

    tgt = tgt_ref[0].astype(jnp.float32)                # (Nq, D)
    qpos = qpos_ref[0].astype(jnp.float32)

    # ---- self-attention + residual + LN1 ---------------------------------
    qk_in = tgt + qpos
    qkv = mm(qk_in, wqkv_ref[...])                      # (Nq, 3D)
    q_s = qkv[:, :D] + row(_PK_BQ_S)
    k_s = qkv[:, D:2 * D] + row(_PK_BK_S)
    v_s = qkv[:, 2 * D:] + row(_PK_BV_S)
    dn_bias = dnm_ref[...].astype(jnp.float32) if has_dnmask else None
    sa = attention(q_s, k_s, v_s, dn_bias)
    sa = mm(sa, wstk_ref[0]) + row(_PK_BO_S)
    x1 = ln(tgt + sa, row(_PK_LN1G), row(_PK_LN1B))

    # ---- cross-attention + residual + LN2 (+ fused ROI projection) -------
    # TODO(synk): for production memory lengths (Lmem ~1e4) tile Lk on an
    # "arbitrary" grid axis with an online-softmax accumulator in VMEM scratch
    # and set vmem_limit_bytes; at Lk=64 the whole K/V block fits trivially.
    q_c = mm(x1 + qpos, wstk_ref[1]) + row(_PK_BQ_C)
    kv = mm(mem_ref[0], wkv_ref[...])                   # (Lk, 2D)
    k_c = kv[:, :D] + row(_PK_BK_C)
    v_c = kv[:, D:] + row(_PK_BV_C)
    c_bias = None
    if has_kpad:
        c_bias = jnp.broadcast_to(kpad_ref[0].astype(jnp.float32), (Nq, Lk))
    ca = attention(q_c, k_c, v_c, c_bias)
    ca = mm(ca, wstk_ref[2]) + row(_PK_BO_C)            # tgt2 (pre-residual)
    x2 = ln(x1 + ca, row(_PK_LN2G), row(_PK_LN2B))
    roi = None
    if has_roi:
        roi = mm(ca, wstk_ref[3]) + row(_PK_BROI)       # (Nq, D), stays in VMEM

    # ---- FFN + residual + LN3 --------------------------------------------
    hfn = jnp.maximum(mm(x2, wffn1_ref[...]) + bffn1_ref[...], 0.0)
    y = mm(hfn, wffn2_ref[...]) + row(_PK_BFFN2)
    out = ln(x2 + y, row(_PK_LN3G), row(_PK_LN3B))
    out_ref[0] = out.astype(out_ref.dtype)

    # ---- detection head (fused; logits+boxes packed lane-dense) ----------
    if has_detector:
        dpk = dpk_ref[...]                              # (5, D) f32
        hs = out
        if has_prenorm:
            hs = ln(hs, dpk[_DK_PNG:_DK_PNG + 1], dpk[_DK_PNB:_DK_PNB + 1])
        feat = hs
        if has_roi:
            roi_n = roi
            if has_prenorm:
                roi_n = ln(roi_n, dpk[_DK_PNG:_DK_PNG + 1],
                           dpk[_DK_PNB:_DK_PNB + 1])
            feat = feat + mm(roi_n, wdet_ref[0]) + dpk[_DK_BROI:_DK_BROI + 1]

        wheads = wheads_ref[...]                        # (D, C+4) bf16
        bheads = bheads_ref[...]                        # (1, C+4) f32
        C = num_classes
        logits = mm(feat, wheads[:, :C]) + bheads[:, :C]

        xb = jnp.maximum(mm(hs, wdet_ref[1]) + dpk[_DK_BB1:_DK_BB1 + 1], 0.0)
        xb = jnp.maximum(mm(xb, wdet_ref[2]) + dpk[_DK_BB2:_DK_BB2 + 1], 0.0)
        delta = mm(xb, wheads[:, C:]) + bheads[:, C:]   # (Nq, 4)

        rw = jnp.clip(refw_ref[0].astype(jnp.float32), sig_eps, 1.0 - sig_eps)
        inv_sig = jnp.log(rw) - jnp.log(1.0 - rw)
        boxes = jax.nn.sigmoid(delta + inv_sig)

        pad = jnp.zeros((Nq, cpad - C - 4), jnp.float32)
        det_ref[0] = jnp.concatenate([logits, boxes, pad],
                                     axis=-1).astype(det_ref.dtype)


# ----------------------------------------------------------------------------
# Wrapper: one pallas_call per decoder layer
# ----------------------------------------------------------------------------
def decoder_layer_forward(layer_p, det_p, tgt, query_pos, memory_bf16,
                          mem_bias, dn_bias, ref_windows, *, run_detector,
                          has_roi, has_prenorm, eps=_LN_EPS):
    B, Nq, D = tgt.shape
    Lk = memory_bf16.shape[1]
    H = layer_p["num_heads"]
    C = det_p["num_classes"]
    CPAD = max(128, ((C + 4 + 127) // 128) * 128)   # lane-dense packed output

    has_kpad = mem_bias is not None
    has_dnmask = dn_bias is not None

    def bcast(shape):
        nd = len(shape)
        return pl.BlockSpec(shape, lambda b: (0,) * nd)

    inputs = [tgt, query_pos, memory_bf16,
              layer_p["w_qkv_self"], layer_p["w_kv_cross"], layer_p["w_stack"],
              layer_p["w_ffn1"], layer_p["w_ffn2"], layer_p["b_ffn1"],
              layer_p["pack"]]
    in_specs = [
        pl.BlockSpec((1, Nq, D), lambda b: (b, 0, 0)),
        pl.BlockSpec((1, Nq, D), lambda b: (b, 0, 0)),
        pl.BlockSpec((1, Lk, D), lambda b: (b, 0, 0)),
        bcast(layer_p["w_qkv_self"].shape),
        bcast(layer_p["w_kv_cross"].shape),
        bcast(layer_p["w_stack"].shape),
        bcast(layer_p["w_ffn1"].shape),
        bcast(layer_p["w_ffn2"].shape),
        bcast(layer_p["b_ffn1"].shape),
        bcast(layer_p["pack"].shape),
    ]
    if has_kpad:
        inputs.append(mem_bias)                           # (B, 1, Lk)
        in_specs.append(pl.BlockSpec((1, 1, Lk), lambda b: (b, 0, 0)))
    if has_dnmask:
        inputs.append(dn_bias)                            # (Nq, Nq)
        in_specs.append(bcast(dn_bias.shape))
    if run_detector:
        inputs += [ref_windows, det_p["w_heads"], det_p["b_heads"],
                   det_p["w_stack"], det_p["pack"]]
        in_specs += [pl.BlockSpec((1, Nq, 4), lambda b: (b, 0, 0)),
                     bcast(det_p["w_heads"].shape),
                     bcast(det_p["b_heads"].shape),
                     bcast(det_p["w_stack"].shape),
                     bcast(det_p["pack"].shape)]

    out_shapes = [jax.ShapeDtypeStruct((B, Nq, D), tgt.dtype)]
    out_specs = [pl.BlockSpec((1, Nq, D), lambda b: (b, 0, 0))]
    if run_detector:
        out_shapes.append(jax.ShapeDtypeStruct((B, Nq, CPAD), jnp.float32))
        out_specs.append(pl.BlockSpec((1, Nq, CPAD), lambda b: (b, 0, 0)))

    outs = pl.pallas_call(
        partial(_decoder_layer_kernel, num_heads=H, eps=eps, sig_eps=1e-5,
                num_classes=C, cpad=CPAD, has_kpad=has_kpad,
                has_dnmask=has_dnmask, has_detector=run_detector,
                has_roi=has_roi, has_prenorm=has_prenorm),
        out_shape=tuple(out_shapes),
        grid=(B,),
        in_specs=in_specs,
        out_specs=tuple(out_specs),
        compiler_params=pltpu.CompilerParams(
            dimension_semantics=("parallel",)),
    )(*inputs)

    if run_detector:
        new_tgt, packed = outs
        logits = packed[..., :C]
        boxes = packed[..., C:C + 4]
        return new_tgt, (logits, boxes)
    (new_tgt,) = outs
    return new_tgt, None


# ----------------------------------------------------------------------------
# Parameter construction (deterministic, synthetic; pre-packed/fused layouts)
# ----------------------------------------------------------------------------
def _dense(key, fan_in, fan_out):
    kw, kb = jax.random.split(key)
    lim = 1.0 / math.sqrt(fan_in)
    w = jax.random.uniform(kw, (fan_in, fan_out), jnp.float32, -lim, lim)
    b = jax.random.uniform(kb, (fan_out,), jnp.float32, -lim, lim)
    return w, b


def _layer_params(key, dim, num_heads, ffn_dim):
    ks = jax.random.split(key, 11)
    wq, bq = _dense(ks[0], dim, dim)
    wk, bk = _dense(ks[1], dim, dim)
    wv, bv = _dense(ks[2], dim, dim)
    wo, bo = _dense(ks[3], dim, dim)           # self-attn output proj
    cwq, cbq = _dense(ks[4], dim, dim)
    cwk, cbk = _dense(ks[5], dim, dim)
    cwv, cbv = _dense(ks[6], dim, dim)
    cwo, cbo = _dense(ks[7], dim, dim)         # cross-attn output proj
    wroi, broi = _dense(ks[8], dim, dim)       # layer ROI projection
    w1, b1 = _dense(ks[9], dim, ffn_dim)
    w2, b2 = _dense(ks[10], ffn_dim, dim)

    # Fold the attention scale 1/sqrt(Dh) into Wq / bq (self and cross).
    scale = 1.0 / math.sqrt(dim / num_heads)
    wq, bq = wq * scale, bq * scale
    cwq, cbq = cwq * scale, cbq * scale

    ln_g = jnp.ones((dim,), jnp.float32)
    ln_b = jnp.zeros((dim,), jnp.float32)
    pack = jnp.stack([bq, bk, bv, bo, cbq, cbk, cbv, cbo, broi, b2,
                      ln_g, ln_b, ln_g, ln_b, ln_g, ln_b], axis=0)
    assert pack.shape == (_PK_ROWS, dim)
    return {
        "num_heads": num_heads,
        "w_qkv_self": jnp.concatenate([wq, wk, wv], 1).astype(jnp.bfloat16),
        "w_kv_cross": jnp.concatenate([cwk, cwv], 1).astype(jnp.bfloat16),
        "w_stack": jnp.stack([wo, cwq, cwo, wroi], 0).astype(jnp.bfloat16),
        "w_ffn1": w1.astype(jnp.bfloat16),
        "w_ffn2": w2.astype(jnp.bfloat16),
        "b_ffn1": b1.reshape(1, ffn_dim),
        "pack": pack,
    }


def _detector_params(key, dim, num_classes):
    ks = jax.random.split(key, 5)
    wc, bc = _dense(ks[0], dim, num_classes)
    wroi, broi = _dense(ks[1], dim, dim)
    w1, b1 = _dense(ks[2], dim, dim)
    w2, b2 = _dense(ks[3], dim, dim)
    w3, b3 = _dense(ks[4], dim, 4)
    png = jnp.ones((dim,), jnp.float32)        # prenorm LN params (identity init)
    pnb = jnp.zeros((dim,), jnp.float32)
    pack = jnp.stack([broi, png, pnb, b1, b2], axis=0)
    assert pack.shape == (_DK_ROWS, dim)
    return {
        "num_classes": num_classes,
        "w_heads": jnp.concatenate([wc, w3], 1).astype(jnp.bfloat16),
        "b_heads": jnp.concatenate([bc, b3]).reshape(1, num_classes + 4),
        "w_stack": jnp.stack([wroi, w1, w2], 0).astype(jnp.bfloat16),
        "pack": pack,
    }


# ----------------------------------------------------------------------------
# SimPLRDecoder (wrapper semantics reproduced)
# ----------------------------------------------------------------------------
class SimPLRDecoder:
    def __init__(self, dec_dim, num_layers, num_heads=4, ffn_dim=64,
                 num_classes=4, use_mask=False, prenorm=False, seed=0):
        key = jax.random.PRNGKey(seed)
        ks = jax.random.split(key, num_layers + 1)
        self.layers = [_layer_params(ks[i], dec_dim, num_heads, ffn_dim)
                       for i in range(num_layers)]
        self.layer_inferencing = [False] * num_layers
        self.prenorm = prenorm                 # Identity LN if False
        self.detector = _detector_params(ks[-1], dec_dim, num_classes)
        self.use_mask = use_mask
        self.inferencing = False

    def __call__(self, tgt, query_pos, memory, memory_shape, memory_mask,
                 memory_start_index, memory_valid_ratios, ref_windows,
                 dn_attn_mask=None):
        # TODO(synk): SimPLR's deformable box/ROI sampling (which consumes
        # memory_shape / memory_start_index / memory_valid_ratios) is
        # approximated by dense masked cross-attention over flattened memory.
        mem_bias = None
        if memory_mask is not None:
            B, Lk = memory_mask.shape
            mem_bias = jnp.where(memory_mask, _NEG_INF, 0.0)
            mem_bias = mem_bias.astype(jnp.float32).reshape(B, 1, Lk)
        dn_bias = None
        if dn_attn_mask is not None:
            if dn_attn_mask.dtype == jnp.bool_:
                dn_bias = jnp.where(dn_attn_mask, _NEG_INF, 0.0)
            else:
                dn_bias = dn_attn_mask
            dn_bias = dn_bias.astype(jnp.float32)

        # Memory is cast to bf16 once (halves K/V HBM traffic on every layer).
        memory_bf16 = memory.astype(jnp.bfloat16)
        ref_w = ref_windows.astype(jnp.float32)

        output = tgt
        dec_out = []
        last_det = None
        n = len(self.layers)
        for i, layer_p in enumerate(self.layers):
            last = (i == n - 1)
            # mirrors: layer.inferencing = False on the last layer
            infer_flag = False if last else self.layer_inferencing[i]
            run_detector = (not self.inferencing) or last
            has_roi = run_detector and (not infer_flag)
            output, det = decoder_layer_forward(
                layer_p, self.detector, output, query_pos, memory_bf16,
                mem_bias, dn_bias, ref_w, run_detector=run_detector,
                has_roi=has_roi, has_prenorm=self.prenorm)
            if run_detector:
                last_det = det
                if not self.inferencing:
                    dec_out.append(det)
        if self.inferencing:
            return last_det
        return dec_out


# ----------------------------------------------------------------------------
if __name__ == "__main__":
    B, Nq, D = 2, 8, 32
    Hm = Wm = 8
    Lmem = Hm * Wm
    num_layers = 2
    num_classes = 4

    key = jax.random.PRNGKey(0)
    k1, k2, k3, k4 = jax.random.split(key, 4)
    tgt = jax.random.normal(k1, (B, Nq, D), jnp.float32)
    query_pos = jax.random.normal(k2, (B, Nq, D), jnp.float32)
    memory = jax.random.normal(k3, (B, Lmem, D), jnp.float32)
    memory_shape = jnp.array([[Hm, Wm]], jnp.int32)
    memory_mask = jnp.zeros((B, Lmem), jnp.bool_)
    memory_start_index = jnp.array([0], jnp.int32)
    memory_valid_ratios = jnp.ones((B, 1, 2), jnp.float32)
    ref_windows = jax.random.uniform(k4, (B, Nq, 4), jnp.float32, 0.1, 0.9)

    decoder = SimPLRDecoder(dec_dim=D, num_layers=num_layers, num_heads=4,
                            ffn_dim=64, num_classes=num_classes,
                            use_mask=False, prenorm=True, seed=0)

    @jax.jit
    def run(tgt_, qpos_, mem_, mmask_, refw_):
        return decoder(tgt_, qpos_, mem_, memory_shape, mmask_,
                       memory_start_index, memory_valid_ratios, refw_,
                       dn_attn_mask=None)

    dec_out = run(tgt, query_pos, memory, memory_mask, ref_windows)

    ok = True
    for logits, boxes in dec_out:
        logits = jax.block_until_ready(logits)
        boxes = jax.block_until_ready(boxes)
        ok &= logits.shape == (B, Nq, num_classes)
        ok &= boxes.shape == (B, Nq, 4)
        ok &= bool(jnp.all(jnp.isfinite(logits)))
        ok &= bool(jnp.all(jnp.isfinite(boxes)))

    assert ok and len(dec_out) == num_layers
    print("KERNEL_OK")
</pallas_src>

<mosaic_0001>
module attributes {stable_mosaic.version = 11 : i64} {
  func.func @_decoder_layer_kernel(%arg0: i32, %arg1: memref<1x8x32xf32, #tpu.memory_space<vmem>>, %arg2: memref<1x8x32xf32, #tpu.memory_space<vmem>>, %arg3: memref<1x64x32xbf16, #tpu.memory_space<vmem>>, %arg4: memref<32x96xbf16, #tpu.memory_space<vmem>>, %arg5: memref<32x64xbf16, #tpu.memory_space<vmem>>, %arg6: memref<4x32x32xbf16, #tpu.memory_space<vmem>>, %arg7: memref<32x64xbf16, #tpu.memory_space<vmem>>, %arg8: memref<64x32xbf16, #tpu.memory_space<vmem>>, %arg9: memref<1x64xf32, #tpu.memory_space<vmem>>, %arg10: memref<16x32xf32, #tpu.memory_space<vmem>>, %arg11: memref<1x1x64xf32, #tpu.memory_space<vmem>>, %arg12: memref<1x8x4xf32, #tpu.memory_space<vmem>>, %arg13: memref<32x8xbf16, #tpu.memory_space<vmem>>, %arg14: memref<1x8xf32, #tpu.memory_space<vmem>>, %arg15: memref<3x32x32xbf16, #tpu.memory_space<vmem>>, %arg16: memref<5x32xf32, #tpu.memory_space<vmem>>, %arg17: memref<1x8x32xf32, #tpu.memory_space<vmem>>, %arg18: memref<1x8x128xf32, #tpu.memory_space<vmem>>) attributes {dimension_semantics = [#tpu.dimension_semantics<parallel>], iteration_bounds = array<i64: 2>, scalar_prefetch = 0 : i64, scratch_operands = 0 : i64, tpu.core_type = #tpu.core_type<tc>, window_params = [{transform_indices = @transform_0, window_bounds = array<i64: 1, 8, 32>}, {transform_indices = @transform_1, window_bounds = array<i64: 1, 8, 32>}, {transform_indices = @transform_2, window_bounds = array<i64: 1, 64, 32>}, {pipeline_mode = #tpu.pipeline_mode<synchronous>, transform_indices = @transform_3, window_bounds = array<i64: 32, 96>}, {pipeline_mode = #tpu.pipeline_mode<synchronous>, transform_indices = @transform_4, window_bounds = array<i64: 32, 64>}, {pipeline_mode = #tpu.pipeline_mode<synchronous>, transform_indices = @transform_5, window_bounds = array<i64: 4, 32, 32>}, {pipeline_mode = #tpu.pipeline_mode<synchronous>, transform_indices = @transform_6, window_bounds = array<i64: 32, 64>}, {pipeline_mode = #tpu.pipeline_mode<synchronous>, transform_indices = @transform_7, window_bounds = array<i64: 64, 32>}, {pipeline_mode = #tpu.pipeline_mode<synchronous>, transform_indices = @transform_8, window_bounds = array<i64: 1, 64>}, {pipeline_mode = #tpu.pipeline_mode<synchronous>, transform_indices = @transform_9, window_bounds = array<i64: 16, 32>}, {transform_indices = @transform_10, window_bounds = array<i64: 1, 1, 64>}, {transform_indices = @transform_11, window_bounds = array<i64: 1, 8, 4>}, {pipeline_mode = #tpu.pipeline_mode<synchronous>, transform_indices = @transform_12, window_bounds = array<i64: 32, 8>}, {pipeline_mode = #tpu.pipeline_mode<synchronous>, transform_indices = @transform_13, window_bounds = array<i64: 1, 8>}, {pipeline_mode = #tpu.pipeline_mode<synchronous>, transform_indices = @transform_14, window_bounds = array<i64: 3, 32, 32>}, {pipeline_mode = #tpu.pipeline_mode<synchronous>, transform_indices = @transform_15, window_bounds = array<i64: 5, 32>}, {transform_indices = @transform_16, window_bounds = array<i64: 1, 8, 32>}, {transform_indices = @transform_17, window_bounds = array<i64: 1, 8, 128>}]} {
    %c0 = arith.constant 0 : index
    %c0_0 = arith.constant 0 : index
    %0 = vector.load %arg10[%c0, %c0_0] : memref<16x32xf32, #tpu.memory_space<vmem>>, vector<16x32xf32>
    %c0_1 = arith.constant 0 : index
    %c0_2 = arith.constant 0 : index
    %c0_3 = arith.constant 0 : index
    %1 = vector.load %arg1[%c0_1, %c0_2, %c0_3] : memref<1x8x32xf32, #tpu.memory_space<vmem>>, vector<1x8x32xf32>
    %2 = vector.shape_cast %1 : vector<1x8x32xf32> to vector<8x32xf32>
    %c0_4 = arith.constant 0 : index
    %c0_5 = arith.constant 0 : index
    %c0_6 = arith.constant 0 : index
    %3 = vector.load %arg2[%c0_4, %c0_5, %c0_6] : memref<1x8x32xf32, #tpu.memory_space<vmem>>, vector<1x8x32xf32>
    %4 = vector.shape_cast %3 : vector<1x8x32xf32> to vector<8x32xf32>
    %5 = arith.addf %2, %4 : vector<8x32xf32>
    %c0_7 = arith.constant 0 : index
    %c0_8 = arith.constant 0 : index
    %6 = vector.load %arg4[%c0_7, %c0_8] : memref<32x96xbf16, #tpu.memory_space<vmem>>, vector<32x96xbf16>
    %7 = arith.truncf %5 : vector<8x32xf32> to vector<8x32xbf16>
    %cst = arith.constant dense<0.000000e+00> : vector<8x96xf32>
    %8 = tpu.matmul %7, %6, %cst {dimension_numbers = #tpu.dot_dimension_numbers<[1], [0], [0], [1], [0, 0, 1, 1], [], []>} : vector<8x32xbf16>, vector<32x96xbf16>, vector<8x96xf32> -> vector<8x96xf32>
    %9 = vector.extract_strided_slice %8 {offsets = [0, 0], sizes = [8, 32], strides = [1, 1]} : vector<8x96xf32> to vector<8x32xf32>
    %10 = vector.extract_strided_slice %0 {offsets = [0, 0], sizes = [1, 32], strides = [1, 1]} : vector<16x32xf32> to vector<1x32xf32>
    %11 = vector.broadcast %10 : vector<1x32xf32> to vector<8x32xf32>
    %12 = arith.addf %9, %11 : vector<8x32xf32>
    %13 = vector.extract_strided_slice %8 {offsets = [0, 32], sizes = [8, 32], strides = [1, 1]} : vector<8x96xf32> to vector<8x32xf32>
    %14 = vector.extract_strided_slice %0 {offsets = [1, 0], sizes = [1, 32], strides = [1, 1]} : vector<16x32xf32> to vector<1x32xf32>
    %15 = vector.broadcast %14 : vector<1x32xf32> to vector<8x32xf32>
    %16 = arith.addf %13, %15 : vector<8x32xf32>
    %17 = vector.extract_strided_slice %8 {offsets = [0, 64], sizes = [8, 32], strides = [1, 1]} : vector<8x96xf32> to vector<8x32xf32>
    %18 = vector.extract_strided_slice %0 {offsets = [2, 0], sizes = [1, 32], strides = [1, 1]} : vector<16x32xf32> to vector<1x32xf32>
    %19 = vector.broadcast %18 : vector<1x32xf32> to vector<8x32xf32>
    %20 = arith.addf %17, %19 : vector<8x32xf32>
    %21 = arith.truncf %12 : vector<8x32xf32> to vector<8x32xbf16>
    %22 = arith.truncf %16 : vector<8x32xf32> to vector<8x32xbf16>
    %23 = arith.truncf %20 : vector<8x32xf32> to vector<8x32xbf16>
    %24 = vector.extract_strided_slice %21 {offsets = [0, 0], sizes = [8, 8], strides = [1, 1]} : vector<8x32xbf16> to vector<8x8xbf16>
    %25 = vector.extract_strided_slice %22 {offsets = [0, 0], sizes = [8, 8], strides = [1, 1]} : vector<8x32xbf16> to vector<8x8xbf16>
    %cst_9 = arith.constant dense<0.000000e+00> : vector<8x8xf32>
    %26 = tpu.matmul %24, %25, %cst_9 {dimension_numbers = #tpu.dot_dimension_numbers<[1], [1], [0], [0], [0, 0, 1, 0], [], []>} : vector<8x8xbf16>, vector<8x8xbf16>, vector<8x8xf32> -> vector<8x8xf32>
    %cst_10 = arith.constant dense<0xFF800000> : vector<8xf32>
    %27 = vector.multi_reduction <maximumf>, %26, %cst_10 [1] : vector<8x8xf32> to vector<8xf32>
    %28 = vector.shape_cast %27 : vector<8xf32> to vector<8x1xf32>
    %29 = vector.broadcast %28 : vector<8x1xf32> to vector<8x8xf32>
    %30 = arith.subf %26, %29 : vector<8x8xf32>
    %31 = math.exp %30 : vector<8x8xf32>
    %cst_11 = arith.constant dense<0.000000e+00> : vector<8xf32>
    %32 = vector.multi_reduction <add>, %31, %cst_11 [1] : vector<8x8xf32> to vector<8xf32>
    %33 = vector.shape_cast %32 : vector<8xf32> to vector<8x1xf32>
    %34 = tpu.reciprocal %33 {approx = true} : vector<8x1xf32> -> vector<8x1xf32>
    %35 = vector.broadcast %34 : vector<8x1xf32> to vector<8x8xf32>
    %36 = arith.mulf %31, %35 : vector<8x8xf32>
    %37 = arith.truncf %36 : vector<8x8xf32> to vector<8x8xbf16>
    %38 = vector.extract_strided_slice %23 {offsets = [0, 0], sizes = [8, 8], strides = [1, 1]} : vector<8x32xbf16> to vector<8x8xbf16>
    %cst_12 = arith.constant dense<0.000000e+00> : vector<8x8xf32>
    %39 = tpu.matmul %37, %38, %cst_12 {dimension_numbers = #tpu.dot_dimension_numbers<[1], [0], [0], [1], [0, 0, 1, 1], [], []>} : vector<8x8xbf16>, vector<8x8xbf16>, vector<8x8xf32> -> vector<8x8xf32>
    %40 = vector.extract_strided_slice %21 {offsets = [0, 8], sizes = [8, 8], strides = [1, 1]} : vector<8x32xbf16> to vector<8x8xbf16>
    %41 = vector.extract_strided_slice %22 {offsets = [0, 8], sizes = [8, 8], strides = [1, 1]} : vector<8x32xbf16> to vector<8x8xbf16>
    %cst_13 = arith.constant dense<0.000000e+00> : vector<8x8xf32>
    %42 = tpu.matmul %40, %41, %cst_13 {dimension_numbers = #tpu.dot_dimension_numbers<[1], [1], [0], [0], [0, 0, 1, 0], [], []>} : vector<8x8xbf16>, vector<8x8xbf16>, vector<8x8xf32> -> vector<8x8xf32>
    %cst_14 = arith.constant dense<0xFF800000> : vector<8xf32>
    %43 = vector.multi_reduction <maximumf>, %42, %cst_14 [1] : vector<8x8xf32> to vector<8xf32>
    %44 = vector.shape_cast %43 : vector<8xf32> to vector<8x1xf32>
    %45 = vector.broadcast %44 : vector<8x1xf32> to vector<8x8xf32>
    %46 = arith.subf %42, %45 : vector<8x8xf32>
    %47 = math.exp %46 : vector<8x8xf32>
    %cst_15 = arith.constant dense<0.000000e+00> : vector<8xf32>
    %48 = vector.multi_reduction <add>, %47, %cst_15 [1] : vector<8x8xf32> to vector<8xf32>
    %49 = vector.shape_cast %48 : vector<8xf32> to vector<8x1xf32>
    %50 = tpu.reciprocal %49 {approx = true} : vector<8x1xf32> -> vector<8x1xf32>
    %51 = vector.broadcast %50 : vector<8x1xf32> to vector<8x8xf32>
    %52 = arith.mulf %47, %51 : vector<8x8xf32>
    %53 = arith.truncf %52 : vector<8x8xf32> to vector<8x8xbf16>
    %54 = vector.extract_strided_slice %23 {offsets = [0, 8], sizes = [8, 8], strides = [1, 1]} : vector<8x32xbf16> to vector<8x8xbf16>
    %cst_16 = arith.constant dense<0.000000e+00> : vector<8x8xf32>
    %55 = tpu.matmul %53, %54, %cst_16 {dimension_numbers = #tpu.dot_dimension_numbers<[1], [0], [0], [1], [0, 0, 1, 1], [], []>} : vector<8x8xbf16>, vector<8x8xbf16>, vector<8x8xf32> -> vector<8x8xf32>
    %56 = vector.extract_strided_slice %21 {offsets = [0, 16], sizes = [8, 8], strides = [1, 1]} : vector<8x32xbf16> to vector<8x8xbf16>
    %57 = vector.extract_strided_slice %22 {offsets = [0, 16], sizes = [8, 8], strides = [1, 1]} : vector<8x32xbf16> to vector<8x8xbf16>
    %cst_17 = arith.constant dense<0.000000e+00> : vector<8x8xf32>
    %58 = tpu.matmul %56, %57, %cst_17 {dimension_numbers = #tpu.dot_dimension_numbers<[1], [1], [0], [0], [0, 0, 1, 0], [], []>} : vector<8x8xbf16>, vector<8x8xbf16>, vector<8x8xf32> -> vector<8x8xf32>
    %cst_18 = arith.constant dense<0xFF800000> : vector<8xf32>
    %59 = vector.multi_reduction <maximumf>, %58, %cst_18 [1] : vector<8x8xf32> to vector<8xf32>
    %60 = vector.shape_cast %59 : vector<8xf32> to vector<8x1xf32>
    %61 = vector.broadcast %60 : vector<8x1xf32> to vector<8x8xf32>
    %62 = arith.subf %58, %61 : vector<8x8xf32>
    %63 = math.exp %62 : vector<8x8xf32>
    %cst_19 = arith.constant dense<0.000000e+00> : vector<8xf32>
    %64 = vector.multi_reduction <add>, %63, %cst_19 [1] : vector<8x8xf32> to vector<8xf32>
    %65 = vector.shape_cast %64 : vector<8xf32> to vector<8x1xf32>
    %66 = tpu.reciprocal %65 {approx = true} : vector<8x1xf32> -> vector<8x1xf32>
    %67 = vector.broadcast %66 : vector<8x1xf32> to vector<8x8xf32>
    %68 = arith.mulf %63, %67 : vector<8x8xf32>
    %69 = arith.truncf %68 : vector<8x8xf32> to vector<8x8xbf16>
    %70 = vector.extract_strided_slice %23 {offsets = [0, 16], sizes = [8, 8], strides = [1, 1]} : vector<8x32xbf16> to vector<8x8xbf16>
    %cst_20 = arith.constant dense<0.000000e+00> : vector<8x8xf32>
    %71 = tpu.matmul %69, %70, %cst_20 {dimension_numbers = #tpu.dot_dimension_numbers<[1], [0], [0], [1], [0, 0, 1, 1], [], []>} : vector<8x8xbf16>, vector<8x8xbf16>, vector<8x8xf32> -> vector<8x8xf32>
    %72 = vector.extract_strided_slice %21 {offsets = [0, 24], sizes = [8, 8], strides = [1, 1]} : vector<8x32xbf16> to vector<8x8xbf16>
    %73 = vector.extract_strided_slice %22 {offsets = [0, 24], sizes = [8, 8], strides = [1, 1]} : vector<8x32xbf16> to vector<8x8xbf16>
    %cst_21 = arith.constant dense<0.000000e+00> : vector<8x8xf32>
    %74 = tpu.matmul %72, %73, %cst_21 {dimension_numbers = #tpu.dot_dimension_numbers<[1], [1], [0], [0], [0, 0, 1, 0], [], []>} : vector<8x8xbf16>, vector<8x8xbf16>, vector<8x8xf32> -> vector<8x8xf32>
    %cst_22 = arith.constant dense<0xFF800000> : vector<8xf32>
    %75 = vector.multi_reduction <maximumf>, %74, %cst_22 [1] : vector<8x8xf32> to vector<8xf32>
    %76 = vector.shape_cast %75 : vector<8xf32> to vector<8x1xf32>
    %77 = vector.broadcast %76 : vector<8x1xf32> to vector<8x8xf32>
    %78 = arith.subf %74, %77 : vector<8x8xf32>
    %79 = math.exp %78 : vector<8x8xf32>
    %cst_23 = arith.constant dense<0.000000e+00> : vector<8xf32>
    %80 = vector.multi_reduction <add>, %79, %cst_23 [1] : vector<8x8xf32> to vector<8xf32>
    %81 = vector.shape_cast %80 : vector<8xf32> to vector<8x1xf32>
    %82 = tpu.reciprocal %81 {approx = true} : vector<8x1xf32> -> vector<8x1xf32>
    %83 = vector.broadcast %82 : vector<8x1xf32> to vector<8x8xf32>
    %84 = arith.mulf %79, %83 : vector<8x8xf32>
    %85 = arith.truncf %84 : vector<8x8xf32> to vector<8x8xbf16>
    %86 = vector.extract_strided_slice %23 {offsets = [0, 24], sizes = [8, 8], strides = [1, 1]} : vector<8x32xbf16> to vector<8x8xbf16>
    %cst_24 = arith.constant dense<0.000000e+00> : vector<8x8xf32>
    %87 = tpu.matmul %85, %86, %cst_24 {dimension_numbers = #tpu.dot_dimension_numbers<[1], [0], [0], [1], [0, 0, 1, 1], [], []>} : vector<8x8xbf16>, vector<8x8xbf16>, vector<8x8xf32> -> vector<8x8xf32>
    %88 = tpu.concatenate %39, %55, %71, %87 in 1 : vector<8x8xf32>, vector<8x8xf32>, vector<8x8xf32>, vector<8x8xf32> -> vector<8x32xf32>
    %c0_25 = arith.constant 0 : index
    %c0_26 = arith.constant 0 : index
    %c0_27 = arith.constant 0 : index
    %89 = vector.load %arg6[%c0_25, %c0_26, %c0_27] : memref<4x32x32xbf16, #tpu.memory_space<vmem>>, vector<1x32x32xbf16>
    %90 = vector.shape_cast %89 : vector<1x32x32xbf16> to vector<32x32xbf16>
    %91 = arith.truncf %88 : vector<8x32xf32> to vector<8x32xbf16>
    %cst_28 = arith.constant dense<0.000000e+00> : vector<8x32xf32>
    %92 = tpu.matmul %91, %90, %cst_28 {dimension_numbers = #tpu.dot_dimension_numbers<[1], [0], [0], [1], [0, 0, 1, 1], [], []>} : vector<8x32xbf16>, vector<32x32xbf16>, vector<8x32xf32> -> vector<8x32xf32>
    %93 = vector.extract_strided_slice %0 {offsets = [3, 0], sizes = [1, 32], strides = [1, 1]} : vector<16x32xf32> to vector<1x32xf32>
    %94 = vector.broadcast %93 : vector<1x32xf32> to vector<8x32xf32>
    %95 = arith.addf %92, %94 : vector<8x32xf32>
    %96 = arith.addf %2, %95 : vector<8x32xf32>
    %97 = vector.extract_strided_slice %0 {offsets = [10, 0], sizes = [1, 32], strides = [1, 1]} : vector<16x32xf32> to vector<1x32xf32>
    %98 = vector.extract_strided_slice %0 {offsets = [11, 0], sizes = [1, 32], strides = [1, 1]} : vector<16x32xf32> to vector<1x32xf32>
    %cst_29 = arith.constant dense<0.000000e+00> : vector<8xf32>
    %99 = vector.multi_reduction <add>, %96, %cst_29 [1] : vector<8x32xf32> to vector<8xf32>
    %100 = vector.shape_cast %99 : vector<8xf32> to vector<8x1xf32>
    %cst_30 = arith.constant 3.200000e+01 : f32
    %101 = vector.broadcast %cst_30 : f32 to vector<8x1xf32>
    %102 = arith.divf %100, %101 : vector<8x1xf32>
    %103 = vector.broadcast %102 : vector<8x1xf32> to vector<8x32xf32>
    %104 = arith.subf %96, %103 : vector<8x32xf32>
    %105 = arith.mulf %104, %104 : vector<8x32xf32>
    %cst_31 = arith.constant dense<0.000000e+00> : vector<8xf32>
    %106 = vector.multi_reduction <add>, %105, %cst_31 [1] : vector<8x32xf32> to vector<8xf32>
    %107 = vector.shape_cast %106 : vector<8xf32> to vector<8x1xf32>
    %cst_32 = arith.constant 3.200000e+01 : f32
    %108 = vector.broadcast %cst_32 : f32 to vector<8x1xf32>
    %109 = arith.divf %107, %108 : vector<8x1xf32>
    %110 = vector.broadcast %102 : vector<8x1xf32> to vector<8x32xf32>
    %111 = arith.subf %96, %110 : vector<8x32xf32>
    %cst_33 = arith.constant 9.99999974E-6 : f32
    %112 = vector.broadcast %cst_33 : f32 to vector<8x1xf32>
    %113 = arith.addf %109, %112 : vector<8x1xf32>
    %114 = math.rsqrt %113 : vector<8x1xf32>
    %115 = vector.broadcast %114 : vector<8x1xf32> to vector<8x32xf32>
    %116 = arith.mulf %111, %115 : vector<8x32xf32>
    %117 = vector.broadcast %97 : vector<1x32xf32> to vector<8x32xf32>
    %118 = arith.mulf %116, %117 : vector<8x32xf32>
    %119 = vector.broadcast %98 : vector<1x32xf32> to vector<8x32xf32>
    %120 = arith.addf %118, %119 : vector<8x32xf32>
    %121 = arith.addf %120, %4 : vector<8x32xf32>
    %c1 = arith.constant 1 : index
    %c0_34 = arith.constant 0 : index
    %c0_35 = arith.constant 0 : index
    %122 = vector.load %arg6[%c1, %c0_34, %c0_35] : memref<4x32x32xbf16, #tpu.memory_space<vmem>>, vector<1x32x32xbf16>
    %123 = vector.shape_cast %122 : vector<1x32x32xbf16> to vector<32x32xbf16>
    %124 = arith.truncf %121 : vector<8x32xf32> to vector<8x32xbf16>
    %cst_36 = arith.constant dense<0.000000e+00> : vector<8x32xf32>
    %125 = tpu.matmul %124, %123, %cst_36 {dimension_numbers = #tpu.dot_dimension_numbers<[1], [0], [0], [1], [0, 0, 1, 1], [], []>} : vector<8x32xbf16>, vector<32x32xbf16>, vector<8x32xf32> -> vector<8x32xf32>
    %126 = vector.extract_strided_slice %0 {offsets = [4, 0], sizes = [1, 32], strides = [1, 1]} : vector<16x32xf32> to vector<1x32xf32>
    %127 = vector.broadcast %126 : vector<1x32xf32> to vector<8x32xf32>
    %128 = arith.addf %125, %127 : vector<8x32xf32>
    %c0_37 = arith.constant 0 : index
    %c0_38 = arith.constant 0 : index
    %c0_39 = arith.constant 0 : index
    %129 = vector.load %arg3[%c0_37, %c0_38, %c0_39] : memref<1x64x32xbf16, #tpu.memory_space<vmem>>, vector<1x64x32xbf16>
    %130 = vector.shape_cast %129 : vector<1x64x32xbf16> to vector<64x32xbf16>
    %c0_40 = arith.constant 0 : index
    %c0_41 = arith.constant 0 : index
    %131 = vector.load %arg5[%c0_40, %c0_41] : memref<32x64xbf16, #tpu.memory_space<vmem>>, vector<32x64xbf16>
    %cst_42 = arith.constant dense<0.000000e+00> : vector<64x64xf32>
    %132 = tpu.matmul %130, %131, %cst_42 {dimension_numbers = #tpu.dot_dimension_numbers<[1], [0], [0], [1], [0, 0, 1, 1], [], []>} : vector<64x32xbf16>, vector<32x64xbf16>, vector<64x64xf32> -> vector<64x64xf32>
    %133 = vector.extract_strided_slice %132 {offsets = [0, 0], sizes = [64, 32], strides = [1, 1]} : vector<64x64xf32> to vector<64x32xf32>
    %134 = vector.extract_strided_slice %0 {offsets = [5, 0], sizes = [1, 32], strides = [1, 1]} : vector<16x32xf32> to vector<1x32xf32>
    %135 = vector.broadcast %134 : vector<1x32xf32> to vector<64x32xf32>
    %136 = arith.addf %133, %135 : vector<64x32xf32>
    %137 = vector.extract_strided_slice %132 {offsets = [0, 32], sizes = [64, 32], strides = [1, 1]} : vector<64x64xf32> to vector<64x32xf32>
    %138 = vector.extract_strided_slice %0 {offsets = [6, 0], sizes = [1, 32], strides = [1, 1]} : vector<16x32xf32> to vector<1x32xf32>
    %139 = vector.broadcast %138 : vector<1x32xf32> to vector<64x32xf32>
    %140 = arith.addf %137, %139 : vector<64x32xf32>
    %c0_43 = arith.constant 0 : index
    %c0_44 = arith.constant 0 : index
    %c0_45 = arith.constant 0 : index
    %141 = vector.load %arg11[%c0_43, %c0_44, %c0_45] : memref<1x1x64xf32, #tpu.memory_space<vmem>>, vector<1x1x64xf32>
    %142 = vector.shape_cast %141 : vector<1x1x64xf32> to vector<1x64xf32>
    %143 = vector.shape_cast %142 : vector<1x64xf32> to vector<1x64xf32>
    %144 = vector.broadcast %143 : vector<1x64xf32> to vector<8x64xf32>
    %145 = arith.truncf %128 : vector<8x32xf32> to vector<8x32xbf16>
    %146 = arith.truncf %136 : vector<64x32xf32> to vector<64x32xbf16>
    %147 = arith.truncf %140 : vector<64x32xf32> to vector<64x32xbf16>
    %148 = vector.extract_strided_slice %145 {offsets = [0, 0], sizes = [8, 8], strides = [1, 1]} : vector<8x32xbf16> to vector<8x8xbf16>
    %149 = vector.extract_strided_slice %146 {offsets = [0, 0], sizes = [64, 8], strides = [1, 1]} : vector<64x32xbf16> to vector<64x8xbf16>
    %cst_46 = arith.constant dense<0.000000e+00> : vector<8x64xf32>
    %150 = tpu.matmul %148, %149, %cst_46 {dimension_numbers = #tpu.dot_dimension_numbers<[1], [1], [0], [0], [0, 0, 1, 0], [], []>} : vector<8x8xbf16>, vector<64x8xbf16>, vector<8x64xf32> -> vector<8x64xf32>
    %151 = arith.addf %150, %144 : vector<8x64xf32>
    %cst_47 = arith.constant dense<0xFF800000> : vector<8xf32>
    %152 = vector.multi_reduction <maximumf>, %151, %cst_47 [1] : vector<8x64xf32> to vector<8xf32>
    %153 = vector.shape_cast %152 : vector<8xf32> to vector<8x1xf32>
    %154 = vector.broadcast %153 : vector<8x1xf32> to vector<8x64xf32>
    %155 = arith.subf %151, %154 : vector<8x64xf32>
    %156 = math.exp %155 : vector<8x64xf32>
    %cst_48 = arith.constant dense<0.000000e+00> : vector<8xf32>
    %157 = vector.multi_reduction <add>, %156, %cst_48 [1] : vector<8x64xf32> to vector<8xf32>
    %158 = vector.shape_cast %157 : vector<8xf32> to vector<8x1xf32>
    %159 = tpu.reciprocal %158 {approx = true} : vector<8x1xf32> -> vector<8x1xf32>
    %160 = vector.broadcast %159 : vector<8x1xf32> to vector<8x64xf32>
    %161 = arith.mulf %156, %160 : vector<8x64xf32>
    %162 = arith.truncf %161 : vector<8x64xf32> to vector<8x64xbf16>
    %163 = vector.extract_strided_slice %147 {offsets = [0, 0], sizes = [64, 8], strides = [1, 1]} : vector<64x32xbf16> to vector<64x8xbf16>
    %cst_49 = arith.constant dense<0.000000e+00> : vector<8x8xf32>
    %164 = tpu.matmul %162, %163, %cst_49 {dimension_numbers = #tpu.dot_dimension_numbers<[1], [0], [0], [1], [0, 0, 1, 1], [], []>} : vector<8x64xbf16>, vector<64x8xbf16>, vector<8x8xf32> -> vector<8x8xf32>
    %165 = vector.extract_strided_slice %145 {offsets = [0, 8], sizes = [8, 8], strides = [1, 1]} : vector<8x32xbf16> to vector<8x8xbf16>
    %166 = vector.extract_strided_slice %146 {offsets = [0, 8], sizes = [64, 8], strides = [1, 1]} : vector<64x32xbf16> to vector<64x8xbf16>
    %cst_50 = arith.constant dense<0.000000e+00> : vector<8x64xf32>
    %167 = tpu.matmul %165, %166, %cst_50 {dimension_numbers = #tpu.dot_dimension_numbers<[1], [1], [0], [0], [0, 0, 1, 0], [], []>} : vector<8x8xbf16>, vector<64x8xbf16>, vector<8x64xf32> -> vector<8x64xf32>
    %168 = arith.addf %167, %144 : vector<8x64xf32>
    %cst_51 = arith.constant dense<0xFF800000> : vector<8xf32>
    %169 = vector.multi_reduction <maximumf>, %168, %cst_51 [1] : vector<8x64xf32> to vector<8xf32>
    %170 = vector.shape_cast %169 : vector<8xf32> to vector<8x1xf32>
    %171 = vector.broadcast %170 : vector<8x1xf32> to vector<8x64xf32>
    %172 = arith.subf %168, %171 : vector<8x64xf32>
    %173 = math.exp %172 : vector<8x64xf32>
    %cst_52 = arith.constant dense<0.000000e+00> : vector<8xf32>
    %174 = vector.multi_reduction <add>, %173, %cst_52 [1] : vector<8x64xf32> to vector<8xf32>
    %175 = vector.shape_cast %174 : vector<8xf32> to vector<8x1xf32>
    %176 = tpu.reciprocal %175 {approx = true} : vector<8x1xf32> -> vector<8x1xf32>
    %177 = vector.broadcast %176 : vector<8x1xf32> to vector<8x64xf32>
    %178 = arith.mulf %173, %177 : vector<8x64xf32>
    %179 = arith.truncf %178 : vector<8x64xf32> to vector<8x64xbf16>
    %180 = vector.extract_strided_slice %147 {offsets = [0, 8], sizes = [64, 8], strides = [1, 1]} : vector<64x32xbf16> to vector<64x8xbf16>
    %cst_53 = arith.constant dense<0.000000e+00> : vector<8x8xf32>
    %181 = tpu.matmul %179, %180, %cst_53 {dimension_numbers = #tpu.dot_dimension_numbers<[1], [0], [0], [1], [0, 0, 1, 1], [], []>} : vector<8x64xbf16>, vector<64x8xbf16>, vector<8x8xf32> -> vector<8x8xf32>
    %182 = vector.extract_strided_slice %145 {offsets = [0, 16], sizes = [8, 8], strides = [1, 1]} : vector<8x32xbf16> to vector<8x8xbf16>
    %183 = vector.extract_strided_slice %146 {offsets = [0, 16], sizes = [64, 8], strides = [1, 1]} : vector<64x32xbf16> to vector<64x8xbf16>
    %cst_54 = arith.constant dense<0.000000e+00> : vector<8x64xf32>
    %184 = tpu.matmul %182, %183, %cst_54 {dimension_numbers = #tpu.dot_dimension_numbers<[1], [1], [0], [0], [0, 0, 1, 0], [], []>} : vector<8x8xbf16>, vector<64x8xbf16>, vector<8x64xf32> -> vector<8x64xf32>
    %185 = arith.addf %184, %144 : vector<8x64xf32>
    %cst_55 = arith.constant dense<0xFF800000> : vector<8xf32>
    %186 = vector.multi_reduction <maximumf>, %185, %cst_55 [1] : vector<8x64xf32> to vector<8xf32>
    %187 = vector.shape_cast %186 : vector<8xf32> to vector<8x1xf32>
    %188 = vector.broadcast %187 : vector<8x1xf32> to vector<8x64xf32>
    %189 = arith.subf %185, %188 : vector<8x64xf32>
    %190 = math.exp %189 : vector<8x64xf32>
    %cst_56 = arith.constant dense<0.000000e+00> : vector<8xf32>
    %191 = vector.multi_reduction <add>, %190, %cst_56 [1] : vector<8x64xf32> to vector<8xf32>
    %192 = vector.shape_cast %191 : vector<8xf32> to vector<8x1xf32>
    %193 = tpu.reciprocal %192 {approx = true} : vector<8x1xf32> -> vector<8x1xf32>
    %194 = vector.broadcast %193 : vector<8x1xf32> to vector<8x64xf32>
    %195 = arith.mulf %190, %194 : vector<8x64xf32>
    %196 = arith.truncf %195 : vector<8x64xf32> to vector<8x64xbf16>
    %197 = vector.extract_strided_slice %147 {offsets = [0, 16], sizes = [64, 8], strides = [1, 1]} : vector<64x32xbf16> to vector<64x8xbf16>
    %cst_57 = arith.constant dense<0.000000e+00> : vector<8x8xf32>
    %198 = tpu.matmul %196, %197, %cst_57 {dimension_numbers = #tpu.dot_dimension_numbers<[1], [0], [0], [1], [0, 0, 1, 1], [], []>} : vector<8x64xbf16>, vector<64x8xbf16>, vector<8x8xf32> -> vector<8x8xf32>
    %199 = vector.extract_strided_slice %145 {offsets = [0, 24], sizes = [8, 8], strides = [1, 1]} : vector<8x32xbf16> to vector<8x8xbf16>
    %200 = vector.extract_strided_slice %146 {offsets = [0, 24], sizes = [64, 8], strides = [1, 1]} : vector<64x32xbf16> to vector<64x8xbf16>
    %cst_58 = arith.constant dense<0.000000e+00> : vector<8x64xf32>
    %201 = tpu.matmul %199, %200, %cst_58 {dimension_numbers = #tpu.dot_dimension_numbers<[1], [1], [0], [0], [0, 0, 1, 0], [], []>} : vector<8x8xbf16>, vector<64x8xbf16>, vector<8x64xf32> -> vector<8x64xf32>
    %202 = arith.addf %201, %144 : vector<8x64xf32>
    %cst_59 = arith.constant dense<0xFF800000> : vector<8xf32>
    %203 = vector.multi_reduction <maximumf>, %202, %cst_59 [1] : vector<8x64xf32> to vector<8xf32>
    %204 = vector.shape_cast %203 : vector<8xf32> to vector<8x1xf32>
    %205 = vector.broadcast %204 : vector<8x1xf32> to vector<8x64xf32>
    %206 = arith.subf %202, %205 : vector<8x64xf32>
    %207 = math.exp %206 : vector<8x64xf32>
    %cst_60 = arith.constant dense<0.000000e+00> : vector<8xf32>
    %208 = vector.multi_reduction <add>, %207, %cst_60 [1] : vector<8x64xf32> to vector<8xf32>
    %209 = vector.shape_cast %208 : vector<8xf32> to vector<8x1xf32>
    %210 = tpu.reciprocal %209 {approx = true} : vector<8x1xf32> -> vector<8x1xf32>
    %211 = vector.broadcast %210 : vector<8x1xf32> to vector<8x64xf32>
    %212 = arith.mulf %207, %211 : vector<8x64xf32>
    %213 = arith.truncf %212 : vector<8x64xf32> to vector<8x64xbf16>
    %214 = vector.extract_strided_slice %147 {offsets = [0, 24], sizes = [64, 8], strides = [1, 1]} : vector<64x32xbf16> to vector<64x8xbf16>
    %cst_61 = arith.constant dense<0.000000e+00> : vector<8x8xf32>
    %215 = tpu.matmul %213, %214, %cst_61 {dimension_numbers = #tpu.dot_dimension_numbers<[1], [0], [0], [1], [0, 0, 1, 1], [], []>} : vector<8x64xbf16>, vector<64x8xbf16>, vector<8x8xf32> -> vector<8x8xf32>
    %216 = tpu.concatenate %164, %181, %198, %215 in 1 : vector<8x8xf32>, vector<8x8xf32>, vector<8x8xf32>, vector<8x8xf32> -> vector<8x32xf32>
    %c2 = arith.constant 2 : index
    %c0_62 = arith.constant 0 : index
    %c0_63 = arith.constant 0 : index
    %217 = vector.load %arg6[%c2, %c0_62, %c0_63] : memref<4x32x32xbf16, #tpu.memory_space<vmem>>, vector<1x32x32xbf16>
    %218 = vector.shape_cast %217 : vector<1x32x32xbf16> to vector<32x32xbf16>
    %219 = arith.truncf %216 : vector<8x32xf32> to vector<8x32xbf16>
    %cst_64 = arith.constant dense<0.000000e+00> : vector<8x32xf32>
    %220 = tpu.matmul %219, %218, %cst_64 {dimension_numbers = #tpu.dot_dimension_numbers<[1], [0], [0], [1], [0, 0, 1, 1], [], []>} : vector<8x32xbf16>, vector<32x32xbf16>, vector<8x32xf32> -> vector<8x32xf32>
    %221 = vector.extract_strided_slice %0 {offsets = [7, 0], sizes = [1, 32], strides = [1, 1]} : vector<16x32xf32> to vector<1x32xf32>
    %222 = vector.broadcast %221 : vector<1x32xf32> to vector<8x32xf32>
    %223 = arith.addf %220, %222 : vector<8x32xf32>
    %224 = arith.addf %120, %223 : vector<8x32xf32>
    %225 = vector.extract_strided_slice %0 {offsets = [12, 0], sizes = [1, 32], strides = [1, 1]} : vector<16x32xf32> to vector<1x32xf32>
    %226 = vector.extract_strided_slice %0 {offsets = [13, 0], sizes = [1, 32], strides = [1, 1]} : vector<16x32xf32> to vector<1x32xf32>
    %cst_65 = arith.constant dense<0.000000e+00> : vector<8xf32>
    %227 = vector.multi_reduction <add>, %224, %cst_65 [1] : vector<8x32xf32> to vector<8xf32>
    %228 = vector.shape_cast %227 : vector<8xf32> to vector<8x1xf32>
    %cst_66 = arith.constant 3.200000e+01 : f32
    %229 = vector.broadcast %cst_66 : f32 to vector<8x1xf32>
    %230 = arith.divf %228, %229 : vector<8x1xf32>
    %231 = vector.broadcast %230 : vector<8x1xf32> to vector<8x32xf32>
    %232 = arith.subf %224, %231 : vector<8x32xf32>
    %233 = arith.mulf %232, %232 : vector<8x32xf32>
    %cst_67 = arith.constant dense<0.000000e+00> : vector<8xf32>
    %234 = vector.multi_reduction <add>, %233, %cst_67 [1] : vector<8x32xf32> to vector<8xf32>
    %235 = vector.shape_cast %234 : vector<8xf32> to vector<8x1xf32>
    %cst_68 = arith.constant 3.200000e+01 : f32
    %236 = vector.broadcast %cst_68 : f32 to vector<8x1xf32>
    %237 = arith.divf %235, %236 : vector<8x1xf32>
    %238 = vector.broadcast %230 : vector<8x1xf32> to vector<8x32xf32>
    %239 = arith.subf %224, %238 : vector<8x32xf32>
    %cst_69 = arith.constant 9.99999974E-6 : f32
    %240 = vector.broadcast %cst_69 : f32 to vector<8x1xf32>
    %241 = arith.addf %237, %240 : vector<8x1xf32>
    %242 = math.rsqrt %241 : vector<8x1xf32>
    %243 = vector.broadcast %242 : vector<8x1xf32> to vector<8x32xf32>
    %244 = arith.mulf %239, %243 : vector<8x32xf32>
    %245 = vector.broadcast %225 : vector<1x32xf32> to vector<8x32xf32>
    %246 = arith.mulf %244, %245 : vector<8x32xf32>
    %247 = vector.broadcast %226 : vector<1x32xf32> to vector<8x32xf32>
    %248 = arith.addf %246, %247 : vector<8x32xf32>
    %c3 = arith.constant 3 : index
    %c0_70 = arith.constant 0 : index
    %c0_71 = arith.constant 0 : index
    %249 = vector.load %arg6[%c3, %c0_70, %c0_71] : memref<4x32x32xbf16, #tpu.memory_space<vmem>>, vector<1x32x32xbf16>
    %250 = vector.shape_cast %249 : vector<1x32x32xbf16> to vector<32x32xbf16>
    %251 = arith.truncf %223 : vector<8x32xf32> to vector<8x32xbf16>
    %cst_72 = arith.constant dense<0.000000e+00> : vector<8x32xf32>
    %252 = tpu.matmul %251, %250, %cst_72 {dimension_numbers = #tpu.dot_dimension_numbers<[1], [0], [0], [1], [0, 0, 1, 1], [], []>} : vector<8x32xbf16>, vector<32x32xbf16>, vector<8x32xf32> -> vector<8x32xf32>
    %253 = vector.extract_strided_slice %0 {offsets = [8, 0], sizes = [1, 32], strides = [1, 1]} : vector<16x32xf32> to vector<1x32xf32>
    %254 = vector.broadcast %253 : vector<1x32xf32> to vector<8x32xf32>
    %255 = arith.addf %252, %254 : vector<8x32xf32>
    %c0_73 = arith.constant 0 : index
    %c0_74 = arith.constant 0 : index
    %256 = vector.load %arg7[%c0_73, %c0_74] : memref<32x64xbf16, #tpu.memory_space<vmem>>, vector<32x64xbf16>
    %257 = arith.truncf %248 : vector<8x32xf32> to vector<8x32xbf16>
    %cst_75 = arith.constant dense<0.000000e+00> : vector<8x64xf32>
    %258 = tpu.matmul %257, %256, %cst_75 {dimension_numbers = #tpu.dot_dimension_numbers<[1], [0], [0], [1], [0, 0, 1, 1], [], []>} : vector<8x32xbf16>, vector<32x64xbf16>, vector<8x64xf32> -> vector<8x64xf32>
    %c0_76 = arith.constant 0 : index
    %c0_77 = arith.constant 0 : index
    %259 = vector.load %arg9[%c0_76, %c0_77] : memref<1x64xf32, #tpu.memory_space<vmem>>, vector<1x64xf32>
    %260 = vector.broadcast %259 : vector<1x64xf32> to vector<8x64xf32>
    %261 = arith.addf %258, %260 : vector<8x64xf32>
    %cst_78 = arith.constant 0.000000e+00 : f32
    %262 = vector.broadcast %cst_78 : f32 to vector<8x64xf32>
    %263 = arith.maximumf %261, %262 : vector<8x64xf32>
    %c0_79 = arith.constant 0 : index
    %c0_80 = arith.constant 0 : index
    %264 = vector.load %arg8[%c0_79, %c0_80] : memref<64x32xbf16, #tpu.memory_space<vmem>>, vector<64x32xbf16>
    %265 = arith.truncf %263 : vector<8x64xf32> to vector<8x64xbf16>
    %cst_81 = arith.constant dense<0.000000e+00> : vector<8x32xf32>
    %266 = tpu.matmul %265, %264, %cst_81 {dimension_numbers = #tpu.dot_dimension_numbers<[1], [0], [0], [1], [0, 0, 1, 1], [], []>} : vector<8x64xbf16>, vector<64x32xbf16>, vector<8x32xf32> -> vector<8x32xf32>
    %267 = vector.extract_strided_slice %0 {offsets = [9, 0], sizes = [1, 32], strides = [1, 1]} : vector<16x32xf32> to vector<1x32xf32>
    %268 = vector.broadcast %267 : vector<1x32xf32> to vector<8x32xf32>
    %269 = arith.addf %266, %268 : vector<8x32xf32>
    %270 = arith.addf %248, %269 : vector<8x32xf32>
    %271 = vector.extract_strided_slice %0 {offsets = [14, 0], sizes = [1, 32], strides = [1, 1]} : vector<16x32xf32> to vector<1x32xf32>
    %272 = vector.extract_strided_slice %0 {offsets = [15, 0], sizes = [1, 32], strides = [1, 1]} : vector<16x32xf32> to vector<1x32xf32>
    %cst_82 = arith.constant dense<0.000000e+00> : vector<8xf32>
    %273 = vector.multi_reduction <add>, %270, %cst_82 [1] : vector<8x32xf32> to vector<8xf32>
    %274 = vector.shape_cast %273 : vector<8xf32> to vector<8x1xf32>
    %cst_83 = arith.constant 3.200000e+01 : f32
    %275 = vector.broadcast %cst_83 : f32 to vector<8x1xf32>
    %276 = arith.divf %274, %275 : vector<8x1xf32>
    %277 = vector.broadcast %276 : vector<8x1xf32> to vector<8x32xf32>
    %278 = arith.subf %270, %277 : vector<8x32xf32>
    %279 = arith.mulf %278, %278 : vector<8x32xf32>
    %cst_84 = arith.constant dense<0.000000e+00> : vector<8xf32>
    %280 = vector.multi_reduction <add>, %279, %cst_84 [1] : vector<8x32xf32> to vector<8xf32>
    %281 = vector.shape_cast %280 : vector<8xf32> to vector<8x1xf32>
    %cst_85 = arith.constant 3.200000e+01 : f32
    %282 = vector.broadcast %cst_85 : f32 to vector<8x1xf32>
    %283 = arith.divf %281, %282 : vector<8x1xf32>
    %284 = vector.broadcast %276 : vector<8x1xf32> to vector<8x32xf32>
    %285 = arith.subf %270, %284 : vector<8x32xf32>
    %cst_86 = arith.constant 9.99999974E-6 : f32
    %286 = vector.broadcast %cst_86 : f32 to vector<8x1xf32>
    %287 = arith.addf %283, %286 : vector<8x1xf32>
    %288 = math.rsqrt %287 : vector<8x1xf32>
    %289 = vector.broadcast %288 : vector<8x1xf32> to vector<8x32xf32>
    %290 = arith.mulf %285, %289 : vector<8x32xf32>
    %291 = vector.broadcast %271 : vector<1x32xf32> to vector<8x32xf32>
    %292 = arith.mulf %290, %291 : vector<8x32xf32>
    %293 = vector.broadcast %272 : vector<1x32xf32> to vector<8x32xf32>
    %294 = arith.addf %292, %293 : vector<8x32xf32>
    %c0_87 = arith.constant 0 : index
    %c0_88 = arith.constant 0 : index
    %c0_89 = arith.constant 0 : index
    %295 = vector.load %arg17[%c0_87, %c0_88, %c0_89] : memref<1x8x32xf32, #tpu.memory_space<vmem>>, vector<1x8x32xf32>
    %296 = vector.shape_cast %295 : vector<1x8x32xf32> to vector<8x32xf32>
    %297 = vector.shape_cast %294 : vector<8x32xf32> to vector<1x8x32xf32>
    tpu.vector_store %arg17[%c0_87, %c0_88, %c0_89], %297 {strides = array<i32>} : memref<1x8x32xf32, #tpu.memory_space<vmem>>, vector<1x8x32xf32>,
    %c0_90 = arith.constant 0 : index
    %c0_91 = arith.constant 0 : index
    %298 = vector.load %arg16[%c0_90, %c0_91] : memref<5x32xf32, #tpu.memory_space<vmem>>, vector<5x32xf32>
    %299 = vector.extract_strided_slice %298 {offsets = [1, 0], sizes = [1, 32], strides = [1, 1]} : vector<5x32xf32> to vector<1x32xf32>
    %300 = vector.extract_strided_slice %298 {offsets = [2, 0], sizes = [1, 32], strides = [1, 1]} : vector<5x32xf32> to vector<1x32xf32>
    %cst_92 = arith.constant dense<0.000000e+00> : vector<8xf32>
    %301 = vector.multi_reduction <add>, %294, %cst_92 [1] : vector<8x32xf32> to vector<8xf32>
    %302 = vector.shape_cast %301 : vector<8xf32> to vector<8x1xf32>
    %cst_93 = arith.constant 3.200000e+01 : f32
    %303 = vector.broadcast %cst_93 : f32 to vector<8x1xf32>
    %304 = arith.divf %302, %303 : vector<8x1xf32>
    %305 = vector.broadcast %304 : vector<8x1xf32> to vector<8x32xf32>
    %306 = arith.subf %294, %305 : vector<8x32xf32>
    %307 = arith.mulf %306, %306 : vector<8x32xf32>
    %cst_94 = arith.constant dense<0.000000e+00> : vector<8xf32>
    %308 = vector.multi_reduction <add>, %307, %cst_94 [1] : vector<8x32xf32> to vector<8xf32>
    %309 = vector.shape_cast %308 : vector<8xf32> to vector<8x1xf32>
    %cst_95 = arith.constant 3.200000e+01 : f32
    %310 = vector.broadcast %cst_95 : f32 to vector<8x1xf32>
    %311 = arith.divf %309, %310 : vector<8x1xf32>
    %312 = vector.broadcast %304 : vector<8x1xf32> to vector<8x32xf32>
    %313 = arith.subf %294, %312 : vector<8x32xf32>
    %cst_96 = arith.constant 9.99999974E-6 : f32
    %314 = vector.broadcast %cst_96 : f32 to vector<8x1xf32>
    %315 = arith.addf %311, %314 : vector<8x1xf32>
    %316 = math.rsqrt %315 : vector<8x1xf32>
    %317 = vector.broadcast %316 : vector<8x1xf32> to vector<8x32xf32>
    %318 = arith.mulf %313, %317 : vector<8x32xf32>
    %319 = vector.broadcast %299 : vector<1x32xf32> to vector<8x32xf32>
    %320 = arith.mulf %318, %319 : vector<8x32xf32>
    %321 = vector.broadcast %300 : vector<1x32xf32> to vector<8x32xf32>
    %322 = arith.addf %320, %321 : vector<8x32xf32>
    %323 = vector.extract_strided_slice %298 {offsets = [1, 0], sizes = [1, 32], strides = [1, 1]} : vector<5x32xf32> to vector<1x32xf32>
    %324 = vector.extract_strided_slice %298 {offsets = [2, 0], sizes = [1, 32], strides = [1, 1]} : vector<5x32xf32> to vector<1x32xf32>
    %cst_97 = arith.constant dense<0.000000e+00> : vector<8xf32>
    %325 = vector.multi_reduction <add>, %255, %cst_97 [1] : vector<8x32xf32> to vector<8xf32>
    %326 = vector.shape_cast %325 : vector<8xf32> to vector<8x1xf32>
    %cst_98 = arith.constant 3.200000e+01 : f32
    %327 = vector.broadcast %cst_98 : f32 to vector<8x1xf32>
    %328 = arith.divf %326, %327 : vector<8x1xf32>
    %329 = vector.broadcast %328 : vector<8x1xf32> to vector<8x32xf32>
    %330 = arith.subf %255, %329 : vector<8x32xf32>
    %331 = arith.mulf %330, %330 : vector<8x32xf32>
    %cst_99 = arith.constant dense<0.000000e+00> : vector<8xf32>
    %332 = vector.multi_reduction <add>, %331, %cst_99 [1] : vector<8x32xf32> to vector<8xf32>
    %333 = vector.shape_cast %332 : vector<8xf32> to vector<8x1xf32>
    %cst_100 = arith.constant 3.200000e+01 : f32
    %334 = vector.broadcast %cst_100 : f32 to vector<8x1xf32>
    %335 = arith.divf %333, %334 : vector<8x1xf32>
    %336 = vector.broadcast %328 : vector<8x1xf32> to vector<8x32xf32>
    %337 = arith.subf %255, %336 : vector<8x32xf32>
    %cst_101 = arith.constant 9.99999974E-6 : f32
    %338 = vector.broadcast %cst_101 : f32 to vector<8x1xf32>
    %339 = arith.addf %335, %338 : vector<8x1xf32>
    %340 = math.rsqrt %339 : vector<8x1xf32>
    %341 = vector.broadcast %340 : vector<8x1xf32> to vector<8x32xf32>
    %342 = arith.mulf %337, %341 : vector<8x32xf32>
    %343 = vector.broadcast %323 : vector<1x32xf32> to vector<8x32xf32>
    %344 = arith.mulf %342, %343 : vector<8x32xf32>
    %345 = vector.broadcast %324 : vector<1x32xf32> to vector<8x32xf32>
    %346 = arith.addf %344, %345 : vector<8x32xf32>
    %c0_102 = arith.constant 0 : index
    %c0_103 = arith.constant 0 : index
    %c0_104 = arith.constant 0 : index
    %347 = vector.load %arg15[%c0_102, %c0_103, %c0_104] : memref<3x32x32xbf16, #tpu.memory_space<vmem>>, vector<1x32x32xbf16>
    %348 = vector.shape_cast %347 : vector<1x32x32xbf16> to vector<32x32xbf16>
    %349 = arith.truncf %346 : vector<8x32xf32> to vector<8x32xbf16>
    %cst_105 = arith.constant dense<0.000000e+00> : vector<8x32xf32>
    %350 = tpu.matmul %349, %348, %cst_105 {dimension_numbers = #tpu.dot_dimension_numbers<[1], [0], [0], [1], [0, 0, 1, 1], [], []>} : vector<8x32xbf16>, vector<32x32xbf16>, vector<8x32xf32> -> vector<8x32xf32>
    %351 = arith.addf %322, %350 : vector<8x32xf32>
    %352 = vector.extract_strided_slice %298 {offsets = [0, 0], sizes = [1, 32], strides = [1, 1]} : vector<5x32xf32> to vector<1x32xf32>
    %353 = vector.broadcast %352 : vector<1x32xf32> to vector<8x32xf32>
    %354 = arith.addf %351, %353 : vector<8x32xf32>
    %c0_106 = arith.constant 0 : index
    %c0_107 = arith.constant 0 : index
    %355 = vector.load %arg13[%c0_106, %c0_107] : memref<32x8xbf16, #tpu.memory_space<vmem>>, vector<32x8xbf16>
    %c0_108 = arith.constant 0 : index
    %c0_109 = arith.constant 0 : index
    %356 = vector.load %arg14[%c0_108, %c0_109] : memref<1x8xf32, #tpu.memory_space<vmem>>, vector<1x8xf32>
    %357 = vector.extract_strided_slice %355 {offsets = [0, 0], sizes = [32, 4], strides = [1, 1]} : vector<32x8xbf16> to vector<32x4xbf16>
    %358 = arith.truncf %354 : vector<8x32xf32> to vector<8x32xbf16>
    %cst_110 = arith.constant dense<0.000000e+00> : vector<8x4xf32>
    %359 = tpu.matmul %358, %357, %cst_110 {dimension_numbers = #tpu.dot_dimension_numbers<[1], [0], [0], [1], [0, 0, 1, 1], [], []>} : vector<8x32xbf16>, vector<32x4xbf16>, vector<8x4xf32> -> vector<8x4xf32>
    %360 = vector.extract_strided_slice %356 {offsets = [0, 0], sizes = [1, 4], strides = [1, 1]} : vector<1x8xf32> to vector<1x4xf32>
    %361 = vector.broadcast %360 : vector<1x4xf32> to vector<8x4xf32>
    %362 = arith.addf %359, %361 : vector<8x4xf32>
    %c1_111 = arith.constant 1 : index
    %c0_112 = arith.constant 0 : index
    %c0_113 = arith.constant 0 : index
    %363 = vector.load %arg15[%c1_111, %c0_112, %c0_113] : memref<3x32x32xbf16, #tpu.memory_space<vmem>>, vector<1x32x32xbf16>
    %364 = vector.shape_cast %363 : vector<1x32x32xbf16> to vector<32x32xbf16>
    %365 = arith.truncf %322 : vector<8x32xf32> to vector<8x32xbf16>
    %cst_114 = arith.constant dense<0.000000e+00> : vector<8x32xf32>
    %366 = tpu.matmul %365, %364, %cst_114 {dimension_numbers = #tpu.dot_dimension_numbers<[1], [0], [0], [1], [0, 0, 1, 1], [], []>} : vector<8x32xbf16>, vector<32x32xbf16>, vector<8x32xf32> -> vector<8x32xf32>
    %367 = vector.extract_strided_slice %298 {offsets = [3, 0], sizes = [1, 32], strides = [1, 1]} : vector<5x32xf32> to vector<1x32xf32>
    %368 = vector.broadcast %367 : vector<1x32xf32> to vector<8x32xf32>
    %369 = arith.addf %366, %368 : vector<8x32xf32>
    %cst_115 = arith.constant 0.000000e+00 : f32
    %370 = vector.broadcast %cst_115 : f32 to vector<8x32xf32>
    %371 = arith.maximumf %369, %370 : vector<8x32xf32>
    %c2_116 = arith.constant 2 : index
    %c0_117 = arith.constant 0 : index
    %c0_118 = arith.constant 0 : index
    %372 = vector.load %arg15[%c2_116, %c0_117, %c0_118] : memref<3x32x32xbf16, #tpu.memory_space<vmem>>, vector<1x32x32xbf16>
    %373 = vector.shape_cast %372 : vector<1x32x32xbf16> to vector<32x32xbf16>
    %374 = arith.truncf %371 : vector<8x32xf32> to vector<8x32xbf16>
    %cst_119 = arith.constant dense<0.000000e+00> : vector<8x32xf32>
    %375 = tpu.matmul %374, %373, %cst_119 {dimension_numbers = #tpu.dot_dimension_numbers<[1], [0], [0], [1], [0, 0, 1, 1], [], []>} : vector<8x32xbf16>, vector<32x32xbf16>, vector<8x32xf32> -> vector<8x32xf32>
    %376 = vector.extract_strided_slice %298 {offsets = [4, 0], sizes = [1, 32], strides = [1, 1]} : vector<5x32xf32> to vector<1x32xf32>
    %377 = vector.broadcast %376 : vector<1x32xf32> to vector<8x32xf32>
    %378 = arith.addf %375, %377 : vector<8x32xf32>
    %cst_120 = arith.constant 0.000000e+00 : f32
    %379 = vector.broadcast %cst_120 : f32 to vector<8x32xf32>
    %380 = arith.maximumf %378, %379 : vector<8x32xf32>
    %381 = vector.extract_strided_slice %355 {offsets = [0, 4], sizes = [32, 4], strides = [1, 1]} : vector<32x8xbf16> to vector<32x4xbf16>
    %382 = arith.truncf %380 : vector<8x32xf32> to vector<8x32xbf16>
    %cst_121 = arith.constant dense<0.000000e+00> : vector<8x4xf32>
    %383 = tpu.matmul %382, %381, %cst_121 {dimension_numbers = #tpu.dot_dimension_numbers<[1], [0], [0], [1], [0, 0, 1, 1], [], []>} : vector<8x32xbf16>, vector<32x4xbf16>, vector<8x4xf32> -> vector<8x4xf32>
    %384 = vector.extract_strided_slice %356 {offsets = [0, 4], sizes = [1, 4], strides = [1, 1]} : vector<1x8xf32> to vector<1x4xf32>
    %385 = vector.broadcast %384 : vector<1x4xf32> to vector<8x4xf32>
    %386 = arith.addf %383, %385 : vector<8x4xf32>
    %c0_122 = arith.constant 0 : index
    %c0_123 = arith.constant 0 : index
    %c0_124 = arith.constant 0 : index
    %387 = vector.load %arg12[%c0_122, %c0_123, %c0_124] : memref<1x8x4xf32, #tpu.memory_space<vmem>>, vector<1x8x4xf32>
    %388 = vector.shape_cast %387 : vector<1x8x4xf32> to vector<8x4xf32>
    %cst_125 = arith.constant 9.99999974E-6 : f32
    %cst_126 = arith.constant 0.999989986 : f32
    %389 = vector.broadcast %cst_125 : f32 to vector<8x4xf32>
    %390 = arith.maximumf %389, %388 : vector<8x4xf32>
    %391 = vector.broadcast %cst_126 : f32 to vector<8x4xf32>
    %392 = arith.minimumf %391, %390 : vector<8x4xf32>
    %393 = math.log %392 : vector<8x4xf32>
    %cst_127 = arith.constant 1.000000e+00 : f32
    %394 = vector.broadcast %cst_127 : f32 to vector<8x4xf32>
    %395 = arith.subf %394, %392 : vector<8x4xf32>
    %396 = math.log %395 : vector<8x4xf32>
    %397 = arith.subf %393, %396 : vector<8x4xf32>
    %398 = arith.addf %386, %397 : vector<8x4xf32>
    %399 = arith.negf %398 : vector<8x4xf32>
    %400 = math.exp %399 : vector<8x4xf32>
    %cst_128 = arith.constant 1.000000e+00 : f32
    %401 = vector.broadcast %cst_128 : f32 to vector<8x4xf32>
    %402 = arith.addf %401, %400 : vector<8x4xf32>
    %403 = arith.divf %401, %402 : vector<8x4xf32>
    %cst_129 = arith.constant 0.000000e+00 : f32
    %404 = vector.broadcast %cst_129 : f32 to vector<8x120xf32>
    %405 = tpu.concatenate %362, %403, %404 in 1 : vector<8x4xf32>, vector<8x4xf32>, vector<8x120xf32> -> vector<8x128xf32>
    %c0_130 = arith.constant 0 : index
    %c0_131 = arith.constant 0 : index
    %c0_132 = arith.constant 0 : index
    %406 = vector.load %arg18[%c0_130, %c0_131, %c0_132] : memref<1x8x128xf32, #tpu.memory_space<vmem>>, vector<1x8x128xf32>
    %407 = vector.shape_cast %406 : vector<1x8x128xf32> to vector<8x128xf32>
    %408 = vector.shape_cast %405 : vector<8x128xf32> to vector<1x8x128xf32>
    tpu.vector_store %arg18[%c0_130, %c0_131, %c0_132], %408 {strides = array<i32>} : memref<1x8x128xf32, #tpu.memory_space<vmem>>, vector<1x8x128xf32>,
    return
  }
  func.func @transform_0(%arg0: i32) -> (i32, i32, i32) {
    %c0_i32 = arith.constant 0 : i32
    %c0_i32_0 = arith.constant 0 : i32
    %c0_i32_1 = arith.constant 0 : i32
    return %arg0, %c0_i32, %c0_i32_0 : i32, i32, i32
  }
  func.func @transform_1(%arg0: i32) -> (i32, i32, i32) {
    %c0_i32 = arith.constant 0 : i32
    %c0_i32_0 = arith.constant 0 : i32
    %c0_i32_1 = arith.constant 0 : i32
    return %arg0, %c0_i32, %c0_i32_0 : i32, i32, i32
  }
  func.func @transform_2(%arg0: i32) -> (i32, i32, i32) {
    %c0_i32 = arith.constant 0 : i32
    %c0_i32_0 = arith.constant 0 : i32
    %c0_i32_1 = arith.constant 0 : i32
    return %arg0, %c0_i32, %c0_i32_0 : i32, i32, i32
  }
  func.func @transform_3(%arg0: i32) -> (i32, i32) {
    %c0_i32 = arith.constant 0 : i32
    %c0_i32_0 = arith.constant 0 : i32
    %c0_i32_1 = arith.constant 0 : i32
    return %c0_i32, %c0_i32_0 : i32, i32
  }
  func.func @transform_4(%arg0: i32) -> (i32, i32) {
    %c0_i32 = arith.constant 0 : i32
    %c0_i32_0 = arith.constant 0 : i32
    %c0_i32_1 = arith.constant 0 : i32
    return %c0_i32, %c0_i32_0 : i32, i32
  }
  func.func @transform_5(%arg0: i32) -> (i32, i32, i32) {
    %c0_i32 = arith.constant 0 : i32
    %c0_i32_0 = arith.constant 0 : i32
    %c0_i32_1 = arith.constant 0 : i32
    %c0_i32_2 = arith.constant 0 : i32
    return %c0_i32, %c0_i32_0, %c0_i32_1 : i32, i32, i32
  }
  func.func @transform_6(%arg0: i32) -> (i32, i32) {
    %c0_i32 = arith.constant 0 : i32
    %c0_i32_0 = arith.constant 0 : i32
    %c0_i32_1 = arith.constant 0 : i32
    return %c0_i32, %c0_i32_0 : i32, i32
  }
  func.func @transform_7(%arg0: i32) -> (i32, i32) {
    %c0_i32 = arith.constant 0 : i32
    %c0_i32_0 = arith.constant 0 : i32
    %c0_i32_1 = arith.constant 0 : i32
    return %c0_i32, %c0_i32_0 : i32, i32
  }
  func.func @transform_8(%arg0: i32) -> (i32, i32) {
    %c0_i32 = arith.constant 0 : i32
    %c0_i32_0 = arith.constant 0 : i32
    %c0_i32_1 = arith.constant 0 : i32
    return %c0_i32, %c0_i32_0 : i32, i32
  }
  func.func @transform_9(%arg0: i32) -> (i32, i32) {
    %c0_i32 = arith.constant 0 : i32
    %c0_i32_0 = arith.constant 0 : i32
    %c0_i32_1 = arith.constant 0 : i32
    return %c0_i32, %c0_i32_0 : i32, i32
  }
  func.func @transform_10(%arg0: i32) -> (i32, i32, i32) {
    %c0_i32 = arith.constant 0 : i32
    %c0_i32_0 = arith.constant 0 : i32
    %c0_i32_1 = arith.constant 0 : i32
    return %arg0, %c0_i32, %c0_i32_0 : i32, i32, i32
  }
  func.func @transform_11(%arg0: i32) -> (i32, i32, i32) {
    %c0_i32 = arith.constant 0 : i32
    %c0_i32_0 = arith.constant 0 : i32
    %c0_i32_1 = arith.constant 0 : i32
    return %arg0, %c0_i32, %c0_i32_0 : i32, i32, i32
  }
  func.func @transform_12(%arg0: i32) -> (i32, i32) {
    %c0_i32 = arith.constant 0 : i32
    %c0_i32_0 = arith.constant 0 : i32
    %c0_i32_1 = arith.constant 0 : i32
    return %c0_i32, %c0_i32_0 : i32, i32
  }
  func.func @transform_13(%arg0: i32) -> (i32, i32) {
    %c0_i32 = arith.constant 0 : i32
    %c0_i32_0 = arith.constant 0 : i32
    %c0_i32_1 = arith.constant 0 : i32
    return %c0_i32, %c0_i32_0 : i32, i32
  }
  func.func @transform_14(%arg0: i32) -> (i32, i32, i32) {
    %c0_i32 = arith.constant 0 : i32
    %c0_i32_0 = arith.constant 0 : i32
    %c0_i32_1 = arith.constant 0 : i32
    %c0_i32_2 = arith.constant 0 : i32
    return %c0_i32, %c0_i32_0, %c0_i32_1 : i32, i32, i32
  }
  func.func @transform_15(%arg0: i32) -> (i32, i32) {
    %c0_i32 = arith.constant 0 : i32
    %c0_i32_0 = arith.constant 0 : i32
    %c0_i32_1 = arith.constant 0 : i32
    return %c0_i32, %c0_i32_0 : i32, i32
  }
  func.func @transform_16(%arg0: i32) -> (i32, i32, i32) {
    %c0_i32 = arith.constant 0 : i32
    %c0_i32_0 = arith.constant 0 : i32
    %c0_i32_1 = arith.constant 0 : i32
    return %arg0, %c0_i32, %c0_i32_0 : i32, i32, i32
  }
  func.func @transform_17(%arg0: i32) -> (i32, i32, i32) {
    %c0_i32 = arith.constant 0 : i32
    %c0_i32_0 = arith.constant 0 : i32
    %c0_i32_1 = arith.constant 0 : i32
    return %arg0, %c0_i32, %c0_i32_0 : i32, i32, i32
  }
}

module attributes {stable_mosaic.version = 11 : i64} {
  func.func @_decoder_layer_kernel(%arg0: i32, %arg1: memref<1x8x32xf32, #tpu.memory_space<vmem>>, %arg2: memref<1x8x32xf32, #tpu.memory_space<vmem>>, %arg3: memref<1x64x32xbf16, #tpu.memory_space<vmem>>, %arg4: memref<32x96xbf16, #tpu.memory_space<vmem>>, %arg5: memref<32x64xbf16, #tpu.memory_space<vmem>>, %arg6: memref<4x32x32xbf16, #tpu.memory_space<vmem>>, %arg7: memref<32x64xbf16, #tpu.memory_space<vmem>>, %arg8: memref<64x32xbf16, #tpu.memory_space<vmem>>, %arg9: memref<1x64xf32, #tpu.memory_space<vmem>>, %arg10: memref<16x32xf32, #tpu.memory_space<vmem>>, %arg11: memref<1x1x64xf32, #tpu.memory_space<vmem>>, %arg12: memref<1x8x4xf32, #tpu.memory_space<vmem>>, %arg13: memref<32x8xbf16, #tpu.memory_space<vmem>>, %arg14: memref<1x8xf32, #tpu.memory_space<vmem>>, %arg15: memref<3x32x32xbf16, #tpu.memory_space<vmem>>, %arg16: memref<5x32xf32, #tpu.memory_space<vmem>>, %arg17: memref<1x8x32xf32, #tpu.memory_space<vmem>>, %arg18: memref<1x8x128xf32, #tpu.memory_space<vmem>>) attributes {dimension_semantics = [#tpu.dimension_semantics<parallel>], iteration_bounds = array<i64: 2>, scalar_prefetch = 0 : i64, scratch_operands = 0 : i64, tpu.core_type = #tpu.core_type<tc>, window_params = [{transform_indices = @transform_0, window_bounds = array<i64: 1, 8, 32>}, {transform_indices = @transform_1, window_bounds = array<i64: 1, 8, 32>}, {transform_indices = @transform_2, window_bounds = array<i64: 1, 64, 32>}, {pipeline_mode = #tpu.pipeline_mode<synchronous>, transform_indices = @transform_3, window_bounds = array<i64: 32, 96>}, {pipeline_mode = #tpu.pipeline_mode<synchronous>, transform_indices = @transform_4, window_bounds = array<i64: 32, 64>}, {pipeline_mode = #tpu.pipeline_mode<synchronous>, transform_indices = @transform_5, window_bounds = array<i64: 4, 32, 32>}, {pipeline_mode = #tpu.pipeline_mode<synchronous>, transform_indices = @transform_6, window_bounds = array<i64: 32, 64>}, {pipeline_mode = #tpu.pipeline_mode<synchronous>, transform_indices = @transform_7, window_bounds = array<i64: 64, 32>}, {pipeline_mode = #tpu.pipeline_mode<synchronous>, transform_indices = @transform_8, window_bounds = array<i64: 1, 64>}, {pipeline_mode = #tpu.pipeline_mode<synchronous>, transform_indices = @transform_9, window_bounds = array<i64: 16, 32>}, {transform_indices = @transform_10, window_bounds = array<i64: 1, 1, 64>}, {transform_indices = @transform_11, window_bounds = array<i64: 1, 8, 4>}, {pipeline_mode = #tpu.pipeline_mode<synchronous>, transform_indices = @transform_12, window_bounds = array<i64: 32, 8>}, {pipeline_mode = #tpu.pipeline_mode<synchronous>, transform_indices = @transform_13, window_bounds = array<i64: 1, 8>}, {pipeline_mode = #tpu.pipeline_mode<synchronous>, transform_indices = @transform_14, window_bounds = array<i64: 3, 32, 32>}, {pipeline_mode = #tpu.pipeline_mode<synchronous>, transform_indices = @transform_15, window_bounds = array<i64: 5, 32>}, {transform_indices = @transform_16, window_bounds = array<i64: 1, 8, 32>}, {transform_indices = @transform_17, window_bounds = array<i64: 1, 8, 128>}]} {
    %c0 = arith.constant 0 : index
    %c0_0 = arith.constant 0 : index
    %0 = vector.load %arg10[%c0, %c0_0] : memref<16x32xf32, #tpu.memory_space<vmem>>, vector<16x32xf32>
    %c0_1 = arith.constant 0 : index
    %c0_2 = arith.constant 0 : index
    %c0_3 = arith.constant 0 : index
    %1 = vector.load %arg1[%c0_1, %c0_2, %c0_3] : memref<1x8x32xf32, #tpu.memory_space<vmem>>, vector<1x8x32xf32>
    %2 = vector.shape_cast %1 : vector<1x8x32xf32> to vector<8x32xf32>
    %c0_4 = arith.constant 0 : index
    %c0_5 = arith.constant 0 : index
    %c0_6 = arith.constant 0 : index
    %3 = vector.load %arg2[%c0_4, %c0_5, %c0_6] : memref<1x8x32xf32, #tpu.memory_space<vmem>>, vector<1x8x32xf32>
    %4 = vector.shape_cast %3 : vector<1x8x32xf32> to vector<8x32xf32>
    %5 = arith.addf %2, %4 : vector<8x32xf32>
    %c0_7 = arith.constant 0 : index
    %c0_8 = arith.constant 0 : index
    %6 = vector.load %arg4[%c0_7, %c0_8] : memref<32x96xbf16, #tpu.memory_space<vmem>>, vector<32x96xbf16>
    %7 = arith.truncf %5 : vector<8x32xf32> to vector<8x32xbf16>
    %cst = arith.constant dense<0.000000e+00> : vector<8x96xf32>
    %8 = tpu.matmul %7, %6, %cst {dimension_numbers = #tpu.dot_dimension_numbers<[1], [0], [0], [1], [0, 0, 1, 1], [], []>} : vector<8x32xbf16>, vector<32x96xbf16>, vector<8x96xf32> -> vector<8x96xf32>
    %9 = vector.extract_strided_slice %8 {offsets = [0, 0], sizes = [8, 32], strides = [1, 1]} : vector<8x96xf32> to vector<8x32xf32>
    %10 = vector.extract_strided_slice %0 {offsets = [0, 0], sizes = [1, 32], strides = [1, 1]} : vector<16x32xf32> to vector<1x32xf32>
    %11 = vector.broadcast %10 : vector<1x32xf32> to vector<8x32xf32>
    %12 = arith.addf %9, %11 : vector<8x32xf32>
    %13 = vector.extract_strided_slice %8 {offsets = [0, 32], sizes = [8, 32], strides = [1, 1]} : vector<8x96xf32> to vector<8x32xf32>
    %14 = vector.extract_strided_slice %0 {offsets = [1, 0], sizes = [1, 32], strides = [1, 1]} : vector<16x32xf32> to vector<1x32xf32>
    %15 = vector.broadcast %14 : vector<1x32xf32> to vector<8x32xf32>
    %16 = arith.addf %13, %15 : vector<8x32xf32>
    %17 = vector.extract_strided_slice %8 {offsets = [0, 64], sizes = [8, 32], strides = [1, 1]} : vector<8x96xf32> to vector<8x32xf32>
    %18 = vector.extract_strided_slice %0 {offsets = [2, 0], sizes = [1, 32], strides = [1, 1]} : vector<16x32xf32> to vector<1x32xf32>
    %19 = vector.broadcast %18 : vector<1x32xf32> to vector<8x32xf32>
    %20 = arith.addf %17, %19 : vector<8x32xf32>
    %21 = arith.truncf %12 : vector<8x32xf32> to vector<8x32xbf16>
    %22 = arith.truncf %16 : vector<8x32xf32> to vector<8x32xbf16>
    %23 = arith.truncf %20 : vector<8x32xf32> to vector<8x32xbf16>
    %24 = vector.extract_strided_slice %21 {offsets = [0, 0], sizes = [8, 8], strides = [1, 1]} : vector<8x32xbf16> to vector<8x8xbf16>
    %25 = vector.extract_strided_slice %22 {offsets = [0, 0], sizes = [8, 8], strides = [1, 1]} : vector<8x32xbf16> to vector<8x8xbf16>
    %cst_9 = arith.constant dense<0.000000e+00> : vector<8x8xf32>
    %26 = tpu.matmul %24, %25, %cst_9 {dimension_numbers = #tpu.dot_dimension_numbers<[1], [1], [0], [0], [0, 0, 1, 0], [], []>} : vector<8x8xbf16>, vector<8x8xbf16>, vector<8x8xf32> -> vector<8x8xf32>
    %cst_10 = arith.constant dense<0xFF800000> : vector<8xf32>
    %27 = vector.multi_reduction <maximumf>, %26, %cst_10 [1] : vector<8x8xf32> to vector<8xf32>
    %28 = vector.shape_cast %27 : vector<8xf32> to vector<8x1xf32>
    %29 = vector.broadcast %28 : vector<8x1xf32> to vector<8x8xf32>
    %30 = arith.subf %26, %29 : vector<8x8xf32>
    %31 = math.exp %30 : vector<8x8xf32>
    %cst_11 = arith.constant dense<0.000000e+00> : vector<8xf32>
    %32 = vector.multi_reduction <add>, %31, %cst_11 [1] : vector<8x8xf32> to vector<8xf32>
    %33 = vector.shape_cast %32 : vector<8xf32> to vector<8x1xf32>
    %34 = tpu.reciprocal %33 {approx = true} : vector<8x1xf32> -> vector<8x1xf32>
    %35 = vector.broadcast %34 : vector<8x1xf32> to vector<8x8xf32>
    %36 = arith.mulf %31, %35 : vector<8x8xf32>
    %37 = arith.truncf %36 : vector<8x8xf32> to vector<8x8xbf16>
    %38 = vector.extract_strided_slice %23 {offsets = [0, 0], sizes = [8, 8], strides = [1, 1]} : vector<8x32xbf16> to vector<8x8xbf16>
    %cst_12 = arith.constant dense<0.000000e+00> : vector<8x8xf32>
    %39 = tpu.matmul %37, %38, %cst_12 {dimension_numbers = #tpu.dot_dimension_numbers<[1], [0], [0], [1], [0, 0, 1, 1], [], []>} : vector<8x8xbf16>, vector<8x8xbf16>, vector<8x8xf32> -> vector<8x8xf32>
    %40 = vector.extract_strided_slice %21 {offsets = [0, 8], sizes = [8, 8], strides = [1, 1]} : vector<8x32xbf16> to vector<8x8xbf16>
    %41 = vector.extract_strided_slice %22 {offsets = [0, 8], sizes = [8, 8], strides = [1, 1]} : vector<8x32xbf16> to vector<8x8xbf16>
    %cst_13 = arith.constant dense<0.000000e+00> : vector<8x8xf32>
    %42 = tpu.matmul %40, %41, %cst_13 {dimension_numbers = #tpu.dot_dimension_numbers<[1], [1], [0], [0], [0, 0, 1, 0], [], []>} : vector<8x8xbf16>, vector<8x8xbf16>, vector<8x8xf32> -> vector<8x8xf32>
    %cst_14 = arith.constant dense<0xFF800000> : vector<8xf32>
    %43 = vector.multi_reduction <maximumf>, %42, %cst_14 [1] : vector<8x8xf32> to vector<8xf32>
    %44 = vector.shape_cast %43 : vector<8xf32> to vector<8x1xf32>
    %45 = vector.broadcast %44 : vector<8x1xf32> to vector<8x8xf32>
    %46 = arith.subf %42, %45 : vector<8x8xf32>
    %47 = math.exp %46 : vector<8x8xf32>
    %cst_15 = arith.constant dense<0.000000e+00> : vector<8xf32>
    %48 = vector.multi_reduction <add>, %47, %cst_15 [1] : vector<8x8xf32> to vector<8xf32>
    %49 = vector.shape_cast %48 : vector<8xf32> to vector<8x1xf32>
    %50 = tpu.reciprocal %49 {approx = true} : vector<8x1xf32> -> vector<8x1xf32>
    %51 = vector.broadcast %50 : vector<8x1xf32> to vector<8x8xf32>
    %52 = arith.mulf %47, %51 : vector<8x8xf32>
    %53 = arith.truncf %52 : vector<8x8xf32> to vector<8x8xbf16>
    %54 = vector.extract_strided_slice %23 {offsets = [0, 8], sizes = [8, 8], strides = [1, 1]} : vector<8x32xbf16> to vector<8x8xbf16>
    %cst_16 = arith.constant dense<0.000000e+00> : vector<8x8xf32>
    %55 = tpu.matmul %53, %54, %cst_16 {dimension_numbers = #tpu.dot_dimension_numbers<[1], [0], [0], [1], [0, 0, 1, 1], [], []>} : vector<8x8xbf16>, vector<8x8xbf16>, vector<8x8xf32> -> vector<8x8xf32>
    %56 = vector.extract_strided_slice %21 {offsets = [0, 16], sizes = [8, 8], strides = [1, 1]} : vector<8x32xbf16> to vector<8x8xbf16>
    %57 = vector.extract_strided_slice %22 {offsets = [0, 16], sizes = [8, 8], strides = [1, 1]} : vector<8x32xbf16> to vector<8x8xbf16>
    %cst_17 = arith.constant dense<0.000000e+00> : vector<8x8xf32>
    %58 = tpu.matmul %56, %57, %cst_17 {dimension_numbers = #tpu.dot_dimension_numbers<[1], [1], [0], [0], [0, 0, 1, 0], [], []>} : vector<8x8xbf16>, vector<8x8xbf16>, vector<8x8xf32> -> vector<8x8xf32>
    %cst_18 = arith.constant dense<0xFF800000> : vector<8xf32>
    %59 = vector.multi_reduction <maximumf>, %58, %cst_18 [1] : vector<8x8xf32> to vector<8xf32>
    %60 = vector.shape_cast %59 : vector<8xf32> to vector<8x1xf32>
    %61 = vector.broadcast %60 : vector<8x1xf32> to vector<8x8xf32>
    %62 = arith.subf %58, %61 : vector<8x8xf32>
    %63 = math.exp %62 : vector<8x8xf32>
    %cst_19 = arith.constant dense<0.000000e+00> : vector<8xf32>
    %64 = vector.multi_reduction <add>, %63, %cst_19 [1] : vector<8x8xf32> to vector<8xf32>
    %65 = vector.shape_cast %64 : vector<8xf32> to vector<8x1xf32>
    %66 = tpu.reciprocal %65 {approx = true} : vector<8x1xf32> -> vector<8x1xf32>
    %67 = vector.broadcast %66 : vector<8x1xf32> to vector<8x8xf32>
    %68 = arith.mulf %63, %67 : vector<8x8xf32>
    %69 = arith.truncf %68 : vector<8x8xf32> to vector<8x8xbf16>
    %70 = vector.extract_strided_slice %23 {offsets = [0, 16], sizes = [8, 8], strides = [1, 1]} : vector<8x32xbf16> to vector<8x8xbf16>
    %cst_20 = arith.constant dense<0.000000e+00> : vector<8x8xf32>
    %71 = tpu.matmul %69, %70, %cst_20 {dimension_numbers = #tpu.dot_dimension_numbers<[1], [0], [0], [1], [0, 0, 1, 1], [], []>} : vector<8x8xbf16>, vector<8x8xbf16>, vector<8x8xf32> -> vector<8x8xf32>
    %72 = vector.extract_strided_slice %21 {offsets = [0, 24], sizes = [8, 8], strides = [1, 1]} : vector<8x32xbf16> to vector<8x8xbf16>
    %73 = vector.extract_strided_slice %22 {offsets = [0, 24], sizes = [8, 8], strides = [1, 1]} : vector<8x32xbf16> to vector<8x8xbf16>
    %cst_21 = arith.constant dense<0.000000e+00> : vector<8x8xf32>
    %74 = tpu.matmul %72, %73, %cst_21 {dimension_numbers = #tpu.dot_dimension_numbers<[1], [1], [0], [0], [0, 0, 1, 0], [], []>} : vector<8x8xbf16>, vector<8x8xbf16>, vector<8x8xf32> -> vector<8x8xf32>
    %cst_22 = arith.constant dense<0xFF800000> : vector<8xf32>
    %75 = vector.multi_reduction <maximumf>, %74, %cst_22 [1] : vector<8x8xf32> to vector<8xf32>
    %76 = vector.shape_cast %75 : vector<8xf32> to vector<8x1xf32>
    %77 = vector.broadcast %76 : vector<8x1xf32> to vector<8x8xf32>
    %78 = arith.subf %74, %77 : vector<8x8xf32>
    %79 = math.exp %78 : vector<8x8xf32>
    %cst_23 = arith.constant dense<0.000000e+00> : vector<8xf32>
    %80 = vector.multi_reduction <add>, %79, %cst_23 [1] : vector<8x8xf32> to vector<8xf32>
    %81 = vector.shape_cast %80 : vector<8xf32> to vector<8x1xf32>
    %82 = tpu.reciprocal %81 {approx = true} : vector<8x1xf32> -> vector<8x1xf32>
    %83 = vector.broadcast %82 : vector<8x1xf32> to vector<8x8xf32>
    %84 = arith.mulf %79, %83 : vector<8x8xf32>
    %85 = arith.truncf %84 : vector<8x8xf32> to vector<8x8xbf16>
    %86 = vector.extract_strided_slice %23 {offsets = [0, 24], sizes = [8, 8], strides = [1, 1]} : vector<8x32xbf16> to vector<8x8xbf16>
    %cst_24 = arith.constant dense<0.000000e+00> : vector<8x8xf32>
    %87 = tpu.matmul %85, %86, %cst_24 {dimension_numbers = #tpu.dot_dimension_numbers<[1], [0], [0], [1], [0, 0, 1, 1], [], []>} : vector<8x8xbf16>, vector<8x8xbf16>, vector<8x8xf32> -> vector<8x8xf32>
    %88 = tpu.concatenate %39, %55, %71, %87 in 1 : vector<8x8xf32>, vector<8x8xf32>, vector<8x8xf32>, vector<8x8xf32> -> vector<8x32xf32>
    %c0_25 = arith.constant 0 : index
    %c0_26 = arith.constant 0 : index
    %c0_27 = arith.constant 0 : index
    %89 = vector.load %arg6[%c0_25, %c0_26, %c0_27] : memref<4x32x32xbf16, #tpu.memory_space<vmem>>, vector<1x32x32xbf16>
    %90 = vector.shape_cast %89 : vector<1x32x32xbf16> to vector<32x32xbf16>
    %91 = arith.truncf %88 : vector<8x32xf32> to vector<8x32xbf16>
    %cst_28 = arith.constant dense<0.000000e+00> : vector<8x32xf32>
    %92 = tpu.matmul %91, %90, %cst_28 {dimension_numbers = #tpu.dot_dimension_numbers<[1], [0], [0], [1], [0, 0, 1, 1], [], []>} : vector<8x32xbf16>, vector<32x32xbf16>, vector<8x32xf32> -> vector<8x32xf32>
    %93 = vector.extract_strided_slice %0 {offsets = [3, 0], sizes = [1, 32], strides = [1, 1]} : vector<16x32xf32> to vector<1x32xf32>
    %94 = vector.broadcast %93 : vector<1x32xf32> to vector<8x32xf32>
    %95 = arith.addf %92, %94 : vector<8x32xf32>
    %96 = arith.addf %2, %95 : vector<8x32xf32>
    %97 = vector.extract_strided_slice %0 {offsets = [10, 0], sizes = [1, 32], strides = [1, 1]} : vector<16x32xf32> to vector<1x32xf32>
    %98 = vector.extract_strided_slice %0 {offsets = [11, 0], sizes = [1, 32], strides = [1, 1]} : vector<16x32xf32> to vector<1x32xf32>
    %cst_29 = arith.constant dense<0.000000e+00> : vector<8xf32>
    %99 = vector.multi_reduction <add>, %96, %cst_29 [1] : vector<8x32xf32> to vector<8xf32>
    %100 = vector.shape_cast %99 : vector<8xf32> to vector<8x1xf32>
    %cst_30 = arith.constant 3.200000e+01 : f32
    %101 = vector.broadcast %cst_30 : f32 to vector<8x1xf32>
    %102 = arith.divf %100, %101 : vector<8x1xf32>
    %103 = vector.broadcast %102 : vector<8x1xf32> to vector<8x32xf32>
    %104 = arith.subf %96, %103 : vector<8x32xf32>
    %105 = arith.mulf %104, %104 : vector<8x32xf32>
    %cst_31 = arith.constant dense<0.000000e+00> : vector<8xf32>
    %106 = vector.multi_reduction <add>, %105, %cst_31 [1] : vector<8x32xf32> to vector<8xf32>
    %107 = vector.shape_cast %106 : vector<8xf32> to vector<8x1xf32>
    %cst_32 = arith.constant 3.200000e+01 : f32
    %108 = vector.broadcast %cst_32 : f32 to vector<8x1xf32>
    %109 = arith.divf %107, %108 : vector<8x1xf32>
    %110 = vector.broadcast %102 : vector<8x1xf32> to vector<8x32xf32>
    %111 = arith.subf %96, %110 : vector<8x32xf32>
    %cst_33 = arith.constant 9.99999974E-6 : f32
    %112 = vector.broadcast %cst_33 : f32 to vector<8x1xf32>
    %113 = arith.addf %109, %112 : vector<8x1xf32>
    %114 = math.rsqrt %113 : vector<8x1xf32>
    %115 = vector.broadcast %114 : vector<8x1xf32> to vector<8x32xf32>
    %116 = arith.mulf %111, %115 : vector<8x32xf32>
    %117 = vector.broadcast %97 : vector<1x32xf32> to vector<8x32xf32>
    %118 = arith.mulf %116, %117 : vector<8x32xf32>
    %119 = vector.broadcast %98 : vector<1x32xf32> to vector<8x32xf32>
    %120 = arith.addf %118, %119 : vector<8x32xf32>
    %121 = arith.addf %120, %4 : vector<8x32xf32>
    %c1 = arith.constant 1 : index
    %c0_34 = arith.constant 0 : index
    %c0_35 = arith.constant 0 : index
    %122 = vector.load %arg6[%c1, %c0_34, %c0_35] : memref<4x32x32xbf16, #tpu.memory_space<vmem>>, vector<1x32x32xbf16>
    %123 = vector.shape_cast %122 : vector<1x32x32xbf16> to vector<32x32xbf16>
    %124 = arith.truncf %121 : vector<8x32xf32> to vector<8x32xbf16>
    %cst_36 = arith.constant dense<0.000000e+00> : vector<8x32xf32>
    %125 = tpu.matmul %124, %123, %cst_36 {dimension_numbers = #tpu.dot_dimension_numbers<[1], [0], [0], [1], [0, 0, 1, 1], [], []>} : vector<8x32xbf16>, vector<32x32xbf16>, vector<8x32xf32> -> vector<8x32xf32>
    %126 = vector.extract_strided_slice %0 {offsets = [4, 0], sizes = [1, 32], strides = [1, 1]} : vector<16x32xf32> to vector<1x32xf32>
    %127 = vector.broadcast %126 : vector<1x32xf32> to vector<8x32xf32>
    %128 = arith.addf %125, %127 : vector<8x32xf32>
    %c0_37 = arith.constant 0 : index
    %c0_38 = arith.constant 0 : index
    %c0_39 = arith.constant 0 : index
    %129 = vector.load %arg3[%c0_37, %c0_38, %c0_39] : memref<1x64x32xbf16, #tpu.memory_space<vmem>>, vector<1x64x32xbf16>
    %130 = vector.shape_cast %129 : vector<1x64x32xbf16> to vector<64x32xbf16>
    %c0_40 = arith.constant 0 : index
    %c0_41 = arith.constant 0 : index
    %131 = vector.load %arg5[%c0_40, %c0_41] : memref<32x64xbf16, #tpu.memory_space<vmem>>, vector<32x64xbf16>
    %cst_42 = arith.constant dense<0.000000e+00> : vector<64x64xf32>
    %132 = tpu.matmul %130, %131, %cst_42 {dimension_numbers = #tpu.dot_dimension_numbers<[1], [0], [0], [1], [0, 0, 1, 1], [], []>} : vector<64x32xbf16>, vector<32x64xbf16>, vector<64x64xf32> -> vector<64x64xf32>
    %133 = vector.extract_strided_slice %132 {offsets = [0, 0], sizes = [64, 32], strides = [1, 1]} : vector<64x64xf32> to vector<64x32xf32>
    %134 = vector.extract_strided_slice %0 {offsets = [5, 0], sizes = [1, 32], strides = [1, 1]} : vector<16x32xf32> to vector<1x32xf32>
    %135 = vector.broadcast %134 : vector<1x32xf32> to vector<64x32xf32>
    %136 = arith.addf %133, %135 : vector<64x32xf32>
    %137 = vector.extract_strided_slice %132 {offsets = [0, 32], sizes = [64, 32], strides = [1, 1]} : vector<64x64xf32> to vector<64x32xf32>
    %138 = vector.extract_strided_slice %0 {offsets = [6, 0], sizes = [1, 32], strides = [1, 1]} : vector<16x32xf32> to vector<1x32xf32>
    %139 = vector.broadcast %138 : vector<1x32xf32> to vector<64x32xf32>
    %140 = arith.addf %137, %139 : vector<64x32xf32>
    %c0_43 = arith.constant 0 : index
    %c0_44 = arith.constant 0 : index
    %c0_45 = arith.constant 0 : index
    %141 = vector.load %arg11[%c0_43, %c0_44, %c0_45] : memref<1x1x64xf32, #tpu.memory_space<vmem>>, vector<1x1x64xf32>
    %142 = vector.shape_cast %141 : vector<1x1x64xf32> to vector<1x64xf32>
    %143 = vector.shape_cast %142 : vector<1x64xf32> to vector<1x64xf32>
    %144 = vector.broadcast %143 : vector<1x64xf32> to vector<8x64xf32>
    %145 = arith.truncf %128 : vector<8x32xf32> to vector<8x32xbf16>
    %146 = arith.truncf %136 : vector<64x32xf32> to vector<64x32xbf16>
    %147 = arith.truncf %140 : vector<64x32xf32> to vector<64x32xbf16>
    %148 = vector.extract_strided_slice %145 {offsets = [0, 0], sizes = [8, 8], strides = [1, 1]} : vector<8x32xbf16> to vector<8x8xbf16>
    %149 = vector.extract_strided_slice %146 {offsets = [0, 0], sizes = [64, 8], strides = [1, 1]} : vector<64x32xbf16> to vector<64x8xbf16>
    %cst_46 = arith.constant dense<0.000000e+00> : vector<8x64xf32>
    %150 = tpu.matmul %148, %149, %cst_46 {dimension_numbers = #tpu.dot_dimension_numbers<[1], [1], [0], [0], [0, 0, 1, 0], [], []>} : vector<8x8xbf16>, vector<64x8xbf16>, vector<8x64xf32> -> vector<8x64xf32>
    %151 = arith.addf %150, %144 : vector<8x64xf32>
    %cst_47 = arith.constant dense<0xFF800000> : vector<8xf32>
    %152 = vector.multi_reduction <maximumf>, %151, %cst_47 [1] : vector<8x64xf32> to vector<8xf32>
    %153 = vector.shape_cast %152 : vector<8xf32> to vector<8x1xf32>
    %154 = vector.broadcast %153 : vector<8x1xf32> to vector<8x64xf32>
    %155 = arith.subf %151, %154 : vector<8x64xf32>
    %156 = math.exp %155 : vector<8x64xf32>
    %cst_48 = arith.constant dense<0.000000e+00> : vector<8xf32>
    %157 = vector.multi_reduction <add>, %156, %cst_48 [1] : vector<8x64xf32> to vector<8xf32>
    %158 = vector.shape_cast %157 : vector<8xf32> to vector<8x1xf32>
    %159 = tpu.reciprocal %158 {approx = true} : vector<8x1xf32> -> vector<8x1xf32>
    %160 = vector.broadcast %159 : vector<8x1xf32> to vector<8x64xf32>
    %161 = arith.mulf %156, %160 : vector<8x64xf32>
    %162 = arith.truncf %161 : vector<8x64xf32> to vector<8x64xbf16>
    %163 = vector.extract_strided_slice %147 {offsets = [0, 0], sizes = [64, 8], strides = [1, 1]} : vector<64x32xbf16> to vector<64x8xbf16>
    %cst_49 = arith.constant dense<0.000000e+00> : vector<8x8xf32>
    %164 = tpu.matmul %162, %163, %cst_49 {dimension_numbers = #tpu.dot_dimension_numbers<[1], [0], [0], [1], [0, 0, 1, 1], [], []>} : vector<8x64xbf16>, vector<64x8xbf16>, vector<8x8xf32> -> vector<8x8xf32>
    %165 = vector.extract_strided_slice %145 {offsets = [0, 8], sizes = [8, 8], strides = [1, 1]} : vector<8x32xbf16> to vector<8x8xbf16>
    %166 = vector.extract_strided_slice %146 {offsets = [0, 8], sizes = [64, 8], strides = [1, 1]} : vector<64x32xbf16> to vector<64x8xbf16>
    %cst_50 = arith.constant dense<0.000000e+00> : vector<8x64xf32>
    %167 = tpu.matmul %165, %166, %cst_50 {dimension_numbers = #tpu.dot_dimension_numbers<[1], [1], [0], [0], [0, 0, 1, 0], [], []>} : vector<8x8xbf16>, vector<64x8xbf16>, vector<8x64xf32> -> vector<8x64xf32>
    %168 = arith.addf %167, %144 : vector<8x64xf32>
    %cst_51 = arith.constant dense<0xFF800000> : vector<8xf32>
    %169 = vector.multi_reduction <maximumf>, %168, %cst_51 [1] : vector<8x64xf32> to vector<8xf32>
    %170 = vector.shape_cast %169 : vector<8xf32> to vector<8x1xf32>
    %171 = vector.broadcast %170 : vector<8x1xf32> to vector<8x64xf32>
    %172 = arith.subf %168, %171 : vector<8x64xf32>
    %173 = math.exp %172 : vector<8x64xf32>
    %cst_52 = arith.constant dense<0.000000e+00> : vector<8xf32>
    %174 = vector.multi_reduction <add>, %173, %cst_52 [1] : vector<8x64xf32> to vector<8xf32>
    %175 = vector.shape_cast %174 : vector<8xf32> to vector<8x1xf32>
    %176 = tpu.reciprocal %175 {approx = true} : vector<8x1xf32> -> vector<8x1xf32>
    %177 = vector.broadcast %176 : vector<8x1xf32> to vector<8x64xf32>
    %178 = arith.mulf %173, %177 : vector<8x64xf32>
    %179 = arith.truncf %178 : vector<8x64xf32> to vector<8x64xbf16>
    %180 = vector.extract_strided_slice %147 {offsets = [0, 8], sizes = [64, 8], strides = [1, 1]} : vector<64x32xbf16> to vector<64x8xbf16>
    %cst_53 = arith.constant dense<0.000000e+00> : vector<8x8xf32>
    %181 = tpu.matmul %179, %180, %cst_53 {dimension_numbers = #tpu.dot_dimension_numbers<[1], [0], [0], [1], [0, 0, 1, 1], [], []>} : vector<8x64xbf16>, vector<64x8xbf16>, vector<8x8xf32> -> vector<8x8xf32>
    %182 = vector.extract_strided_slice %145 {offsets = [0, 16], sizes = [8, 8], strides = [1, 1]} : vector<8x32xbf16> to vector<8x8xbf16>
    %183 = vector.extract_strided_slice %146 {offsets = [0, 16], sizes = [64, 8], strides = [1, 1]} : vector<64x32xbf16> to vector<64x8xbf16>
    %cst_54 = arith.constant dense<0.000000e+00> : vector<8x64xf32>
    %184 = tpu.matmul %182, %183, %cst_54 {dimension_numbers = #tpu.dot_dimension_numbers<[1], [1], [0], [0], [0, 0, 1, 0], [], []>} : vector<8x8xbf16>, vector<64x8xbf16>, vector<8x64xf32> -> vector<8x64xf32>
    %185 = arith.addf %184, %144 : vector<8x64xf32>
    %cst_55 = arith.constant dense<0xFF800000> : vector<8xf32>
    %186 = vector.multi_reduction <maximumf>, %185, %cst_55 [1] : vector<8x64xf32> to vector<8xf32>
    %187 = vector.shape_cast %186 : vector<8xf32> to vector<8x1xf32>
    %188 = vector.broadcast %187 : vector<8x1xf32> to vector<8x64xf32>
    %189 = arith.subf %185, %188 : vector<8x64xf32>
    %190 = math.exp %189 : vector<8x64xf32>
    %cst_56 = arith.constant dense<0.000000e+00> : vector<8xf32>
    %191 = vector.multi_reduction <add>, %190, %cst_56 [1] : vector<8x64xf32> to vector<8xf32>
    %192 = vector.shape_cast %191 : vector<8xf32> to vector<8x1xf32>
    %193 = tpu.reciprocal %192 {approx = true} : vector<8x1xf32> -> vector<8x1xf32>
    %194 = vector.broadcast %193 : vector<8x1xf32> to vector<8x64xf32>
    %195 = arith.mulf %190, %194 : vector<8x64xf32>
    %196 = arith.truncf %195 : vector<8x64xf32> to vector<8x64xbf16>
    %197 = vector.extract_strided_slice %147 {offsets = [0, 16], sizes = [64, 8], strides = [1, 1]} : vector<64x32xbf16> to vector<64x8xbf16>
    %cst_57 = arith.constant dense<0.000000e+00> : vector<8x8xf32>
    %198 = tpu.matmul %196, %197, %cst_57 {dimension_numbers = #tpu.dot_dimension_numbers<[1], [0], [0], [1], [0, 0, 1, 1], [], []>} : vector<8x64xbf16>, vector<64x8xbf16>, vector<8x8xf32> -> vector<8x8xf32>
    %199 = vector.extract_strided_slice %145 {offsets = [0, 24], sizes = [8, 8], strides = [1, 1]} : vector<8x32xbf16> to vector<8x8xbf16>
    %200 = vector.extract_strided_slice %146 {offsets = [0, 24], sizes = [64, 8], strides = [1, 1]} : vector<64x32xbf16> to vector<64x8xbf16>
    %cst_58 = arith.constant dense<0.000000e+00> : vector<8x64xf32>
    %201 = tpu.matmul %199, %200, %cst_58 {dimension_numbers = #tpu.dot_dimension_numbers<[1], [1], [0], [0], [0, 0, 1, 0], [], []>} : vector<8x8xbf16>, vector<64x8xbf16>, vector<8x64xf32> -> vector<8x64xf32>
    %202 = arith.addf %201, %144 : vector<8x64xf32>
    %cst_59 = arith.constant dense<0xFF800000> : vector<8xf32>
    %203 = vector.multi_reduction <maximumf>, %202, %cst_59 [1] : vector<8x64xf32> to vector<8xf32>
    %204 = vector.shape_cast %203 : vector<8xf32> to vector<8x1xf32>
    %205 = vector.broadcast %204 : vector<8x1xf32> to vector<8x64xf32>
    %206 = arith.subf %202, %205 : vector<8x64xf32>
    %207 = math.exp %206 : vector<8x64xf32>
    %cst_60 = arith.constant dense<0.000000e+00> : vector<8xf32>
    %208 = vector.multi_reduction <add>, %207, %cst_60 [1] : vector<8x64xf32> to vector<8xf32>
    %209 = vector.shape_cast %208 : vector<8xf32> to vector<8x1xf32>
    %210 = tpu.reciprocal %209 {approx = true} : vector<8x1xf32> -> vector<8x1xf32>
    %211 = vector.broadcast %210 : vector<8x1xf32> to vector<8x64xf32>
    %212 = arith.mulf %207, %211 : vector<8x64xf32>
    %213 = arith.truncf %212 : vector<8x64xf32> to vector<8x64xbf16>
    %214 = vector.extract_strided_slice %147 {offsets = [0, 24], sizes = [64, 8], strides = [1, 1]} : vector<64x32xbf16> to vector<64x8xbf16>
    %cst_61 = arith.constant dense<0.000000e+00> : vector<8x8xf32>
    %215 = tpu.matmul %213, %214, %cst_61 {dimension_numbers = #tpu.dot_dimension_numbers<[1], [0], [0], [1], [0, 0, 1, 1], [], []>} : vector<8x64xbf16>, vector<64x8xbf16>, vector<8x8xf32> -> vector<8x8xf32>
    %216 = tpu.concatenate %164, %181, %198, %215 in 1 : vector<8x8xf32>, vector<8x8xf32>, vector<8x8xf32>, vector<8x8xf32> -> vector<8x32xf32>
    %c2 = arith.constant 2 : index
    %c0_62 = arith.constant 0 : index
    %c0_63 = arith.constant 0 : index
    %217 = vector.load %arg6[%c2, %c0_62, %c0_63] : memref<4x32x32xbf16, #tpu.memory_space<vmem>>, vector<1x32x32xbf16>
    %218 = vector.shape_cast %217 : vector<1x32x32xbf16> to vector<32x32xbf16>
    %219 = arith.truncf %216 : vector<8x32xf32> to vector<8x32xbf16>
    %cst_64 = arith.constant dense<0.000000e+00> : vector<8x32xf32>
    %220 = tpu.matmul %219, %218, %cst_64 {dimension_numbers = #tpu.dot_dimension_numbers<[1], [0], [0], [1], [0, 0, 1, 1], [], []>} : vector<8x32xbf16>, vector<32x32xbf16>, vector<8x32xf32> -> vector<8x32xf32>
    %221 = vector.extract_strided_slice %0 {offsets = [7, 0], sizes = [1, 32], strides = [1, 1]} : vector<16x32xf32> to vector<1x32xf32>
    %222 = vector.broadcast %221 : vector<1x32xf32> to vector<8x32xf32>
    %223 = arith.addf %220, %222 : vector<8x32xf32>
    %224 = arith.addf %120, %223 : vector<8x32xf32>
    %225 = vector.extract_strided_slice %0 {offsets = [12, 0], sizes = [1, 32], strides = [1, 1]} : vector<16x32xf32> to vector<1x32xf32>
    %226 = vector.extract_strided_slice %0 {offsets = [13, 0], sizes = [1, 32], strides = [1, 1]} : vector<16x32xf32> to vector<1x32xf32>
    %cst_65 = arith.constant dense<0.000000e+00> : vector<8xf32>
    %227 = vector.multi_reduction <add>, %224, %cst_65 [1] : vector<8x32xf32> to vector<8xf32>
    %228 = vector.shape_cast %227 : vector<8xf32> to vector<8x1xf32>
    %cst_66 = arith.constant 3.200000e+01 : f32
    %229 = vector.broadcast %cst_66 : f32 to vector<8x1xf32>
    %230 = arith.divf %228, %229 : vector<8x1xf32>
    %231 = vector.broadcast %230 : vector<8x1xf32> to vector<8x32xf32>
    %232 = arith.subf %224, %231 : vector<8x32xf32>
    %233 = arith.mulf %232, %232 : vector<8x32xf32>
    %cst_67 = arith.constant dense<0.000000e+00> : vector<8xf32>
    %234 = vector.multi_reduction <add>, %233, %cst_67 [1] : vector<8x32xf32> to vector<8xf32>
    %235 = vector.shape_cast %234 : vector<8xf32> to vector<8x1xf32>
    %cst_68 = arith.constant 3.200000e+01 : f32
    %236 = vector.broadcast %cst_68 : f32 to vector<8x1xf32>
    %237 = arith.divf %235, %236 : vector<8x1xf32>
    %238 = vector.broadcast %230 : vector<8x1xf32> to vector<8x32xf32>
    %239 = arith.subf %224, %238 : vector<8x32xf32>
    %cst_69 = arith.constant 9.99999974E-6 : f32
    %240 = vector.broadcast %cst_69 : f32 to vector<8x1xf32>
    %241 = arith.addf %237, %240 : vector<8x1xf32>
    %242 = math.rsqrt %241 : vector<8x1xf32>
    %243 = vector.broadcast %242 : vector<8x1xf32> to vector<8x32xf32>
    %244 = arith.mulf %239, %243 : vector<8x32xf32>
    %245 = vector.broadcast %225 : vector<1x32xf32> to vector<8x32xf32>
    %246 = arith.mulf %244, %245 : vector<8x32xf32>
    %247 = vector.broadcast %226 : vector<1x32xf32> to vector<8x32xf32>
    %248 = arith.addf %246, %247 : vector<8x32xf32>
    %c3 = arith.constant 3 : index
    %c0_70 = arith.constant 0 : index
    %c0_71 = arith.constant 0 : index
    %249 = vector.load %arg6[%c3, %c0_70, %c0_71] : memref<4x32x32xbf16, #tpu.memory_space<vmem>>, vector<1x32x32xbf16>
    %250 = vector.shape_cast %249 : vector<1x32x32xbf16> to vector<32x32xbf16>
    %251 = arith.truncf %223 : vector<8x32xf32> to vector<8x32xbf16>
    %cst_72 = arith.constant dense<0.000000e+00> : vector<8x32xf32>
    %252 = tpu.matmul %251, %250, %cst_72 {dimension_numbers = #tpu.dot_dimension_numbers<[1], [0], [0], [1], [0, 0, 1, 1], [], []>} : vector<8x32xbf16>, vector<32x32xbf16>, vector<8x32xf32> -> vector<8x32xf32>
    %253 = vector.extract_strided_slice %0 {offsets = [8, 0], sizes = [1, 32], strides = [1, 1]} : vector<16x32xf32> to vector<1x32xf32>
    %254 = vector.broadcast %253 : vector<1x32xf32> to vector<8x32xf32>
    %255 = arith.addf %252, %254 : vector<8x32xf32>
    %c0_73 = arith.constant 0 : index
    %c0_74 = arith.constant 0 : index
    %256 = vector.load %arg7[%c0_73, %c0_74] : memref<32x64xbf16, #tpu.memory_space<vmem>>, vector<32x64xbf16>
    %257 = arith.truncf %248 : vector<8x32xf32> to vector<8x32xbf16>
    %cst_75 = arith.constant dense<0.000000e+00> : vector<8x64xf32>
    %258 = tpu.matmul %257, %256, %cst_75 {dimension_numbers = #tpu.dot_dimension_numbers<[1], [0], [0], [1], [0, 0, 1, 1], [], []>} : vector<8x32xbf16>, vector<32x64xbf16>, vector<8x64xf32> -> vector<8x64xf32>
    %c0_76 = arith.constant 0 : index
    %c0_77 = arith.constant 0 : index
    %259 = vector.load %arg9[%c0_76, %c0_77] : memref<1x64xf32, #tpu.memory_space<vmem>>, vector<1x64xf32>
    %260 = vector.broadcast %259 : vector<1x64xf32> to vector<8x64xf32>
    %261 = arith.addf %258, %260 : vector<8x64xf32>
    %cst_78 = arith.constant 0.000000e+00 : f32
    %262 = vector.broadcast %cst_78 : f32 to vector<8x64xf32>
    %263 = arith.maximumf %261, %262 : vector<8x64xf32>
    %c0_79 = arith.constant 0 : index
    %c0_80 = arith.constant 0 : index
    %264 = vector.load %arg8[%c0_79, %c0_80] : memref<64x32xbf16, #tpu.memory_space<vmem>>, vector<64x32xbf16>
    %265 = arith.truncf %263 : vector<8x64xf32> to vector<8x64xbf16>
    %cst_81 = arith.constant dense<0.000000e+00> : vector<8x32xf32>
    %266 = tpu.matmul %265, %264, %cst_81 {dimension_numbers = #tpu.dot_dimension_numbers<[1], [0], [0], [1], [0, 0, 1, 1], [], []>} : vector<8x64xbf16>, vector<64x32xbf16>, vector<8x32xf32> -> vector<8x32xf32>
    %267 = vector.extract_strided_slice %0 {offsets = [9, 0], sizes = [1, 32], strides = [1, 1]} : vector<16x32xf32> to vector<1x32xf32>
    %268 = vector.broadcast %267 : vector<1x32xf32> to vector<8x32xf32>
    %269 = arith.addf %266, %268 : vector<8x32xf32>
    %270 = arith.addf %248, %269 : vector<8x32xf32>
    %271 = vector.extract_strided_slice %0 {offsets = [14, 0], sizes = [1, 32], strides = [1, 1]} : vector<16x32xf32> to vector<1x32xf32>
    %272 = vector.extract_strided_slice %0 {offsets = [15, 0], sizes = [1, 32], strides = [1, 1]} : vector<16x32xf32> to vector<1x32xf32>
    %cst_82 = arith.constant dense<0.000000e+00> : vector<8xf32>
    %273 = vector.multi_reduction <add>, %270, %cst_82 [1] : vector<8x32xf32> to vector<8xf32>
    %274 = vector.shape_cast %273 : vector<8xf32> to vector<8x1xf32>
    %cst_83 = arith.constant 3.200000e+01 : f32
    %275 = vector.broadcast %cst_83 : f32 to vector<8x1xf32>
    %276 = arith.divf %274, %275 : vector<8x1xf32>
    %277 = vector.broadcast %276 : vector<8x1xf32> to vector<8x32xf32>
    %278 = arith.subf %270, %277 : vector<8x32xf32>
    %279 = arith.mulf %278, %278 : vector<8x32xf32>
    %cst_84 = arith.constant dense<0.000000e+00> : vector<8xf32>
    %280 = vector.multi_reduction <add>, %279, %cst_84 [1] : vector<8x32xf32> to vector<8xf32>
    %281 = vector.shape_cast %280 : vector<8xf32> to vector<8x1xf32>
    %cst_85 = arith.constant 3.200000e+01 : f32
    %282 = vector.broadcast %cst_85 : f32 to vector<8x1xf32>
    %283 = arith.divf %281, %282 : vector<8x1xf32>
    %284 = vector.broadcast %276 : vector<8x1xf32> to vector<8x32xf32>
    %285 = arith.subf %270, %284 : vector<8x32xf32>
    %cst_86 = arith.constant 9.99999974E-6 : f32
    %286 = vector.broadcast %cst_86 : f32 to vector<8x1xf32>
    %287 = arith.addf %283, %286 : vector<8x1xf32>
    %288 = math.rsqrt %287 : vector<8x1xf32>
    %289 = vector.broadcast %288 : vector<8x1xf32> to vector<8x32xf32>
    %290 = arith.mulf %285, %289 : vector<8x32xf32>
    %291 = vector.broadcast %271 : vector<1x32xf32> to vector<8x32xf32>
    %292 = arith.mulf %290, %291 : vector<8x32xf32>
    %293 = vector.broadcast %272 : vector<1x32xf32> to vector<8x32xf32>
    %294 = arith.addf %292, %293 : vector<8x32xf32>
    %c0_87 = arith.constant 0 : index
    %c0_88 = arith.constant 0 : index
    %c0_89 = arith.constant 0 : index
    %295 = vector.load %arg17[%c0_87, %c0_88, %c0_89] : memref<1x8x32xf32, #tpu.memory_space<vmem>>, vector<1x8x32xf32>
    %296 = vector.shape_cast %295 : vector<1x8x32xf32> to vector<8x32xf32>
    %297 = vector.shape_cast %294 : vector<8x32xf32> to vector<1x8x32xf32>
    tpu.vector_store %arg17[%c0_87, %c0_88, %c0_89], %297 {strides = array<i32>} : memref<1x8x32xf32, #tpu.memory_space<vmem>>, vector<1x8x32xf32>,
    %c0_90 = arith.constant 0 : index
    %c0_91 = arith.constant 0 : index
    %298 = vector.load %arg16[%c0_90, %c0_91] : memref<5x32xf32, #tpu.memory_space<vmem>>, vector<5x32xf32>
    %299 = vector.extract_strided_slice %298 {offsets = [1, 0], sizes = [1, 32], strides = [1, 1]} : vector<5x32xf32> to vector<1x32xf32>
    %300 = vector.extract_strided_slice %298 {offsets = [2, 0], sizes = [1, 32], strides = [1, 1]} : vector<5x32xf32> to vector<1x32xf32>
    %cst_92 = arith.constant dense<0.000000e+00> : vector<8xf32>
    %301 = vector.multi_reduction <add>, %294, %cst_92 [1] : vector<8x32xf32> to vector<8xf32>
    %302 = vector.shape_cast %301 : vector<8xf32> to vector<8x1xf32>
    %cst_93 = arith.constant 3.200000e+01 : f32
    %303 = vector.broadcast %cst_93 : f32 to vector<8x1xf32>
    %304 = arith.divf %302, %303 : vector<8x1xf32>
    %305 = vector.broadcast %304 : vector<8x1xf32> to vector<8x32xf32>
    %306 = arith.subf %294, %305 : vector<8x32xf32>
    %307 = arith.mulf %306, %306 : vector<8x32xf32>
    %cst_94 = arith.constant dense<0.000000e+00> : vector<8xf32>
    %308 = vector.multi_reduction <add>, %307, %cst_94 [1] : vector<8x32xf32> to vector<8xf32>
    %309 = vector.shape_cast %308 : vector<8xf32> to vector<8x1xf32>
    %cst_95 = arith.constant 3.200000e+01 : f32
    %310 = vector.broadcast %cst_95 : f32 to vector<8x1xf32>
    %311 = arith.divf %309, %310 : vector<8x1xf32>
    %312 = vector.broadcast %304 : vector<8x1xf32> to vector<8x32xf32>
    %313 = arith.subf %294, %312 : vector<8x32xf32>
    %cst_96 = arith.constant 9.99999974E-6 : f32
    %314 = vector.broadcast %cst_96 : f32 to vector<8x1xf32>
    %315 = arith.addf %311, %314 : vector<8x1xf32>
    %316 = math.rsqrt %315 : vector<8x1xf32>
    %317 = vector.broadcast %316 : vector<8x1xf32> to vector<8x32xf32>
    %318 = arith.mulf %313, %317 : vector<8x32xf32>
    %319 = vector.broadcast %299 : vector<1x32xf32> to vector<8x32xf32>
    %320 = arith.mulf %318, %319 : vector<8x32xf32>
    %321 = vector.broadcast %300 : vector<1x32xf32> to vector<8x32xf32>
    %322 = arith.addf %320, %321 : vector<8x32xf32>
    %323 = vector.extract_strided_slice %298 {offsets = [1, 0], sizes = [1, 32], strides = [1, 1]} : vector<5x32xf32> to vector<1x32xf32>
    %324 = vector.extract_strided_slice %298 {offsets = [2, 0], sizes = [1, 32], strides = [1, 1]} : vector<5x32xf32> to vector<1x32xf32>
    %cst_97 = arith.constant dense<0.000000e+00> : vector<8xf32>
    %325 = vector.multi_reduction <add>, %255, %cst_97 [1] : vector<8x32xf32> to vector<8xf32>
    %326 = vector.shape_cast %325 : vector<8xf32> to vector<8x1xf32>
    %cst_98 = arith.constant 3.200000e+01 : f32
    %327 = vector.broadcast %cst_98 : f32 to vector<8x1xf32>
    %328 = arith.divf %326, %327 : vector<8x1xf32>
    %329 = vector.broadcast %328 : vector<8x1xf32> to vector<8x32xf32>
    %330 = arith.subf %255, %329 : vector<8x32xf32>
    %331 = arith.mulf %330, %330 : vector<8x32xf32>
    %cst_99 = arith.constant dense<0.000000e+00> : vector<8xf32>
    %332 = vector.multi_reduction <add>, %331, %cst_99 [1] : vector<8x32xf32> to vector<8xf32>
    %333 = vector.shape_cast %332 : vector<8xf32> to vector<8x1xf32>
    %cst_100 = arith.constant 3.200000e+01 : f32
    %334 = vector.broadcast %cst_100 : f32 to vector<8x1xf32>
    %335 = arith.divf %333, %334 : vector<8x1xf32>
    %336 = vector.broadcast %328 : vector<8x1xf32> to vector<8x32xf32>
    %337 = arith.subf %255, %336 : vector<8x32xf32>
    %cst_101 = arith.constant 9.99999974E-6 : f32
    %338 = vector.broadcast %cst_101 : f32 to vector<8x1xf32>
    %339 = arith.addf %335, %338 : vector<8x1xf32>
    %340 = math.rsqrt %339 : vector<8x1xf32>
    %341 = vector.broadcast %340 : vector<8x1xf32> to vector<8x32xf32>
    %342 = arith.mulf %337, %341 : vector<8x32xf32>
    %343 = vector.broadcast %323 : vector<1x32xf32> to vector<8x32xf32>
    %344 = arith.mulf %342, %343 : vector<8x32xf32>
    %345 = vector.broadcast %324 : vector<1x32xf32> to vector<8x32xf32>
    %346 = arith.addf %344, %345 : vector<8x32xf32>
    %c0_102 = arith.constant 0 : index
    %c0_103 = arith.constant 0 : index
    %c0_104 = arith.constant 0 : index
    %347 = vector.load %arg15[%c0_102, %c0_103, %c0_104] : memref<3x32x32xbf16, #tpu.memory_space<vmem>>, vector<1x32x32xbf16>
    %348 = vector.shape_cast %347 : vector<1x32x32xbf16> to vector<32x32xbf16>
    %349 = arith.truncf %346 : vector<8x32xf32> to vector<8x32xbf16>
    %cst_105 = arith.constant dense<0.000000e+00> : vector<8x32xf32>
    %350 = tpu.matmul %349, %348, %cst_105 {dimension_numbers = #tpu.dot_dimension_numbers<[1], [0], [0], [1], [0, 0, 1, 1], [], []>} : vector<8x32xbf16>, vector<32x32xbf16>, vector<8x32xf32> -> vector<8x32xf32>
    %351 = arith.addf %322, %350 : vector<8x32xf32>
    %352 = vector.extract_strided_slice %298 {offsets = [0, 0], sizes = [1, 32], strides = [1, 1]} : vector<5x32xf32> to vector<1x32xf32>
    %353 = vector.broadcast %352 : vector<1x32xf32> to vector<8x32xf32>
    %354 = arith.addf %351, %353 : vector<8x32xf32>
    %c0_106 = arith.constant 0 : index
    %c0_107 = arith.constant 0 : index
    %355 = vector.load %arg13[%c0_106, %c0_107] : memref<32x8xbf16, #tpu.memory_space<vmem>>, vector<32x8xbf16>
    %c0_108 = arith.constant 0 : index
    %c0_109 = arith.constant 0 : index
    %356 = vector.load %arg14[%c0_108, %c0_109] : memref<1x8xf32, #tpu.memory_space<vmem>>, vector<1x8xf32>
    %357 = vector.extract_strided_slice %355 {offsets = [0, 0], sizes = [32, 4], strides = [1, 1]} : vector<32x8xbf16> to vector<32x4xbf16>
    %358 = arith.truncf %354 : vector<8x32xf32> to vector<8x32xbf16>
    %cst_110 = arith.constant dense<0.000000e+00> : vector<8x4xf32>
    %359 = tpu.matmul %358, %357, %cst_110 {dimension_numbers = #tpu.dot_dimension_numbers<[1], [0], [0], [1], [0, 0, 1, 1], [], []>} : vector<8x32xbf16>, vector<32x4xbf16>, vector<8x4xf32> -> vector<8x4xf32>
    %360 = vector.extract_strided_slice %356 {offsets = [0, 0], sizes = [1, 4], strides = [1, 1]} : vector<1x8xf32> to vector<1x4xf32>
    %361 = vector.broadcast %360 : vector<1x4xf32> to vector<8x4xf32>
    %362 = arith.addf %359, %361 : vector<8x4xf32>
    %c1_111 = arith.constant 1 : index
    %c0_112 = arith.constant 0 : index
    %c0_113 = arith.constant 0 : index
    %363 = vector.load %arg15[%c1_111, %c0_112, %c0_113] : memref<3x32x32xbf16, #tpu.memory_space<vmem>>, vector<1x32x32xbf16>
    %364 = vector.shape_cast %363 : vector<1x32x32xbf16> to vector<32x32xbf16>
    %365 = arith.truncf %322 : vector<8x32xf32> to vector<8x32xbf16>
    %cst_114 = arith.constant dense<0.000000e+00> : vector<8x32xf32>
    %366 = tpu.matmul %365, %364, %cst_114 {dimension_numbers = #tpu.dot_dimension_numbers<[1], [0], [0], [1], [0, 0, 1, 1], [], []>} : vector<8x32xbf16>, vector<32x32xbf16>, vector<8x32xf32> -> vector<8x32xf32>
    %367 = vector.extract_strided_slice %298 {offsets = [3, 0], sizes = [1, 32], strides = [1, 1]} : vector<5x32xf32> to vector<1x32xf32>
    %368 = vector.broadcast %367 : vector<1x32xf32> to vector<8x32xf32>
    %369 = arith.addf %366, %368 : vector<8x32xf32>
    %cst_115 = arith.constant 0.000000e+00 : f32
    %370 = vector.broadcast %cst_115 : f32 to vector<8x32xf32>
    %371 = arith.maximumf %369, %370 : vector<8x32xf32>
    %c2_116 = arith.constant 2 : index
    %c0_117 = arith.constant 0 : index
    %c0_118 = arith.constant 0 : index
    %372 = vector.load %arg15[%c2_116, %c0_117, %c0_118] : memref<3x32x32xbf16, #tpu.memory_space<vmem>>, vector<1x32x32xbf16>
    %373 = vector.shape_cast %372 : vector<1x32x32xbf16> to vector<32x32xbf16>
    %374 = arith.truncf %371 : vector<8x32xf32> to vector<8x32xbf16>
    %cst_119 = arith.constant dense<0.000000e+00> : vector<8x32xf32>
    %375 = tpu.matmul %374, %373, %cst_119 {dimension_numbers = #tpu.dot_dimension_numbers<[1], [0], [0], [1], [0, 0, 1, 1], [], []>} : vector<8x32xbf16>, vector<32x32xbf16>, vector<8x32xf32> -> vector<8x32xf32>
    %376 = vector.extract_strided_slice %298 {offsets = [4, 0], sizes = [1, 32], strides = [1, 1]} : vector<5x32xf32> to vector<1x32xf32>
    %377 = vector.broadcast %376 : vector<1x32xf32> to vector<8x32xf32>
    %378 = arith.addf %375, %377 : vector<8x32xf32>
    %cst_120 = arith.constant 0.000000e+00 : f32
    %379 = vector.broadcast %cst_120 : f32 to vector<8x32xf32>
    %380 = arith.maximumf %378, %379 : vector<8x32xf32>
    %381 = vector.extract_strided_slice %355 {offsets = [0, 4], sizes = [32, 4], strides = [1, 1]} : vector<32x8xbf16> to vector<32x4xbf16>
    %382 = arith.truncf %380 : vector<8x32xf32> to vector<8x32xbf16>
    %cst_121 = arith.constant dense<0.000000e+00> : vector<8x4xf32>
    %383 = tpu.matmul %382, %381, %cst_121 {dimension_numbers = #tpu.dot_dimension_numbers<[1], [0], [0], [1], [0, 0, 1, 1], [], []>} : vector<8x32xbf16>, vector<32x4xbf16>, vector<8x4xf32> -> vector<8x4xf32>
    %384 = vector.extract_strided_slice %356 {offsets = [0, 4], sizes = [1, 4], strides = [1, 1]} : vector<1x8xf32> to vector<1x4xf32>
    %385 = vector.broadcast %384 : vector<1x4xf32> to vector<8x4xf32>
    %386 = arith.addf %383, %385 : vector<8x4xf32>
    %c0_122 = arith.constant 0 : index
    %c0_123 = arith.constant 0 : index
    %c0_124 = arith.constant 0 : index
    %387 = vector.load %arg12[%c0_122, %c0_123, %c0_124] : memref<1x8x4xf32, #tpu.memory_space<vmem>>, vector<1x8x4xf32>
    %388 = vector.shape_cast %387 : vector<1x8x4xf32> to vector<8x4xf32>
    %cst_125 = arith.constant 9.99999974E-6 : f32
    %cst_126 = arith.constant 0.999989986 : f32
    %389 = vector.broadcast %cst_125 : f32 to vector<8x4xf32>
    %390 = arith.maximumf %389, %388 : vector<8x4xf32>
    %391 = vector.broadcast %cst_126 : f32 to vector<8x4xf32>
    %392 = arith.minimumf %391, %390 : vector<8x4xf32>
    %393 = math.log %392 : vector<8x4xf32>
    %cst_127 = arith.constant 1.000000e+00 : f32
    %394 = vector.broadcast %cst_127 : f32 to vector<8x4xf32>
    %395 = arith.subf %394, %392 : vector<8x4xf32>
    %396 = math.log %395 : vector<8x4xf32>
    %397 = arith.subf %393, %396 : vector<8x4xf32>
    %398 = arith.addf %386, %397 : vector<8x4xf32>
    %399 = arith.negf %398 : vector<8x4xf32>
    %400 = math.exp %399 : vector<8x4xf32>
    %cst_128 = arith.constant 1.000000e+00 : f32
    %401 = vector.broadcast %cst_128 : f32 to vector<8x4xf32>
    %402 = arith.addf %401, %400 : vector<8x4xf32>
    %403 = arith.divf %401, %402 : vector<8x4xf32>
    %cst_129 = arith.constant 0.000000e+00 : f32
    %404 = vector.broadcast %cst_129 : f32 to vector<8x120xf32>
    %405 = tpu.concatenate %362, %403, %404 in 1 : vector<8x4xf32>, vector<8x4xf32>, vector<8x120xf32> -> vector<8x128xf32>
    %c0_130 = arith.constant 0 : index
    %c0_131 = arith.constant 0 : index
    %c0_132 = arith.constant 0 : index
    %406 = vector.load %arg18[%c0_130, %c0_131, %c0_132] : memref<1x8x128xf32, #tpu.memory_space<vmem>>, vector<1x8x128xf32>
    %407 = vector.shape_cast %406 : vector<1x8x128xf32> to vector<8x128xf32>
    %408 = vector.shape_cast %405 : vector<8x128xf32> to vector<1x8x128xf32>
    tpu.vector_store %arg18[%c0_130, %c0_131, %c0_132], %408 {strides = array<i32>} : memref<1x8x128xf32, #tpu.memory_space<vmem>>, vector<1x8x128xf32>,
    return
  }
  func.func @transform_0(%arg0: i32) -> (i32, i32, i32) {
    %c0_i32 = arith.constant 0 : i32
    %c0_i32_0 = arith.constant 0 : i32
    %c0_i32_1 = arith.constant 0 : i32
    return %arg0, %c0_i32, %c0_i32_0 : i32, i32, i32
  }
  func.func @transform_1(%arg0: i32) -> (i32, i32, i32) {
    %c0_i32 = arith.constant 0 : i32
    %c0_i32_0 = arith.constant 0 : i32
    %c0_i32_1 = arith.constant 0 : i32
    return %arg0, %c0_i32, %c0_i32_0 : i32, i32, i32
  }
  func.func @transform_2(%arg0: i32) -> (i32, i32, i32) {
    %c0_i32 = arith.constant 0 : i32
    %c0_i32_0 = arith.constant 0 : i32
    %c0_i32_1 = arith.constant 0 : i32
    return %arg0, %c0_i32, %c0_i32_0 : i32, i32, i32
  }
  func.func @transform_3(%arg0: i32) -> (i32, i32) {
    %c0_i32 = arith.constant 0 : i32
    %c0_i32_0 = arith.constant 0 : i32
    %c0_i32_1 = arith.constant 0 : i32
    return %c0_i32, %c0_i32_0 : i32, i32
  }
  func.func @transform_4(%arg0: i32) -> (i32, i32) {
    %c0_i32 = arith.constant 0 : i32
    %c0_i32_0 = arith.constant 0 : i32
    %c0_i32_1 = arith.constant 0 : i32
    return %c0_i32, %c0_i32_0 : i32, i32
  }
  func.func @transform_5(%arg0: i32) -> (i32, i32, i32) {
    %c0_i32 = arith.constant 0 : i32
    %c0_i32_0 = arith.constant 0 : i32
    %c0_i32_1 = arith.constant 0 : i32
    %c0_i32_2 = arith.constant 0 : i32
    return %c0_i32, %c0_i32_0, %c0_i32_1 : i32, i32, i32
  }
  func.func @transform_6(%arg0: i32) -> (i32, i32) {
    %c0_i32 = arith.constant 0 : i32
    %c0_i32_0 = arith.constant 0 : i32
    %c0_i32_1 = arith.constant 0 : i32
    return %c0_i32, %c0_i32_0 : i32, i32
  }
  func.func @transform_7(%arg0: i32) -> (i32, i32) {
    %c0_i32 = arith.constant 0 : i32
    %c0_i32_0 = arith.constant 0 : i32
    %c0_i32_1 = arith.constant 0 : i32
    return %c0_i32, %c0_i32_0 : i32, i32
  }
  func.func @transform_8(%arg0: i32) -> (i32, i32) {
    %c0_i32 = arith.constant 0 : i32
    %c0_i32_0 = arith.constant 0 : i32
    %c0_i32_1 = arith.constant 0 : i32
    return %c0_i32, %c0_i32_0 : i32, i32
  }
  func.func @transform_9(%arg0: i32) -> (i32, i32) {
    %c0_i32 = arith.constant 0 : i32
    %c0_i32_0 = arith.constant 0 : i32
    %c0_i32_1 = arith.constant 0 : i32
    return %c0_i32, %c0_i32_0 : i32, i32
  }
  func.func @transform_10(%arg0: i32) -> (i32, i32, i32) {
    %c0_i32 = arith.constant 0 : i32
    %c0_i32_0 = arith.constant 0 : i32
    %c0_i32_1 = arith.constant 0 : i32
    return %arg0, %c0_i32, %c0_i32_0 : i32, i32, i32
  }
  func.func @transform_11(%arg0: i32) -> (i32, i32, i32) {
    %c0_i32 = arith.constant 0 : i32
    %c0_i32_0 = arith.constant 0 : i32
    %c0_i32_1 = arith.constant 0 : i32
    return %arg0, %c0_i32, %c0_i32_0 : i32, i32, i32
  }
  func.func @transform_12(%arg0: i32) -> (i32, i32) {
    %c0_i32 = arith.constant 0 : i32
    %c0_i32_0 = arith.constant 0 : i32
    %c0_i32_1 = arith.constant 0 : i32
    return %c0_i32, %c0_i32_0 : i32, i32
  }
  func.func @transform_13(%arg0: i32) -> (i32, i32) {
    %c0_i32 = arith.constant 0 : i32
    %c0_i32_0 = arith.constant 0 : i32
    %c0_i32_1 = arith.constant 0 : i32
    return %c0_i32, %c0_i32_0 : i32, i32
  }
  func.func @transform_14(%arg0: i32) -> (i32, i32, i32) {
    %c0_i32 = arith.constant 0 : i32
    %c0_i32_0 = arith.constant 0 : i32
    %c0_i32_1 = arith.constant 0 : i32
    %c0_i32_2 = arith.constant 0 : i32
    return %c0_i32, %c0_i32_0, %c0_i32_1 : i32, i32, i32
  }
  func.func @transform_15(%arg0: i32) -> (i32, i32) {
    %c0_i32 = arith.constant 0 : i32
    %c0_i32_0 = arith.constant 0 : i32
    %c0_i32_1 = arith.constant 0 : i32
    return %c0_i32, %c0_i32_0 : i32, i32
  }
  func.func @transform_16(%arg0: i32) -> (i32, i32, i32) {
    %c0_i32 = arith.constant 0 : i32
    %c0_i32_0 = arith.constant 0 : i32
    %c0_i32_1 = arith.constant 0 : i32
    return %arg0, %c0_i32, %c0_i32_0 : i32, i32, i32
  }
  func.func @transform_17(%arg0: i32) -> (i32, i32, i32) {
    %c0_i32 = arith.constant 0 : i32
    %c0_i32_0 = arith.constant 0 : i32
    %c0_i32_1 = arith.constant 0 : i32
    return %arg0, %c0_i32, %c0_i32_0 : i32, i32, i32
  }
}

</mosaic_0001>

<bundles_post_ra>
// kernel: run.3
= control target key start
LH: loop header
LB: loop body
LE: loop exit
PB: predicated region body
PF: predicated region fallthrough
CT: control target
= control target key end

     0   :  { %s3722_s0 = inlined_call_operand.vmem [shape: f32[2,8,32], index: 0, kind: input, shape index: {}]   ;;  %s3723_s1 = inlined_call_operand.hbm [shape: f32[2,8,32], index: 1, kind: input, shape index: {}]   ;;  %s3724_s2 = inlined_call_operand.vmem [shape: bf16[2,64,32], index: 2, kind: input, shape index: {}]   ;;  %s3725_s3 = inlined_call_operand.hbm [shape: bf16[32,96], index: 3, kind: input, shape index: {}]   ;;  %s3726_s4 = inlined_call_operand.hbm [shape: bf16[32,64], index: 4, kind: input, shape index: {}]   ;;  %s3727_s5 = inlined_call_operand.vmem [shape: bf16[4,32,32], index: 5, kind: input, shape index: {}]   ;;  %s3728_s6 = inlined_call_operand.hbm [shape: bf16[32,64], index: 6, kind: input, shape index: {}]   ;;  %s3729_s7 = inlined_call_operand.hbm [shape: bf16[64,32], index: 7, kind: input, shape index: {}]   ;;  %s3730_s8 = inlined_call_operand.vmem [shape: f32[1,64], index: 8, kind: input, shape index: {}]   ;;  %s3731_s9 = inlined_call_operand.hbm [shape: f32[16,32], index: 9, kind: input, shape index: {}]   ;;  %s3732_s10 = inlined_call_operand.vmem [shape: f32[2,1,64], index: 10, kind: input, shape index: {}]   ;;  %s3733_s11 = inlined_call_operand.vmem [shape: f32[2,8,4], index: 11, kind: input, shape index: {}]   ;;  %s3734_s12 = inlined_call_operand.vmem [shape: bf16[32,8], index: 12, kind: input, shape index: {}]   ;;  %s3735_s13 = inlined_call_operand.vmem [shape: f32[1,8], index: 13, kind: input, shape index: {}]   ;;  %s3736_s14 = inlined_call_operand.hbm [shape: bf16[3,32,32], index: 14, kind: input, shape index: {}]   ;;  %s3737_s15 = inlined_call_operand.vmem [shape: f32[5,32], index: 15, kind: input, shape index: {}]   ;;  %s3738_s16 = inlined_call_operand.hbm [shape: f32[2,8,32], index: 16, kind: output, shape index: {0}]   ;;  %s3739_s17 = inlined_call_operand.vmem [shape: f32[2,8,128], index: 17, kind: output, shape index: {1}]  }
   0x1   :  { %3754 = sst [smem:[#allocation20_spill]] %s3722_s0 }
   0x2   :  { %3755 = sst [smem:[#allocation21_spill]] %s3723_s1 }
   0x3   :  { %3756 = sst [smem:[#allocation22_spill]] %s3725_s3 }
   0x4   :  { %3757 = sst [smem:[#allocation23_spill]] %s3726_s4 }
   0x5   :  { %3758 = sst [smem:[#allocation24_spill]] %s3728_s6 }
   0x6   :  { %3759 = sst [smem:[#allocation25_spill]] %s3729_s7 }
   0x7   :  { %3760 = sst [smem:[#allocation26_spill]] %s3731_s9 }
   0x8   :  { %3761 = sst [smem:[#allocation27_spill]] %s3733_s11 }
   0x9   :  { %3762 = sst [smem:[#allocation28_spill]] %s3734_s12 }
   0xa   :  { %3763 = sst [smem:[#allocation29_spill]] %s3735_s13 }
   0xb   :  { %3764 = sst [smem:[#allocation30_spill]] %s3736_s14 }
   0xc   :  { %3765 = sst [smem:[#allocation31_spill]] %s3738_s16 }
   0xd   :  { %3766 = sst [smem:[#allocation32_spill]] %s3739_s17 }
   0xe   :  { %23 = vsyncpa [#allocation3], 0 }
   0xf   :  { %25 = vsyncpa [#allocation3 + $0x1], 0 }
  0x10   :  { %26 = vsyncpa [#allocation6], 0 }
  0x11   :  { %27 = vsyncpa [#allocation9], 0 }
  0x12   :  { %28 = vsyncpa [#allocation12], 0 }
  0x13   :  { %29 = vsyncpa [#allocation4], 0 }
  0x14   :  { %31 = vsyncpa [#allocation4 + $0x1], 0  ;;  %s3153_s24 = smov 0   ;;  %s3155_s25 = smov 0  }
  0x15   :  { %s3157_s26 = smov 0   ;;  %s3159_s27 = smov 0  }
  0x16 LB: > { %s3767_s3 = sld [smem:[#allocation22_spill]]  ;;  %s3177_s30 = sadd.s32 4294967295, %s3033_s27   ;;  %s3033_s27 = sphi %s3159_s27, %s3798_s27   ;;  %s3029_s26 = sphi %s3157_s26, %s3797_s26   ;;  %s3025_s25 = sphi %s3155_s25, %s3796_s25   ;;  %s3021_s24 = sphi %s3153_s24, %s3795_s24  }
  0x17   : > { %p2336_p0 = scmp.ge.s32.totalorder %s3033_s27, 1  ;;  %p84_p1 = scmp.eq.s32.totalorder %s3177_s30, 0 }
  0x18   : > { %p455_p2 = scmp.lt.s32.totalorder %s3033_s27, 3  ;;  %s3035_s19 = smov [#allocation5]  }
  0x19   : > { %s468_s1 = sshll.u32 %s3035_s19, 4  ;;  %s3769_s6 = sld [smem:[#allocation24_spill]]  ;;  %s469_s1 = int_to_ptr.vmem [resolvable:$true] %s468_s1 }
  0x1a   : > { %p3182_p3 = pnand %p2336_p0, %p455_p2  ;;  %s3771_s9 = sld [smem:[#allocation26_spill]] }
  0x1b   : > { %s3037_s16 = smov 64   ;;  %s3038_s11 = smov 4  }
  0x1c   : > { %s466_s0 = sshll.u32 %s3767_s3, 4  ;;  %p2588_p4 = pneg %p3182_p3  ;;  %s467_s0 = int_to_ptr.hbm [resolvable:$true] %s466_s0 }
  0x1d   : > { %s3036_s3 = smov [#allocation8]   ;;  %s3039_s20 = smov [#allocation11]  }
  0x1e   : > { %p3194_p6 = pnand %p2588_p4, %p84_p1  ;;  %s499_s17 = sshll.u32 %s3036_s3, 4  ;;  %s500_s17 = int_to_ptr.vmem [resolvable:$true] %s499_s17 }
  0x1f   : > { %s497_s22 = sshll.u32 %s3769_s6, 4  ;;  %s530_s21 = sshll.u32 %s3039_s20, 4  ;;  %s498_s22 = int_to_ptr.hbm [resolvable:$true] %s497_s22  ;;  %s531_s21 = int_to_ptr.vmem [resolvable:$true] %s530_s21 }
  0x20   : > { %s528_s19 = sshll.u32 %s3771_s9, 4  ;;  %s3772_s4 = sld [smem:[#allocation23_spill]]  ;;  %s529_s19 = int_to_ptr.hbm [resolvable:$true] %s528_s19 }
  0x21   : > { %2591 = dma.hbm_to_vmem [thread:$0]  (!%p3194_p6), %s467_s0, 256, %s469_s1, [#allocation6], %s3037_s16, %s3037_s16, %s3038_s11  }
  0x22   : > { %2597 = dma.hbm_to_vmem [thread:$0]  (!%p3194_p6), %s498_s22, 256, %s500_s17, [#allocation9], %s3037_s16, %s3037_s16, %s3038_s11  }
  0x23   : > { %s3040_s6 = smov 128   ;;  %s3041_s9 = smov 8  }
  0x24   : > { %2603 = dma.hbm_to_vmem [thread:$0]  (!%p3194_p6), %s529_s19, 256, %s531_s21, [#allocation12], %s3040_s6, %s3040_s6, %s3041_s9  }
  0x25   : > { %s3042_s0 = smov [#allocation7]   ;;  %s3773_s7 = sld [smem:[#allocation25_spill]] }
  0x26   : > { %s480_s29 = sshll.u32 %s3772_s4, 4  ;;  %s482_s1 = sshll.u32 %s3042_s0, 4  ;;  %s481_s29 = int_to_ptr.hbm [resolvable:$true] %s480_s29  ;;  %s483_s1 = int_to_ptr.vmem [resolvable:$true] %s482_s1 }
  0x27   : > { %2594 = dma.hbm_to_vmem [thread:$0]  (!%p3194_p6), %s481_s29, 256, %s483_s1, [#allocation6], %s3037_s16, %s3037_s16, %s3038_s11  }
  0x28   : > { %s3774_s14 = sld [smem:[#allocation30_spill]]  ;;  %s3043_s19 = smov [#allocation10]  }
  0x29   : > { %s513_s12 = sshll.u32 %s3043_s19, 4  ;;  %s3044_s13 = smov [#allocation13]   ;;  %s514_s12 = int_to_ptr.vmem [resolvable:$true] %s513_s12 }
  0x2a   : > { %s550_s20 = sshll.u32 %s3044_s13, 4  ;;  %s2335_s21 = sadd.s32 4294967294, %s3033_s27   ;;  %s551_s20 = int_to_ptr.vmem [resolvable:$true] %s550_s20 }
  0x2b   : > { %s511_s17 = sshll.u32 %s3773_s7, 4  ;;  %s3239_s28 = sadd.s32 1, %s3033_s27   ;;  %s512_s17 = int_to_ptr.hbm [resolvable:$true] %s511_s17 }
  0x2c   : > { %2600 = dma.hbm_to_vmem [thread:$0]  (!%p3194_p6), %s512_s17, 512, %s514_s12, [#allocation9], %s3037_s16, %s3037_s16, %s3038_s11  }
  0x2d   : > { %s67_s3 = ssub.s32 %s3033_s27, %s3239_s28  ;;  %s70_s29 = sadd.s32 1, %s3029_s26 }
  0x2e   : > { %s548_s22 = sshll.u32 %s3774_s14, 4  ;;  %p68_p7 = scmp.eq.s32.totalorder %s67_s3, 0  ;;  %s549_s22 = int_to_ptr.hbm [resolvable:$true] %s548_s22 }
  0x2f   : > { %2606 = dma.hbm_to_vmem [thread:$0]  (!%p3194_p6), %s549_s22, 768, %s551_s20, [#allocation12], %s3037_s16, %s3037_s16, %s3038_s11  }
  0x30   : > { %p77_p8 = scmp.ne.s32.totalorder %s3029_s26, %s3025_s25  ;;  %p78_p9 = scmp.eq.s32.totalorder %s3033_s27, 0 }
  0x31   : > { %p83_p10 = scmp.ne.s32.totalorder %s3025_s25, %s3021_s24  ;;  %p416_p13 = scmp.eq.s32.totalorder %s3177_s30, 1 }
  0x32   : > { %s3250_s0 = scalar_select %p68_p7, %s3029_s26, %s70_s29  }
  0x33   : > { %p3252_p11 = por %p78_p9, %p77_p8  ;;  %p3258_p12 = por %p84_p1, %p83_p10 }
  0x34   : > { %p422_p0 = scmp.eq.s32.totalorder %s2335_s21, 1  ;;  %p2621_p2 = scmp.lt.s32.totalorder %s3033_s27, 2 }
  0x35   : > { %s574_s16 = sand.u32 1, %s3029_s26   ;;  %p3265_p4 = por %p416_p13, %p77_p8 }
  0x36   : > { %p3269_p6 = por %p422_p0, %p83_p10  ;;  %s2344_s6 = sshll.u32 %s574_s16, 3 }
  0x37   : > { %s2345_s9 = sshll.u32 %s3033_s27, 3  ;;  %s3779_s12 = sld [smem:[#allocation21_spill]] }
  0x38   : > { %s578_s20 = scalar_lea.vmem [#allocation2], %s2344_s6  ;;  %p3279_p7 = pnand %p2621_p2, %p3252_p11 }
  0x39   : > { %s586_s3 = sshll.u32 %s578_s20, 4  ;;  %s575_s4 = scalar_lea.sflag [#allocation3], %s574_s16  ;;  %s587_s3 = int_to_ptr.vmem [resolvable:$true] %s586_s3 }
  0x3a   : > { %p2929_p9 = pneg %p3279_p7 }
  0x3d   : > { %s582_s13 = scalar_lea.hbm %s3779_s12, %s2345_s9  ;;  %s2932_s22 = scalar_lea.hbm %s3779_s12, 16 }
  0x3e   : > { %s584_s29 = sshll.u32 %s582_s13, 4  ;;  %s585_s29 = int_to_ptr.hbm [resolvable:$true] %s584_s29 }
  0x3f   : > { %s2925_s7 = sshra.s32 %s585_s29, 4  ;;  %s2926_s7 = int_to_ptr.hbm [resolvable:$true] %s2925_s7 }
  0x40   : > { %s2927_s14 = scalar_lea.hbm %s2926_s7, 8  ;;  %p2933_p11 = scmp.lt.s32.totalorder %s2926_s7, %s3779_s12 }
  0x41   : > { %p2928_p8 = scmp.ne.s32.totalorder %s2926_s7, %s2927_s14  ;;  %p2934_p0 = scmp.lt.s32.totalorder %s2932_s22, %s2927_s14 }
  0x43   : > { %p2930_p10 = pnand %p2929_p9, %p2928_p8  ;;  %p2935_p2 = por %p2934_p0, %p2933_p11 }
  0x45   : > { %p2931_p13 = pneg %p2930_p10 }
  0x47   : > { %p2936_p5 = pnand %p2935_p2, %p2931_p13 }
  0x49   : > { %2939 = shalt.err (!%p2936_p5)
}
  0x4a   : > { %2610 = dma.hbm_to_vmem [thread:$0]  (!%p3279_p7), %s585_s29, 128, %s587_s3, %s575_s4  }
  0x4b   : > { %616 = sbr.rel (%p3182_p3) target bundleno = 4053 (0xfd5), region = 84  ;;  %s3296_s16 = sand.u32 (!%p3182_p3), 1, %s3025_s25  }
  0x4c   : > { %s3743_s13 = sshll.u32 (!%p3182_p3), %s3296_s16, 3  ;;  %s619_s20 = scalar_lea.sflag (!%p3182_p3), [#allocation3], %s3296_s16 }
  0x4d   : > { %s622_s7 = scalar_lea.vmem (!%p3182_p3), [#allocation2], %s3743_s13 }
  0x50   : > { %3000 = dma.done.wait (%p3258_p12), %s619_s20, 128  }
  0x51   : > { %3002 = vsyncadd (%p3258_p12), %s619_s20, 4294967168 }
  0x52   : > { %3004 = dma.done.wait (%p84_p1), [#allocation6], 512  }
  0x53   : > { %3006 = vsyncadd (%p84_p1), [#allocation6], 4294966784 }
  0x54   : > { %3008 = dma.done.wait (%p84_p1), [#allocation9], 768  }
  0x55   : > { %3010 = vsyncadd (%p84_p1), [#allocation9], 4294966528 }
  0x56   : > { %3012 = dma.done.wait (%p84_p1), [#allocation12], 1024  }
  0x57   : > { %3014 = vsyncadd (%p84_p1), [#allocation12], 4294966272  ;;  %p724_p3 = scmp.lt.s32.totalorder %s3177_s30, 1  ;;  %s3781_s3 = sld [smem:[#allocation20_spill]]  ;;  %v2531_v0 = vld [vmem:[#allocation5 + $0x8] sm:$0xff]  ;;  %v3331_v2 = vld [vmem:[%s622_s7] sm:$0xff] }
  0x58   : > { %v3333_v3 = vld [vmem:[#allocation11] sm:$0xff]  ;;  %777 = vmatpush.bf16.msra.mxu0 %v2531_v0  ;;  %v2530_v4 = vld [vmem:[#allocation5] sm:$0xff]  ;;  %s3045_s21 = smov 32   ;;  %vm767_vm0 = vcmask 261120   ;;  %s3744_s6 = smov 72   ;;  %vm806_vm1 = vcmask 64512  }
  0x59   : > { %s3320_s4 = scalar_select %p724_p3, %s3177_s30, 1  ;;  %v786_v6 = vperm.slane %v3333_v3, 1  ;;  %v784_v9 = vperm.slane %v3333_v3, 0  ;;  %v792_v20 = vperm.slane %v3333_v3, 2  ;;  %vm846_vm2 = vcmask 1043456  }
  0x5a   : > { %s3749_s9 = smov 88   ;;  %s3752_s22 = smov 96   ;;  %vm1047_vm3 = vcmask 130048   ;;  %vm1049_vm4 = vcmask 195584   ;;  %vm1331_vm9 = vcmask 523264  }
  0x5b   : > { %s3323_s14 = sshll.u32 %s3320_s4, 3  ;;  %788 = vrot.lane.b32.xlu0 %v786_v6, %s3045_s21  ;;  %s3049_s19 = smov 104  }
  0x5c   : > { %778 = vmatpush.bf16.msra.mxu0 %v2530_v4  ;;  %s3050_s23 = smov 120   ;;  %s3746_s20 = smov 80  }
  0x5d   : > { %s727_s29 = scalar_lea.vmem %s3781_s3, %s3323_s14  ;;  %s3052_s7 = smov 112  }
  0x5e   : > { %v3329_v1 = vld [vmem:[%s727_s29] sm:$0xff]  ;;  %s3053_s18 = smov 64   ;;  %s3054_s11 = smov 40  }
  0x5f   : > { %v749_v5 = vadd.f32 %v3331_v2, %v3329_v1  ;;  %s3055_s3 = smov 56   ;;  %s3056_s29 = smov 48  }
  0x60   : > { %s735_s13 = scalar_lea.vmem %s3732_s10, %s3320_s4 }
  0x61   : > { %v754_v7 = vpack.c.bf16 %v749_v5, %v749_v5 }
  0x63   : > { %2368 = vmatmul.msk.bf16.vlgmr.msra.gmra.mxu0 %vm767_vm0, %v754_v7 }
  0xcd   : > { %v789_v8 = vpop.permute.xlu0 %788 }
  0xe0   : > { %v780_v10 = vpop.f32.mrf.mxu0 }
  0xe1   : > { %v791_v11 = vadd.f32 %v789_v8, %v780_v10  ;;  %v785_v12 = vadd.f32 %v784_v9, %v780_v10 }
  0xe3   : > { %v799_v13 = vpack.c.bf16 %v791_v11, %v791_v11  ;;  %v798_v15 = vpack.c.bf16 %v785_v12, %v785_v12 }
  0xe5   : > { %v802_v14 = vunpack.c.l.b16 %v799_v13  ;;  %v864_v18 = vunpack.c.l.b16 %v798_v15 }
  0xe7   : > { %v803_v16 = vpack.c.b16 %v802_v14, %v802_v14  ;;  %v865_v19 = vpack.c.b16 %v864_v18, %v864_v18 }
  0xe8   : > { %v782_v17 = vpop.f32.mrf.mxu0 }
  0xe9   : > { %980 = vrot.lane.b32.xlu2 %v803_v16, %s3744_s6  ;;  %868 = vrot.lane.b32.xlu1 %v803_v16, %s3749_s9  ;;  %s3787_s6 = smov 16   ;;  %s2526_s9 = sshll.u32 %s3177_s30, 3 }
  0xea   : > { %804 = vrot.lane.b32.xlu0 %v803_v16, %s3752_s22 }
  0xf1   : > { %978 = vrot.lane.b32.xlu2 %v865_v19, %s3049_s19  ;;  %866 = vrot.lane.b32.xlu1 %v865_v19, %s3050_s23 }
  0xf2   : > { %924 = vrot.lane.b32.xlu0 %v803_v16, %s3746_s20  ;;  %s3783_s20 = smov 88  }
  0xf9   : > { %922 = vrot.lane.b32.xlu1 %v865_v19, %s3052_s7 }
  0xfa   : > { %794 = vrot.lane.b32.xlu0 %v792_v20, %s3053_s18 }
 0x143   : > { %v981_v21 = vpop.permute.xlu2 %980 }
 0x144   : > { %v986_v26 = vsel %vm806_vm1, %v981_v21, 0 }
 0x14b   : > { %v979_v31 = vpop.permute.xlu2 %978 }
 0x15b   : > { %v869_v22 = vpop.permute.xlu1 %868 }
 0x15c   : > { %v805_v23 = vpop.permute.xlu0 %804  ;;  %v874_v24 = vsel %vm806_vm1, %v869_v22, 0 }
 0x15d   : > { %v811_v25 = vsel %vm806_vm1, %v805_v23, 0  ;;  %883 = vmatpush.bf16.xpose.msra.mxu3 %v874_v24 }
 0x15e   : > { %820 = vmatpush.bf16.xpose.msra.mxu1 %v811_v25 }
 0x163   : > { %v867_v27 = vpop.permute.xlu1 %866 }
 0x164   : > { %v925_v28 = vpop.permute.xlu0 %924  ;;  %2371 = vmatmul.msk.bf16.vlgmr.msra.gmra.mxu3 %vm806_vm1, %v867_v27 }
 0x165   : > { %995 = vmatpush.bf16.xpose.msrb.mxu3 %v986_v26  ;;  %2369 = vmatmul.msk.bf16.vlgmr.msra.gmra.mxu1 %vm806_vm1, %v798_v15  ;;  %v930_v29 = vsel %vm806_vm1, %v925_v28, 0 }
 0x166   : > { %939 = vmatpush.bf16.xpose.msrb.mxu0 %v930_v29 }
 0x16b   : > { %v923_v30 = vpop.permute.xlu1 %922 }
 0x16c   : > { %v795_v40 = vpop.permute.xlu0 %794 }
 0x16d   : > { %2373 = vmatmul.msk.bf16.vlgmr.msrb.gmra.mxu0 %vm806_vm1, %v923_v30  ;;  %v797_v42 = vadd.f32 %v795_v40, %v780_v10  ;;  %v2533_v40 = vld [vmem:[%s3727_s5 + $0x8] sm:$0xff] }
 0x16e   : > { %1078 = vmatpush.bf16.msra.mxu0 %v2533_v40  ;;  %v2535_v40 = vld [vmem:[%s3727_s5 + $0x18] sm:$0xff] }
 0x16f   : > { %v800_v44 = vpack.c.bf16 %v797_v42, %v797_v42  ;;  %v2541_v42 = vld [vmem:[#allocation7 + $0x8] sm:$0xff] }
 0x170   : > { %1217 = vmatpush.bf16.msra.mxu3 %v2541_v42 }
 0x171   : > { %v839_v46 = vunpack.c.l.b16 %v800_v44 }
 0x173   : > { %v840_v48 = vpack.c.b16 %v839_v46, %v839_v46 }
 0x174   : > { %2375 = vmatmul.msk.bf16.vlgmr.msrb.gmra.mxu3 %vm806_vm1, %v979_v31 }
 0x1e2   : > { %v822_v32 = vpop.f32.mrf.mxu1 }
 0x1e3   : > { %v826_v33 = vsel %vm806_vm1, %v822_v32, -inf }
 0x1e4   : > { %827 = vmax.xlane.f32.xlu2 %v826_v33 }
 0x1e7   : > { %v885_v34 = vpop.f32.mrf.mxu3 }
 0x1e8   : > { %v889_v35 = vsel %vm806_vm1, %v885_v34, -inf }
 0x1e9   : > { %890 = vmax.xlane.f32.xlu1 %v889_v35 }
 0x1ea   : > { %v824_v36 = vpop.f32.mrf.mxu1  ;;  %v941_v37 = vpop.f32.mrf.mxu0 }
 0x1eb   : > { %v945_v38 = vsel %vm806_vm1, %v941_v37, -inf }
 0x1ec   : > { %946 = vmax.xlane.f32.xlu2 %v945_v38 }
 0x1ef   : > { %v887_v39 = vpop.f32.mrf.mxu3 }
 0x1f2   : > { %v943_v41 = vpop.f32.mrf.mxu0 }
 0x1f3   : > { %v2532_v41 = vld [vmem:[%s3727_s5] sm:$0xff] }
 0x1f4   : > { %1079 = vmatpush.bf16.msra.mxu0 %v2532_v41  ;;  %v2534_v41 = vld [vmem:[%s3727_s5 + $0x10] sm:$0xff] }
 0x1f7   : > { %v997_v43 = vpop.f32.mrf.mxu3 }
 0x1f8   : > { %v1001_v45 = vsel %vm806_vm1, %v997_v43, -inf }
 0x1f9   : > { %1002 = vmax.xlane.f32.xlu0 %v1001_v45 }
 0x1ff   : > { %v999_v47 = vpop.f32.mrf.mxu3 }
 0x202   : > { %841 = vrot.lane.b32.xlu1 %v840_v48, %s3053_s18  ;;  %s3748_s18 = smov 8  }
 0x20a   : > { %1013 = vrot.lane.b32.xlu1 %v840_v48, %s3054_s11  ;;  %s3751_s11 = smov 16  }
 0x20d   : > { %901 = vrot.lane.b32.xlu0 %v840_v48, %s3055_s3  ;;  %s3059_s3 = smov 24  }
 0x215   : > { %957 = vrot.lane.b32.xlu0 %v840_v48, %s3056_s29 }
 0x257   : > { %v828_v49 = vpop.xlane.xlu2 %827 }
 0x258   : > { %v829_v50 = vsub.f32 %v822_v32, %v828_v49 }
 0x25a   : > { %v830_v51 = vmul.f32 1.442695, %v829_v50 }
 0x25c   : > { %2692 = vpow2.f32 %v830_v51  ;;  %v891_v52 = vpop.xlane.xlu1 %890 }
 0x25d   : > { %v892_v53 = vsub.f32 %v885_v34, %v891_v52 }
 0x25f   : > { %v893_v54 = vmul.f32 1.442695, %v892_v53  ;;  %v947_v59 = vpop.xlane.xlu2 %946 }
 0x260   : > { %v948_v62 = vsub.f32 %v941_v37, %v947_v59 }
 0x261   : > { %2694 = vpow2.f32 %v893_v54  ;;  %v1056_v54 = vperm.slane %v3333_v3, 3 }
 0x262   : > { %v2693_v55 = vpop.eup %2692  ;;  %v949_v0 = vmul.f32 1.442695, %v948_v62  ;;  %v3060_v62 = vmov 32.0  }
 0x263   : > { %v832_v56 = vsel %vm806_vm1, %v2693_v55, 0.0 }
 0x264   : > { %833 = vadd.xlane.f32.xlu2 %v832_v56 }
 0x267   : > { %v2695_v57 = vpop.eup %2694 }
 0x268   : > { %v895_v58 = vsel %vm806_vm1, %v2695_v57, 0.0 }
 0x26c   : > { %896 = vadd.xlane.f32.xlu2 %v895_v58  ;;  %v1003_v60 = vpop.xlane.xlu0 %1002 }
 0x26d   : > { %v1004_v61 = vsub.f32 %v997_v43, %v1003_v60  ;;  %v2540_v43 = vld [vmem:[#allocation7] sm:$0xff] }
 0x26e   : > { %1218 = vmatpush.bf16.msra.mxu3 %v2540_v43 }
 0x26f   : > { %v1005_v63 = vmul.f32 1.442695, %v1004_v61 }
 0x271   : > { %2696 = vpow2.f32 %v1005_v63 }
 0x272   : > { %2698 = vpow2.f32 %v949_v0 }
 0x274   : > { %v842_v4 = vpop.permute.xlu1 %841 }
 0x275   : > { %v848_v5 = vsel %vm846_vm2, %v842_v4, 0 }
 0x276   : > { %857 = vmatpush.bf16.msra.mxu2 %v848_v5 }
 0x277   : > { %v2697_v6 = vpop.eup %2696 }
 0x278   : > { %v1007_v7 = vsel %vm806_vm1, %v2697_v6, 0.0  ;;  %v2699_v8 = vpop.eup %2698 }
 0x279   : > { %1008 = vadd.xlane.f32.xlu2 %v1007_v7  ;;  %v951_v11 = vsel %vm806_vm1, %v2699_v8, 0.0 }
 0x27c   : > { %v1014_v17 = vpop.permute.xlu1 %1013 }
 0x27d   : > { %v1019_v20 = vsel %vm846_vm2, %v1014_v17, 0 }
 0x27f   : > { %v902_v9 = vpop.permute.xlu0 %901 }
 0x280   : > { %v907_v10 = vsel %vm846_vm2, %v902_v9, 0  ;;  %v1240_v9 = vperm.slane %v3333_v3, 5 }
 0x281   : > { %916 = vmatpush.bf16.msrb.mxu2 %v907_v10  ;;  %952 = vadd.xlane.f32.xlu2 %v951_v11 }
 0x287   : > { %v958_v12 = vpop.permute.xlu0 %957 }
 0x288   : > { %v963_v13 = vsel %vm846_vm2, %v958_v12, 0 }
 0x289   : > { %972 = vmatpush.bf16.msrb.mxu1 %v963_v13 }
 0x28d   : > { %1148 = vmatpush.bf16.msra.mxu1 %v2535_v40 }
 0x291   : > { %1149 = vmatpush.bf16.msra.mxu1 %v2534_v41 }
 0x2d7   : > { %v834_v14 = vpop.xlane.xlu2 %833 }
 0x2d8   : > { %2700 = vrcp.f32 %v834_v14 }
 0x2de   : > { %v2701_v15 = vpop.eup %2700 }
 0x2df   : > { %v836_v16 = vmul.f32 %v2701_v15, %v2693_v55  ;;  %v897_v18 = vpop.xlane.xlu2 %896 }
 0x2e0   : > { %2702 = vrcp.f32 %v897_v18 }
 0x2e1   : > { %v837_v19 = vpack.c.bf16 %v836_v16, %v836_v16 }
 0x2e3   : > { %2370 = vmatmul.msk.bf16.vlgmr.msra.gmra.mxu2 %vm806_vm1, %v837_v19 }
 0x2e4   : > { %1028 = vmatpush.bf16.msra.mxu2 %v1019_v20 }
 0x2e6   : > { %v2703_v21 = vpop.eup %2702 }
 0x2e7   : > { %v899_v23 = vmul.f32 %v2703_v21, %v2695_v57 }
 0x2e9   : > { %v900_v24 = vpack.c.bf16 %v899_v23, %v899_v23 }
 0x2ec   : > { %v1009_v22 = vpop.xlane.xlu2 %1008 }
 0x2ed   : > { %2704 = vrcp.f32 %v1009_v22 }
 0x2f3   : > { %2372 = vmatmul.msk.bf16.vlgmr.msrb.gmra.mxu2 %vm806_vm1, %v900_v24  ;;  %v2705_v26 = vpop.eup %2704 }
 0x2f4   : > { %v953_v25 = vpop.xlane.xlu2 %952  ;;  %v1011_v29 = vmul.f32 %v2705_v26, %v2697_v6 }
 0x2f5   : > { %2706 = vrcp.f32 %v953_v25 }
 0x2f6   : > { %v1012_v31 = vpack.c.bf16 %v1011_v29, %v1011_v29  ;;  %2708 = vrcp.f32 %v3060_v62 }
 0x2fb   : > { %v2707_v27 = vpop.eup %2706 }
 0x2fc   : > { %v955_v28 = vmul.f32 %v2707_v27, %v2699_v8  ;;  %v2709_v0 = vpop.eup %2708 }
 0x2fd   : > { %v1090_v5 = vmul.f32 32.0, %v2709_v0  ;;  %vm1094_vm5 = vweird.f32 %v2709_v0 }
 0x2fe   : > { %v956_v30 = vpack.c.bf16 %v955_v28, %v955_v28 }
 0x2ff   : > { %v1091_v6 = vsub.f32 1.0, %v1090_v5 }
 0x300   : > { %2374 = vmatmul.msk.bf16.vlgmr.msrb.gmra.mxu1 %vm806_vm1, %v956_v30 }
 0x303   : > { %2376 = vmatmul.msk.bf16.vlgmr.msra.gmra.mxu2 %vm806_vm1, %v1012_v31 }
 0x366   : > { %v859_v32 = vpop.f32.mrf.mxu2 }
 0x36e   : > { %v861_v33 = vpop.f32.mrf.mxu2 }
 0x376   : > { %v918_v34 = vpop.f32.mrf.mxu2 }
 0x377   : > { %1035 = vrot.lane.b32.xlu2 %v918_v34, %s3748_s18  ;;  %s2529_s18 = sshll.u32 %s3320_s4, 5  ;;  %s3785_s4 = smov 72  }
 0x378   : > { %s3388_s22 = scalar_lea.vmem %s3724_s2, %s2529_s18  ;;  %s3784_s18 = smov 80  }
 0x379   : > { %v2536_v44 = vld [vmem:[%s3388_s22] sm:$0xff]  ;;  %v2537_v52 = vld [vmem:[%s3388_s22 + $0x8] sm:$0xff]  ;;  %v2538_v53 = vld [vmem:[%s3388_s22 + $0x10] sm:$0xff] }
 0x37a   : > { %2423 = vmatmul.msk.bf16.vlgmr.msra.gmra.mxu3 %vm767_vm0, %v2536_v44  ;;  %v2539_v63 = vld [vmem:[%s3388_s22 + $0x18] sm:$0xff] }
 0x37d   : > { %v974_v35 = vpop.f32.mrf.mxu1 }
 0x37e   : > { %v920_v36 = vpop.f32.mrf.mxu2  ;;  %1039 = vrot.lane.b32.xlu1 %v974_v35, %s3751_s11  ;;  %s3061_s11 = smov 124  }
 0x37f   : > { %v1249_v36 = vperm.slane %v3333_v3, 6 }
 0x385   : > { %v976_v37 = vpop.f32.mrf.mxu1 }
 0x386   : > { %v1030_v38 = vpop.f32.mrf.mxu2 }
 0x387   : > { %1043 = vrot.lane.b32.xlu0 %v1030_v38, %s3059_s3 }
 0x38a   : > { %2424 = vmatmul.msk.bf16.gmra.mxu3 %vm767_vm0, %v2537_v52 }
 0x38e   : > { %v1032_v39 = vpop.f32.mrf.mxu2 }
 0x39a   : > { %2425 = vmatmul.msk.bf16.gmra.mxu3 %vm767_vm0, %v2538_v53 }
 0x3aa   : > { %2426 = vmatmul.msk.bf16.gmra.mxu3 %vm767_vm0, %v2539_v63  ;;  %v3465_v63 = vld [vmem:[#allocation11 + $0x8] sm:$0xff] }
 0x3d1   : > { %v1036_v45 = vpop.permute.xlu2 %1035 }
 0x3d2   : > { %v1046_v47 = vsel %vm806_vm1, %v859_v32, %v1036_v45 }
 0x3f0   : > { %v1040_v46 = vpop.permute.xlu1 %1039 }
 0x3f1   : > { %v1048_v48 = vsel %vm1047_vm3, %v1046_v47, %v1040_v46 }
 0x3f9   : > { %v1044_v49 = vpop.permute.xlu0 %1043 }
 0x3fa   : > { %v1050_v50 = vsel %vm1049_vm4, %v1048_v48, %v1044_v49 }
 0x3fb   : > { %v1055_v51 = vpack.c.bf16 %v1050_v50, %v1050_v50 }
 0x3fd   : > { %2385 = vmatmul.msk.bf16.vlgmr.msra.gmra.mxu0 %vm767_vm0, %v1055_v51  ;;  %v3403_v60 = vpop.f32.mrf.mxu3 }
 0x3fe   : > { %v1241_v25 = vadd.f32 %v1240_v9, %v3403_v60 }
 0x400   : > { %v1267_v27 = vpack.c.bf16 %v1241_v25, %v1241_v25 }
 0x402   : > { %v1291_v29 = vunpack.c.l.b16 %v1267_v27 }
 0x405   : > { %v3405_v61 = vpop.f32.mrf.mxu3 }
 0x406   : > { %v1242_v26 = vadd.f32 %v1240_v9, %v3405_v61 }
 0x408   : > { %v1268_v28 = vpack.c.bf16 %v1242_v26, %v1242_v26 }
 0x40a   : > { %v1292_v30 = vunpack.c.l.b16 %v1268_v28 }
 0x40c   : > { %v3432_v31 = vpack.c.b16 %v1292_v30, %v1291_v29 }
 0x40d   : > { %v3409_v4 = vpop.f32.mrf.mxu3 }
 0x40e   : > { %v1243_v32 = vadd.f32 %v1240_v9, %v3409_v4 }
 0x410   : > { %v1269_v34 = vpack.c.bf16 %v1243_v32, %v1243_v32 }
 0x412   : > { %v1293_v37 = vunpack.c.l.b16 %v1269_v34 }
 0x415   : > { %v3411_v7 = vpop.f32.mrf.mxu3 }
 0x416   : > { %v1244_v33 = vadd.f32 %v1240_v9, %v3411_v7 }
 0x418   : > { %v1270_v35 = vpack.c.bf16 %v1244_v33, %v1244_v33 }
 0x41a   : > { %v1294_v38 = vunpack.c.l.b16 %v1270_v35 }
 0x41c   : > { %v3444_v39 = vpack.c.b16 %v1294_v38, %v1293_v37 }
 0x41d   : > { %v3414_v10 = vpop.f32.mrf.mxu3 }
 0x41e   : > { %v1245_v13 = vadd.f32 %v1240_v9, %v3414_v10 }
 0x420   : > { %v1271_v16 = vpack.c.bf16 %v1245_v13, %v1245_v13 }
 0x422   : > { %v1295_v21 = vunpack.c.l.b16 %v1271_v16  ;;  %v1310_v16 = vsel %vm806_vm1, %v3444_v39, 0 }
 0x425   : > { %v3424_v18 = vpop.f32.mrf.mxu3 }
 0x426   : > { %v1246_v19 = vadd.f32 %v1240_v9, %v3424_v18 }
 0x428   : > { %v1272_v22 = vpack.c.bf16 %v1246_v19, %v1246_v19 }
 0x42a   : > { %v1296_v23 = vunpack.c.l.b16 %v1272_v22 }
 0x42c   : > { %v1301_v24 = vpack.c.b16 %v1296_v23, %v1295_v21 }
 0x42d   : > { %v1235_v42 = vpop.f32.mrf.mxu3 }
 0x42e   : > { %v1247_v43 = vadd.f32 %v1240_v9, %v1235_v42  ;;  %v1313_v5 = vsel %vm806_vm1, %v1301_v24, 0 }
 0x430   : > { %v1273_v46 = vpack.c.bf16 %v1247_v43, %v1247_v43 }
 0x432   : > { %v1297_v51 = vunpack.c.l.b16 %v1273_v46 }
 0x435   : > { %v1237_v48 = vpop.f32.mrf.mxu3 }
 0x436   : > { %v1248_v49 = vadd.f32 %v1240_v9, %v1237_v48 }
 0x438   : > { %v1274_v52 = vpack.c.bf16 %v1248_v49, %v1248_v49 }
 0x43a   : > { %v1298_v53 = vunpack.c.l.b16 %v1274_v52 }
 0x47a   : > { %v1081_v55 = vpop.f32.mrf.mxu0 }
 0x47b   : > { %v1082_v56 = vadd.f32 %v1081_v55, %v1056_v54  ;;  %v3457_v54 = vpack.c.b16 %v1298_v53, %v1297_v51 }
 0x47d   : > { %v1085_v57 = vadd.f32 %v1082_v56, %v3329_v1  ;;  %v1092_v1 = vmul.f32 %v2709_v0, %v1091_v6  ;;  %1403 = vrot.lane.b32.xlu2 %v3457_v54, %s3050_s23 }
 0x47f   : > { %v1086_v58 = vsel %vm767_vm0, %v1085_v57, 0.0  ;;  %v1093_v8 = vadd.f32 %v2709_v0, %v1092_v1  ;;  %v1115_v1 = vperm.slane %v3465_v63, 2 }
 0x480   : > { %1087 = vadd.xlane.f32.xlu1 %v1086_v58 }
 0x481   : > { %v3416_v11 = vsel %vm1094_vm5, %v2709_v0, %v1093_v8 }
 0x482   : > { %v1083_v59 = vpop.f32.mrf.mxu0 }
 0x485   : > { %1401 = vrot.lane.b32.xlu2 %v1301_v24, %s3050_s23 }
 0x48d   : > { %1481 = vrot.lane.b32.xlu2 %v3457_v54, %s3052_s7 }
 0x495   : > { %1399 = vrot.lane.b32.xlu2 %v3444_v39, %s3050_s23 }
 0x499   : > { %1479 = vrot.lane.b32.xlu1 %v1301_v24, %s3052_s7 }
 0x49d   : > { %1477 = vrot.lane.b32.xlu2 %v3444_v39, %s3052_s7 }
 0x4a1   : > { %1557 = vrot.lane.b32.xlu1 %v1301_v24, %s3049_s19 }
 0x4a9   : > { %1553 = vrot.lane.b32.xlu1 %v3432_v31, %s3049_s19 }
 0x4b1   : > { %1251 = vrot.lane.b32.xlu1 %v1249_v36, %s3045_s21  ;;  %s3782_s21 = smov 96  }
 0x4d7   : > { %v1404_v38 = vpop.permute.xlu2 %1403 }
 0x4d8   : > { %v1418_v40 = vsel %vm806_vm1, %v1404_v38, 0 }
 0x4d9   : > { %1424 = vmatpush.bf16.xpose.msrb.mxu1 %v1418_v40 }
 0x4df   : > { %v1402_v41 = vpop.permute.xlu2 %1401 }
 0x4f3   : > { %v1088_v12 = vpop.xlane.xlu1 %1087 }
 0x4f4   : > { %v1096_v14 = vmul.f32 %v3416_v11, %v1088_v12  ;;  %v1117_v12 = vperm.slane %v3465_v63, 3 }
 0x4f6   : > { %v3420_v15 = vsub.f32 %v1085_v57, %v1096_v14  ;;  %v1316_v57 = vsel %vm806_vm1, %v3457_v54, 0 }
 0x4f7   : > { %1322 = vmatpush.bf16.xpose.msrb.mxu2 %v1316_v57 }
 0x4f8   : > { %v1098_v17 = vmul.f32 %v3420_v15, %v3420_v15 }
 0x4fa   : > { %v1099_v20 = vsel %vm767_vm0, %v1098_v17, 0.0 }
 0x4fb   : > { %1100 = vadd.xlane.f32.xlu0 %v1099_v20 }
 0x4ff   : > { %1323 = vmatpush.bf16.xpose.msrb.mxu2 %v1313_v5 }
 0x507   : > { %1324 = vmatpush.bf16.xpose.msrb.mxu2 %v1310_v16 }
 0x50b   : > { %v3455_v50 = vpop.permute.xlu1 %1479 }
 0x50f   : > { %1397 = vrot.lane.b32.xlu0 %v3432_v31, %s3050_s23 }
 0x513   : > { %v3463_v58 = vpop.permute.xlu1 %1557 }
 0x514   : > { %v1571_v16 = vsel %vm806_vm1, %v3463_v58, 0  ;;  %v2689_v58 = vld [vmem:[%s735_s13] ss:$0 sm:$0xff]  ;;  %s3790_s13 = sld [smem:[#allocation29_spill]] }
 0x517   : > { %1475 = vrot.lane.b32.xlu0 %v3432_v31, %s3052_s7 }
 0x51b   : > { %v3470_v8 = vpop.permute.xlu1 %1553 }
 0x51f   : > { %1555 = vrot.lane.b32.xlu0 %v3444_v39, %s3049_s19  ;;  %v1482_v39 = vpop.permute.xlu2 %1481 }
 0x520   : > { %v1496_v43 = vsel %vm806_vm1, %v1482_v39, 0 }
 0x523   : > { %v3482_v20 = vpop.permute.xlu1 %1251 }
 0x524   : > { %v1258_v21 = vadd.f32 %v3482_v20, %v3414_v10  ;;  %v1260_v22 = vadd.f32 %v3482_v20, %v1235_v42  ;;  %v1261_v23 = vadd.f32 %v3482_v20, %v1237_v48  ;;  %v1256_v25 = vadd.f32 %v3482_v20, %v3409_v4 }
 0x525   : > { %v1307_v10 = vsel %vm806_vm1, %v3432_v31, 0  ;;  %v1415_v42 = vsel %vm806_vm1, %v1402_v41, 0  ;;  %v1255_v5 = vadd.f32 %v3482_v20, %v3405_v61 }
 0x526   : > { %v1279_v26 = vpack.c.bf16 %v1258_v21, %v1258_v21  ;;  %v1277_v28 = vpack.c.bf16 %v1256_v25, %v1256_v25  ;;  %v1281_v32 = vpack.c.bf16 %v1260_v22, %v1260_v22  ;;  %v1282_v33 = vpack.c.bf16 %v1261_v23, %v1261_v23  ;;  %1325 = vmatpush.bf16.xpose.msrb.mxu2 %v1307_v10 }
 0x527   : > { %1425 = vmatpush.bf16.xpose.msrb.mxu1 %v1415_v42  ;;  %v1565_v22 = vsel %vm806_vm1, %v3470_v8, 0 }
 0x528   : > { %v1356_v29 = vunpack.c.l.b16 %v1279_v26  ;;  %v1354_v34 = vunpack.c.l.b16 %v1277_v28  ;;  %v1359_v31 = vunpack.c.l.b16 %v1282_v33 }
 0x52e   : > { %1502 = vmatpush.bf16.xpose.msra.mxu2 %v1496_v43 }
 0x56e   : > { %v1101_v44 = vpop.xlane.xlu0 %1100 }
 0x56f   : > { %v1102_v45 = vmul.f32 %v1101_v44, %v3416_v11  ;;  %v1493_v44 = vsel %vm806_vm1, %v3455_v50, 0  ;;  %v1126_v50 = vperm.slane %v3333_v3, 4  ;;  %v1254_v3 = vadd.f32 %v3482_v20, %v3403_v60 }
 0x570   : > { %1503 = vmatpush.bf16.xpose.msra.mxu2 %v1493_v44 }
 0x571   : > { %v1103_v47 = vadd.f32 1e-05, %v1102_v45  ;;  %v1400_v45 = vpop.permute.xlu2 %1399 }
 0x572   : > { %v1412_v46 = vsel %vm806_vm1, %v1400_v45, 0 }
 0x573   : > { %2710 = vrsqrt.f32 %v1103_v47  ;;  %vm1110_vm7 = vweird.f32 %v1103_v47  ;;  %1426 = vmatpush.bf16.xpose.msrb.mxu1 %v1412_v46 }
 0x579   : > { %v2711_v55 = vpop.eup %2710  ;;  %v1478_v49 = vpop.permute.xlu2 %1477 }
 0x57a   : > { %v1105_v56 = vmul.f32 %v2711_v55, %v1103_v47  ;;  %vm1111_vm6 = vweird.f32 %v2711_v55  ;;  %v1490_v51 = vsel %vm806_vm1, %v1478_v49, 0 }
 0x57b   : > { %vm1112_vm8 = vmor %vm1110_vm7, %vm1111_vm6  ;;  %1504 = vmatpush.bf16.xpose.msra.mxu2 %v1490_v51 }
 0x57c   : > { %v1106_v59 = vmul.f32 %v2711_v55, %v1105_v56 }
 0x57e   : > { %v1107_v62 = vmul.f32 0.5, %v1106_v59 }
 0x580   : > { %v1108_v0 = vsub.f32 1.5, %v1107_v62 }
 0x581   : > { %v1398_v47 = vpop.permute.xlu0 %1397 }
 0x582   : > { %v1109_v6 = vmul.f32 %v2711_v55, %v1108_v0  ;;  %v1409_v48 = vsel %vm806_vm1, %v1398_v47, 0 }
 0x583   : > { %1427 = vmatpush.bf16.xpose.msrb.mxu1 %v1409_v48 }
 0x584   : > { %v1113_v9 = vsel %vm1112_vm8, %v2711_v55, %v1109_v6  ;;  %v1275_v6 = vpack.c.bf16 %v1254_v3, %v1254_v3 }
 0x585   : > { %v1114_v13 = vmul.f32 %v1113_v9, %v3420_v15  ;;  %v1259_v15 = vadd.f32 %v3482_v20, %v3424_v18 }
 0x586   : > { %v1352_v9 = vunpack.c.l.b16 %v1275_v6 }
 0x587   : > { %v1116_v14 = vmul.f32 %v1115_v1, %v1114_v13  ;;  %v1280_v27 = vpack.c.bf16 %v1259_v15, %v1259_v15  ;;  %v1276_v1 = vpack.c.bf16 %v1255_v5, %v1255_v5 }
 0x589   : > { %v3476_v17 = vadd.f32 %v1117_v12, %v1116_v14  ;;  %v1357_v30 = vunpack.c.l.b16 %v1280_v27  ;;  %v1476_v52 = vpop.permute.xlu0 %1475  ;;  %v1353_v12 = vunpack.c.l.b16 %v1276_v1 }
 0x58a   : > { %v1487_v53 = vsel %vm806_vm1, %v1476_v52, 0 }
 0x58b   : > { %v1119_v19 = vadd.f32 %v3476_v17, %v3331_v2  ;;  %v1257_v2 = vadd.f32 %v3482_v20, %v3411_v7  ;;  %v3497_v36 = vpack.c.b16 %v1357_v30, %v1356_v29  ;;  %v1358_v7 = vunpack.c.l.b16 %v1281_v32  ;;  %1505 = vmatpush.bf16.xpose.msra.mxu2 %v1487_v53 }
 0x58c   : > { %v3545_v13 = vpack.c.b16 %v1353_v12, %v1352_v9 }
 0x58d   : > { %v1125_v24 = vpack.c.bf16 %v1119_v19, %v1119_v19  ;;  %v1278_v18 = vpack.c.bf16 %v1257_v2, %v1257_v2  ;;  %1368 = vrot.lane.b32.xlu1 %v3497_v36, %s3782_s21  ;;  %v3507_v37 = vpack.c.b16 %v1359_v31, %v1358_v7 }
 0x58f   : > { %2398 = vmatmul.msk.bf16.vlgmr.msra.gmra.mxu1 %vm767_vm0, %v1125_v24  ;;  %v1355_v35 = vunpack.c.l.b16 %v1278_v18 }
 0x591   : > { %v3501_v4 = vpack.c.b16 %v1355_v35, %v1354_v34  ;;  %v1556_v19 = vpop.permute.xlu0 %1555 }
 0x592   : > { %v1568_v21 = vsel %vm806_vm1, %v1556_v19, 0 }
 0x593   : > { %1366 = vrot.lane.b32.xlu0 %v3501_v4, %s3782_s21 }
 0x595   : > { %1451 = vrot.lane.b32.xlu1 %v3507_v37, %s3783_s20 }
 0x59d   : > { %1447 = vrot.lane.b32.xlu1 %v3501_v4, %s3783_s20 }
 0x5a5   : > { %1529 = vrot.lane.b32.xlu1 %v3507_v37, %s3784_s18 }
 0x5ad   : > { %1527 = vrot.lane.b32.xlu1 %v3497_v36, %s3784_s18 }
 0x5ff   : > { %v1369_v23 = vpop.permute.xlu1 %1368 }
 0x605   : > { %v1367_v2 = vpop.permute.xlu0 %1366 }
 0x607   : > { %v1452_v8 = vpop.permute.xlu1 %1451 }
 0x60c   : > { %v1151_v55 = vpop.f32.mrf.mxu1 }
 0x60d   : > { %v1152_v56 = vadd.f32 %v1151_v55, %v1126_v50 }
 0x60f   : > { %v1266_v57 = vpack.c.bf16 %v1152_v56, %v1152_v56  ;;  %v1448_v18 = vpop.permute.xlu1 %1447 }
 0x611   : > { %v1393_v59 = vunpack.c.l.b16 %v1266_v57  ;;  %2427 = vmatmul.msk.bf16.vlgmr.msrb.gmra.mxu2 %vm806_vm1, %v1266_v57 }
 0x613   : > { %v1394_v62 = vpack.c.b16 %v1393_v59, %v1393_v59 }
 0x614   : > { %v1153_v0 = vpop.f32.mrf.mxu1 }
 0x615   : > { %1395 = vrot.lane.b32.xlu2 %v1394_v62, %s3050_s23  ;;  %s3788_s23 = sshll.u32 %s3296_s16, 3 }
 0x617   : > { %v1530_v51 = vpop.permute.xlu1 %1529 }
 0x61d   : > { %1559 = vrot.lane.b32.xlu2 %v3457_v54, %s3049_s19 }
 0x61f   : > { %v1528_v55 = vpop.permute.xlu1 %1527 }
 0x625   : > { %1473 = vrot.lane.b32.xlu2 %v1394_v62, %s3052_s7  ;;  %s3786_s7 = smov 8  }
 0x62d   : > { %1551 = vrot.lane.b32.xlu2 %v1394_v62, %s3049_s19 }
 0x635   : > { %1370 = vrot.lane.b32.xlu2 %v3507_v37, %s3782_s21 }
 0x63d   : > { %1364 = vrot.lane.b32.xlu2 %v3545_v13, %s3782_s21  ;;  %s3789_s21 = sld [smem:[#allocation28_spill]] }
 0x645   : > { %1449 = vrot.lane.b32.xlu2 %v3497_v36, %s3783_s20 }
 0x66f   : > { %v1396_v54 = vpop.permute.xlu2 %1395 }
 0x670   : > { %2429 = vmatmul.msk.bf16.vlgmr.msrb.gmra.mxu1 %vm806_vm1, %v1396_v54 }
 0x677   : > { %v1560_v60 = vpop.permute.xlu2 %1559 }
 0x678   : > { %v1574_v61 = vsel %vm806_vm1, %v1560_v60, 0 }
 0x679   : > { %1580 = vmatpush.bf16.xpose.msra.mxu1 %v1574_v61 }
 0x67f   : > { %v1474_v14 = vpop.permute.xlu2 %1473 }
 0x680   : > { %2431 = vmatmul.msk.bf16.vlgmr.msra.gmra.mxu2 %vm806_vm1, %v1474_v14 }
 0x681   : > { %1581 = vmatpush.bf16.xpose.msra.mxu1 %v1571_v16 }
 0x687   : > { %v1552_v20 = vpop.permute.xlu2 %1551 }
 0x689   : > { %1582 = vmatpush.bf16.xpose.msra.mxu1 %v1568_v21 }
 0x68f   : > { %v1371_v15 = vpop.permute.xlu2 %1370 }
 0x690   : > { %1383 = vmatpush.bf16.msrb.mxu0 %v1371_v15 }
 0x691   : > { %1583 = vmatpush.bf16.xpose.msra.mxu1 %v1565_v22 }
 0x694   : > { %v1327_v24 = vpop.f32.mrf.mxu2  ;;  %1384 = vmatpush.bf16.msrb.mxu0 %v1369_v23 }
 0x695   : > { %v1328_v25 = vadd.f32 %v2689_v58, %v1327_v24 }
 0x697   : > { %v1365_v26 = vpop.permute.xlu2 %1364  ;;  %v1332_v27 = vsel %vm1331_vm9, %v1328_v25, -inf }
 0x698   : > { %1385 = vmatpush.bf16.msrb.mxu0 %v1367_v2  ;;  %2433 = vmatmul.msk.bf16.vlgmr.msra.gmra.mxu1 %vm806_vm1, %v1552_v20 }
 0x699   : > { %1333 = vmax.xlane.f32.xlu0 %v1332_v27 }
 0x69c   : > { %v1329_v10 = vpop.f32.mrf.mxu2  ;;  %1386 = vmatpush.bf16.msrb.mxu0 %v1365_v26 }
 0x69f   : > { %v1450_v28 = vpop.permute.xlu2 %1449 }
 0x6a0   : > { %1464 = vmatpush.bf16.msra.mxu0 %v1452_v8 }
 0x6a4   : > { %1465 = vmatpush.bf16.msra.mxu0 %v1450_v28 }
 0x6a8   : > { %1466 = vmatpush.bf16.msra.mxu0 %v1448_v18 }
 0x6ed   : > { %v1429_v29 = vpop.f32.mrf.mxu1 }
 0x6ee   : > { %v1430_v30 = vadd.f32 %v2689_v58, %v1429_v29 }
 0x6f0   : > { %v1433_v32 = vsel %vm1331_vm9, %v1430_v30, -inf }
 0x6f1   : > { %1434 = vmax.xlane.f32.xlu2 %v1433_v32 }
 0x6f5   : > { %v1431_v33 = vpop.f32.mrf.mxu1 }
 0x703   : > { %v1507_v34 = vpop.f32.mrf.mxu2 }
 0x704   : > { %v1508_v35 = vadd.f32 %v2689_v58, %v1507_v34 }
 0x706   : > { %v1511_v7 = vsel %vm1331_vm9, %v1508_v35, -inf }
 0x707   : > { %1512 = vmax.xlane.f32.xlu1 %v1511_v7  ;;  %v2545_v7 = vld [vmem:[%s3727_s5 + $0x38] sm:$0xff] }
 0x708   : > { %1734 = vmatpush.bf16.msrb.mxu2 %v2545_v7 }
 0x709   : > { %1445 = vrot.lane.b32.xlu2 %v3545_v13, %s3783_s20 }
 0x70b   : > { %v1509_v31 = vpop.f32.mrf.mxu2 }
 0x70c   : > { %v1334_v38 = vpop.xlane.xlu0 %1333 }
 0x70d   : > { %v1335_v40 = vsub.f32 %v1328_v25, %v1334_v38 }
 0x70f   : > { %v1336_v41 = vmul.f32 1.442695, %v1335_v40 }
 0x711   : > { %2712 = vpow2.f32 %v1336_v41 }
 0x715   : > { %v1585_v42 = vpop.f32.mrf.mxu1 }
 0x716   : > { %v1586_v44 = vadd.f32 %v2689_v58, %v1585_v42 }
 0x717   : > { %v2713_v39 = vpop.eup %2712 }
 0x718   : > { %v1338_v43 = vsel %vm1331_vm9, %v2713_v39, 0.0  ;;  %v1589_v46 = vsel %vm1331_vm9, %v1586_v44, -inf }
 0x719   : > { %1339 = vadd.xlane.f32.xlu0 %v1338_v43 }
 0x71d   : > { %v1587_v45 = vpop.f32.mrf.mxu1 }
 0x71e   : > { %v2744_v45 = vld [vmem:[#allocation11] sm:$0xff] }
 0x720   : > { %1525 = vrot.lane.b32.xlu1 %v3501_v4, %s3784_s18 }
 0x721   : > { %1590 = vmax.xlane.f32.xlu0 %v1589_v46  ;;  %v1650_v46 = vperm.slane %v2744_v45, 7 }
 0x728   : > { %1523 = vrot.lane.b32.xlu1 %v3545_v13, %s3784_s18  ;;  %s3792_s18 = sld [smem:[#allocation31_spill]] }
 0x735   : > { %1607 = vrot.lane.b32.xlu0 %v3507_v37, %s3785_s4 }
 0x764   : > { %v1435_v47 = vpop.xlane.xlu2 %1434 }
 0x765   : > { %v1436_v48 = vsub.f32 %v1430_v30, %v1435_v47  ;;  %v2543_v30 = vld [vmem:[%s3727_s5 + $0x28] sm:$0xff] }
 0x766   : > { %1672 = vmatpush.bf16.msrb.mxu3 %v2543_v30 }
 0x767   : > { %v1437_v49 = vmul.f32 1.442695, %v1436_v48 }
 0x769   : > { %2714 = vpow2.f32 %v1437_v49 }
 0x76c   : > { %v1446_v52 = vpop.permute.xlu2 %1445 }
 0x76d   : > { %1467 = vmatpush.bf16.msra.mxu0 %v1446_v52 }
 0x76f   : > { %v2715_v53 = vpop.eup %2714 }
 0x770   : > { %v1439_v50 = vsel %vm1331_vm9, %v2715_v53, 0.0 }
 0x771   : > { %1440 = vadd.xlane.f32.xlu0 %v1439_v50 }
 0x77a   : > { %v1513_v56 = vpop.xlane.xlu1 %1512 }
 0x77b   : > { %v1514_v57 = vsub.f32 %v1508_v35, %v1513_v56  ;;  %v2542_v35 = vld [vmem:[%s3727_s5 + $0x20] sm:$0xff] }
 0x77c   : > { %1673 = vmatpush.bf16.msrb.mxu3 %v2542_v35 }
 0x77d   : > { %v1515_v59 = vmul.f32 1.442695, %v1514_v57 }
 0x77f   : > { %2716 = vpow2.f32 %v1515_v59 }
 0x785   : > { %v2717_v62 = vpop.eup %2716  ;;  %1603 = vrot.lane.b32.xlu0 %v3501_v4, %s3785_s4 }
 0x786   : > { %v1517_v37 = vsel %vm1331_vm9, %v2717_v62, 0.0 }
 0x787   : > { %1518 = vadd.xlane.f32.xlu2 %v1517_v37 }
 0x78c   : > { %v1340_v0 = vpop.xlane.xlu0 %1339 }
 0x78d   : > { %2718 = vrcp.f32 %v1340_v0  ;;  %1601 = vrot.lane.b32.xlu0 %v3545_v13, %s3785_s4  ;;  %v2547_v0 = vld [vmem:[#allocation8 + $0x8] sm:$0xff] }
 0x792   : > { %v1526_v54 = vpop.permute.xlu1 %1525 }
 0x793   : > { %v2719_v3 = vpop.eup %2718 }
 0x794   : > { %v1342_v5 = vmul.f32 %v2719_v3, %v2713_v39  ;;  %v1591_v6 = vpop.xlane.xlu0 %1590  ;;  %v2551_v3 = vld [vmem:[#allocation10 + $0x18] sm:$0xff] }
 0x795   : > { %v1592_v1 = vsub.f32 %v1586_v44, %v1591_v6  ;;  %v2544_v44 = vld [vmem:[%s3727_s5 + $0x30] sm:$0xff]  ;;  %1820 = vmatpush.bf16.msrb.mxu1 %v2551_v3  ;;  %v2557_v3 = vld [vmem:[#allocation13 + $0x18] sm:$0xff] }
 0x796   : > { %v1343_v9 = vpack.c.bf16 %v1342_v5, %v1342_v5  ;;  %1735 = vmatpush.bf16.msrb.mxu2 %v2544_v44 }
 0x797   : > { %v1593_v12 = vmul.f32 1.442695, %v1592_v1  ;;  %v2550_v1 = vld [vmem:[#allocation10 + $0x10] sm:$0xff] }
 0x798   : > { %2428 = vmatmul.msk.bf16.vlgmr.msrb.gmra.mxu0 %vm1331_vm9, %v1343_v9 }
 0x799   : > { %2720 = vpow2.f32 %v1593_v12  ;;  %1542 = vmatpush.bf16.msrb.mxu0 %v1530_v51  ;;  %1821 = vmatpush.bf16.msrb.mxu1 %v2550_v1  ;;  %v2549_v12 = vld [vmem:[#allocation10 + $0x8] sm:$0xff] }
 0x79a   : > { %v1524_v13 = vpop.permute.xlu1 %1523 }
 0x79d   : > { %1543 = vmatpush.bf16.msrb.mxu0 %v1528_v55  ;;  %1822 = vmatpush.bf16.msrb.mxu1 %v2549_v12 }
 0x79f   : > { %v2721_v4 = vpop.eup %2720  ;;  %1605 = vrot.lane.b32.xlu2 %v3497_v36, %s3785_s4  ;;  %s3635_s4 = scalar_lea.vmem [#allocation14], %s3788_s23 }
 0x7a0   : > { %v1595_v60 = vsel %vm1331_vm9, %v2721_v4, 0.0 }
 0x7a1   : > { %1544 = vmatpush.bf16.msrb.mxu0 %v1526_v54  ;;  %1596 = vadd.xlane.f32.xlu1 %v1595_v60 }
 0x7a5   : > { %1545 = vmatpush.bf16.msrb.mxu0 %v1524_v13 }
 0x7a7   : > { %v1608_v61 = vpop.permute.xlu0 %1607 }
 0x7e4   : > { %v1441_v14 = vpop.xlane.xlu0 %1440 }
 0x7e5   : > { %2722 = vrcp.f32 %v1441_v14 }
 0x7eb   : > { %v2723_v16 = vpop.eup %2722 }
 0x7ec   : > { %v1443_v19 = vmul.f32 %v2723_v16, %v2715_v53  ;;  %v1702_v16 = vperm.slane %v3465_v63, 4 }
 0x7ee   : > { %v1444_v20 = vpack.c.bf16 %v1443_v19, %v1443_v19 }
 0x7f0   : > { %2430 = vmatmul.msk.bf16.vlgmr.msra.gmra.mxu0 %vm1331_vm9, %v1444_v20  ;;  %v1704_v20 = vperm.slane %v3465_v63, 5 }
 0x7f1   : > { %1620 = vmatpush.bf16.msra.mxu0 %v1608_v61 }
 0x7f7   : > { %v1604_v15 = vpop.permute.xlu0 %1603 }
 0x7fa   : > { %v1519_v21 = vpop.xlane.xlu2 %1518 }
 0x7fb   : > { %2724 = vrcp.f32 %v1519_v21 }
 0x7ff   : > { %v1602_v24 = vpop.permute.xlu0 %1601 }
 0x801   : > { %v2725_v22 = vpop.eup %2724 }
 0x802   : > { %v1521_v36 = vmul.f32 %v2725_v22, %v2717_v62  ;;  %v1606_v23 = vpop.permute.xlu2 %1605 }
 0x803   : > { %1621 = vmatpush.bf16.msra.mxu0 %v1606_v23  ;;  %v2548_v23 = vld [vmem:[#allocation10] sm:$0xff] }
 0x804   : > { %v1522_v58 = vpack.c.bf16 %v1521_v36, %v1521_v36  ;;  %1823 = vmatpush.bf16.msrb.mxu1 %v2548_v23 }
 0x806   : > { %2432 = vmatmul.msk.bf16.vlgmr.msrb.gmra.mxu0 %vm1331_vm9, %v1522_v58  ;;  %v2690_v58 = vld [vmem:[%s3730_s8] ss:$0 sm:$0xff] }
 0x807   : > { %1622 = vmatpush.bf16.msra.mxu0 %v1604_v15 }
 0x80b   : > { %1623 = vmatpush.bf16.msra.mxu0 %v1602_v24 }
 0x80f   : > { %1771 = vmatpush.bf16.msrb.mxu0 %v2547_v0 }
 0x814   : > { %v1597_v25 = vpop.xlane.xlu1 %1596 }
 0x815   : > { %2726 = vrcp.f32 %v1597_v25  ;;  %v1388_v2 = vpop.f32.mrf.mxu0 }
 0x81b   : > { %v2727_v26 = vpop.eup %2726 }
 0x81c   : > { %v1599_v27 = vmul.f32 %v2727_v26, %v2721_v4 }
 0x81d   : > { %v1390_v8 = vpop.f32.mrf.mxu0 }
 0x81e   : > { %v1600_v10 = vpack.c.bf16 %v1599_v27, %v1599_v27  ;;  %v1788_v8 = vperm.slane %v3465_v63, 1 }
 0x820   : > { %2434 = vmatmul.msk.bf16.vlgmr.msra.gmra.mxu0 %vm1331_vm9, %v1600_v10 }
 0x86d   : > { %v1469_v28 = vpop.f32.mrf.mxu0 }
 0x86e   : > { %1630 = vrot.lane.b32.xlu0 %v1469_v28, %s3786_s7  ;;  %s3791_s7 = sld [smem:[#allocation27_spill]] }
 0x875   : > { %v1471_v18 = vpop.f32.mrf.mxu0 }
 0x883   : > { %v1547_v29 = vpop.f32.mrf.mxu0 }
 0x884   : > { %1634 = vrot.lane.b32.xlu2 %v1547_v29, %s3787_s6  ;;  %s739_s6 = scalar_lea.vmem %s3791_s7, %s3323_s14 }
 0x88b   : > { %v1549_v32 = vpop.f32.mrf.mxu0 }
 0x89d   : > { %v1625_v33 = vpop.f32.mrf.mxu0 }
 0x89e   : > { %1638 = vrot.lane.b32.xlu0 %v1625_v33, %s3059_s3  ;;  %s2133_s3 = sshll.u32 %s3635_s4, 4  ;;  %s2134_s3 = int_to_ptr.vmem [resolvable:$true] %s2133_s3 }
 0x8a5   : > { %v1627_v34 = vpop.f32.mrf.mxu0 }
 0x8de   : > { %v1635_v40 = vpop.permute.xlu2 %1634 }
 0x8e0   : > { %v1631_v31 = vpop.permute.xlu0 %1630 }
 0x8e1   : > { %v1641_v38 = vsel %vm806_vm1, %v1388_v2, %v1631_v31 }
 0x8e2   : > { %v1642_v41 = vsel %vm1047_vm3, %v1641_v38, %v1635_v40 }
 0x910   : > { %v1639_v42 = vpop.permute.xlu0 %1638 }
 0x911   : > { %v1643_v39 = vsel %vm1049_vm4, %v1642_v41, %v1639_v42 }
 0x912   : > { %v1649_v43 = vpack.c.bf16 %v1643_v39, %v1643_v39 }
 0x914   : > { %2447 = vmatmul.msk.bf16.vlgmr.msrb.gmra.mxu3 %vm767_vm0, %v1649_v43 }
 0x997   : > { %v1675_v47 = vpop.f32.mrf.mxu3 }
 0x998   : > { %v1676_v48 = vadd.f32 %v1675_v47, %v1650_v46  ;;  %v1852_v46 = vperm.slane %v3465_v63, 6 }
 0x99a   : > { %v1711_v49 = vpack.c.bf16 %v1676_v48, %v1676_v48  ;;  %v1679_v51 = vadd.f32 %v1676_v48, %v3476_v17  ;;  %v2546_v17 = vld [vmem:[#allocation8] sm:$0xff] }
 0x99b   : > { %1772 = vmatpush.bf16.msrb.mxu0 %v2546_v17 }
 0x99c   : > { %2460 = vmatmul.msk.bf16.vlgmr.msrb.gmra.mxu2 %vm767_vm0, %v1711_v49  ;;  %v1680_v52 = vsel %vm767_vm0, %v1679_v51, 0.0  ;;  %v1854_v49 = vperm.slane %v3465_v63, 7 }
 0x99d   : > { %1681 = vadd.xlane.f32.xlu1 %v1680_v52 }
 0x99f   : > { %v1677_v53 = vpop.f32.mrf.mxu3  ;;  %2009 = vmatpush.bf16.msra.mxu0 %v2557_v3 }
 0xa10   : > { %v1682_v50 = vpop.xlane.xlu1 %1681 }
 0xa11   : > { %v1683_v55 = vmul.f32 %v1682_v50, %v3416_v11 }
 0xa13   : > { %v1684_v56 = vsub.f32 %v1679_v51, %v1683_v55 }
 0xa15   : > { %v1685_v57 = vmul.f32 %v1684_v56, %v1684_v56 }
 0xa17   : > { %v1686_v59 = vsel %vm767_vm0, %v1685_v57, 0.0 }
 0xa18   : > { %1687 = vadd.xlane.f32.xlu2 %v1686_v59  ;;  %v1712_v59 = vperm.slane %v3465_v63, 0 }
 0xa1f   : > { %v3615_v62 = vpop.f32.mrf.mxu2 }
 0xa20   : > { %v1738_v0 = vadd.f32 %v3615_v62, %v1712_v59 }
 0xa22   : > { %v1884_v17 = vsel %vm767_vm0, %v1738_v0, 0.0 }
 0xa27   : > { %v1739_v37 = vpop.f32.mrf.mxu2 }
 0xa8b   : > { %v1688_v5 = vpop.xlane.xlu2 %1687 }
 0xa8c   : > { %v1689_v6 = vmul.f32 %v1688_v5, %v3416_v11  ;;  %v2556_v5 = vld [vmem:[#allocation13 + $0x10] sm:$0xff] }
 0xa8d   : > { %2010 = vmatpush.bf16.msra.mxu0 %v2556_v5  ;;  %v2079_v5 = vld [vmem:[%s739_s6] sm:$0xff]  ;;  %s2975_s6 = scalar_lea.hbm %s3792_s18, 16 }
 0xa8e   : > { %v1690_v9 = vadd.f32 1e-05, %v1689_v6 }
 0xa90   : > { %2728 = vrsqrt.f32 %v1690_v9  ;;  %vm1697_vm11 = vweird.f32 %v1690_v9 }
 0xa96   : > { %v2729_v54 = vpop.eup %2728 }
 0xa97   : > { %v1692_v4 = vmul.f32 %v2729_v54, %v1690_v9  ;;  %vm1698_vm10 = vweird.f32 %v2729_v54 }
 0xa98   : > { %vm1699_vm12 = vmor %vm1697_vm11, %vm1698_vm10 }
 0xa99   : > { %v1693_v60 = vmul.f32 %v2729_v54, %v1692_v4 }
 0xa9b   : > { %v1694_v13 = vmul.f32 0.5, %v1693_v60 }
 0xa9d   : > { %v1695_v61 = vsub.f32 1.5, %v1694_v13 }
 0xa9f   : > { %v1696_v14 = vmul.f32 %v2729_v54, %v1695_v61 }
 0xaa1   : > { %v1700_v19 = vsel %vm1699_vm12, %v2729_v54, %v1696_v14 }
 0xaa2   : > { %v1701_v21 = vmul.f32 %v1700_v19, %v1684_v56 }
 0xaa4   : > { %v1703_v15 = vmul.f32 %v1702_v16, %v1701_v21  ;;  %v3650_v16 = vld [vmem:[%s3737_s15] sm:$0x1f] }
 0xaa5   : > { %v1880_v21 = vperm.slane %v3650_v16, 1 }
 0xaa6   : > { %v1705_v22 = vadd.f32 %v1704_v20, %v1703_v15 }
 0xaa8   : > { %v1745_v36 = vpack.c.bf16 %v1705_v22, %v1705_v22 }
 0xaaa   : > { %2469 = vmatmul.msk.bf16.vlgmr.msrb.gmra.mxu0 %vm767_vm0, %v1745_v36 }
 0xb27   : > { %v1774_v24 = vpop.f32.mrf.mxu0 }
 0xb28   : > { %v1775_v25 = vadd.f32 %v2690_v58, %v1774_v24 }
 0xb2a   : > { %v1778_v2 = vmax.f32 %v1775_v25, 0.0  ;;  %v2553_v25 = vld [vmem:[#allocation13 + $0x8] sm:$0xff] }
 0xb2b   : > { %1934 = vmatpush.bf16.msra.mxu3 %v2553_v25 }
 0xb2c   : > { %v1787_v26 = vpack.c.bf16 %v1778_v2, %v1778_v2  ;;  %v2559_v2 = vld [vmem:[#allocation13 + $0x28] sm:$0xff] }
 0xb2d   : > { %2045 = vmatpush.bf16.msra.mxu1 %v2559_v2 }
 0xb2e   : > { %2486 = vmatmul.msk.bf16.vlgmr.msrb.gmra.mxu1 %vm1331_vm9, %v1787_v26  ;;  %v2558_v26 = vld [vmem:[#allocation13 + $0x20] sm:$0xff] }
 0xb2f   : > { %v1776_v27 = vpop.f32.mrf.mxu0 }
 0xb30   : > { %v2552_v27 = vld [vmem:[#allocation13] sm:$0xff] }
 0xb31   : > { %1935 = vmatpush.bf16.msra.mxu3 %v2552_v27  ;;  %2046 = vmatpush.bf16.msra.mxu1 %v2558_v26 }
 0xbab   : > { %v1825_v10 = vpop.f32.mrf.mxu1 }
 0xbac   : > { %v1826_v28 = vadd.f32 %v1825_v10, %v1788_v8 }
 0xbae   : > { %v1829_v18 = vadd.f32 %v1826_v28, %v1705_v22  ;;  %v1882_v22 = vperm.slane %v3650_v16, 2  ;;  %v2554_v28 = vld [vmem:[%s3789_s21] sm:$0xff] }
 0xbb0   : > { %v1830_v29 = vsel %vm767_vm0, %v1829_v18, 0.0 }
 0xbb1   : > { %1831 = vadd.xlane.f32.xlu0 %v1830_v29 }
 0xbb3   : > { %v1827_v30 = vpop.f32.mrf.mxu1 }
 0xbc5   : > { %2054 = vrot.lane.b32.xlu0 %v2554_v28, %s3061_s11 }
 0xc24   : > { %v1832_v32 = vpop.xlane.xlu0 %1831 }
 0xc25   : > { %v1833_v33 = vmul.f32 %v1832_v32, %v3416_v11 }
 0xc27   : > { %v1834_v34 = vsub.f32 %v1829_v18, %v1833_v33  ;;  %v2555_v18 = vld [vmem:[%s3789_s21 + $0x8] sm:$0xff] }
 0xc28   : > { %2056 = vrot.lane.b32.xlu2 %v2555_v18, %s3061_s11  ;;  %1974 = vmatpush.bf16.msra.mxu2 %v2555_v18 }
 0xc29   : > { %v1835_v35 = vmul.f32 %v1834_v34, %v1834_v34 }
 0xc2b   : > { %v1836_v7 = vsel %vm767_vm0, %v1835_v35, 0.0 }
 0xc2c   : > { %1837 = vadd.xlane.f32.xlu1 %v1836_v7  ;;  %1975 = vmatpush.bf16.msra.mxu2 %v2554_v28 }
 0xc9f   : > { %v1838_v31 = vpop.xlane.xlu1 %1837 }
 0xca0   : > { %v1839_v38 = vmul.f32 %v1838_v31, %v3416_v11  ;;  %v1987_v31 = vperm.slane %v3650_v16, 3 }
 0xca2   : > { %v1840_v40 = vadd.f32 1e-05, %v1839_v38 }
 0xca4   : > { %2730 = vrsqrt.f32 %v1840_v40  ;;  %vm1847_vm14 = vweird.f32 %v1840_v40 }
 0xcaa   : > { %v2731_v41 = vpop.eup %2730 }
 0xcab   : > { %v1842_v42 = vmul.f32 %v2731_v41, %v1840_v40  ;;  %vm1848_vm13 = vweird.f32 %v2731_v41 }
 0xcac   : > { %vm1849_vm15 = vmor %vm1847_vm14, %vm1848_vm13 }
 0xcad   : > { %v1843_v39 = vmul.f32 %v2731_v41, %v1842_v42 }
 0xcaf   : > { %v1844_v43 = vmul.f32 0.5, %v1843_v39 }
 0xcb1   : > { %v1845_v44 = vsub.f32 1.5, %v1844_v43 }
 0xcb3   : > { %v1846_v45 = vmul.f32 %v2731_v41, %v1845_v44 }
 0xcb5   : > { %v1850_v47 = vsel %vm1849_vm15, %v2731_v41, %v1846_v45 }
 0xcb6   : > { %v1851_v48 = vmul.f32 %v1850_v47, %v1834_v34  ;;  %v2057_v47 = vpop.permute.xlu2 %2056 }
 0xcb7   : > { %2072 = vmatpush.bf16.msrb.mxu3 %v2057_v47 }
 0xcb8   : > { %v1853_v51 = vmul.f32 %v1852_v46, %v1851_v48  ;;  %v2055_v48 = vpop.permute.xlu0 %2054 }
 0xcba   : > { %v1855_v52 = vadd.f32 %v1854_v49, %v1853_v51  ;;  %v3670_v49 = vld [vmem:[%s3790_s13] ss:$0 sm:$0xff]  ;;  %v2023_v51 = vperm.slane %v3650_v16, 4  ;;  %s2117_s13 = scalar_lea.sflag [#allocation4], %s3296_s16 }
 0xcbb   : > { %2073 = vmatpush.bf16.msrb.mxu3 %v2055_v48 }
 0xcbc   : > { %v1858_v53 = vsel %vm767_vm0, %v1855_v52, 0.0  ;;  %1856 = vst.msk [vmem:[%s3635_s4] sm:$0xff] %vm767_vm0, %v1855_v52 }
 0xcbd   : > { %1859 = vadd.xlane.f32.xlu1 %v1858_v53 }
 0xd30   : > { %v1860_v50 = vpop.xlane.xlu1 %1859 }
 0xd31   : > { %v1861_v55 = vmul.f32 %v1860_v50, %v3416_v11 }
 0xd33   : > { %v1862_v56 = vsub.f32 %v1855_v52, %v1861_v55  ;;  %v1942_v55 = vperm.slane %v3650_v16, 0 }
 0xd35   : > { %v1863_v57 = vmul.f32 %v1862_v56, %v1862_v56 }
 0xd37   : > { %v1864_v37 = vsel %vm767_vm0, %v1863_v57, 0.0 }
 0xd38   : > { %1865 = vadd.xlane.f32.xlu1 %v1864_v37 }
 0xd40   : > { %1885 = vadd.xlane.f32.xlu1 %v1884_v17 }
 0xdab   : > { %v1866_v6 = vpop.xlane.xlu1 %1865 }
 0xdac   : > { %v1867_v1 = vmul.f32 %v1866_v6, %v3416_v11  ;;  %v2080_v6 = vmax.f32 %v2079_v5, 1e-05 }
 0xdae   : > { %v1868_v9 = vadd.f32 1e-05, %v1867_v1  ;;  %v2081_v1 = vmin.f32 %v2080_v6, 0.99999 }
 0xdb0   : > { %2732 = vrsqrt.f32 %v1868_v9  ;;  %vm1875_vm3 = vweird.f32 %v1868_v9 }
 0xdb3   : > { %v1886_v12 = vpop.xlane.xlu1 %1885 }
 0xdb4   : > { %v1887_v63 = vmul.f32 %v1886_v12, %v3416_v11 }
 0xdb6   : > { %v2733_v54 = vpop.eup %2732  ;;  %v1888_v4 = vsub.f32 %v1738_v0, %v1887_v63 }
 0xdb7   : > { %v1870_v60 = vmul.f32 %v2733_v54, %v1868_v9  ;;  %vm1876_vm2 = vweird.f32 %v2733_v54  ;;  %v2084_v9 = vsub.f32 1.0, %v2081_v1 }
 0xdb8   : > { %v1889_v13 = vmul.f32 %v1888_v4, %v1888_v4  ;;  %vm1877_vm4 = vmor %vm1875_vm3, %vm1876_vm2 }
 0xdb9   : > { %v1871_v62 = vmul.f32 %v2733_v54, %v1870_v60 }
 0xdba   : > { %v1890_v61 = vsel %vm767_vm0, %v1889_v13, 0.0 }
 0xdbb   : > { %v1872_v14 = vmul.f32 0.5, %v1871_v62  ;;  %1891 = vadd.xlane.f32.xlu1 %v1890_v61 }
 0xdbd   : > { %v1873_v19 = vsub.f32 1.5, %v1872_v14 }
 0xdbf   : > { %v1874_v20 = vmul.f32 %v2733_v54, %v1873_v19 }
 0xdc1   : > { %v1878_v15 = vsel %vm1877_vm4, %v2733_v54, %v1874_v20 }
 0xdc2   : > { %v1879_v36 = vmul.f32 %v1878_v15, %v1862_v56 }
 0xdc4   : > { %v1881_v23 = vmul.f32 %v1880_v21, %v1879_v36 }
 0xdc6   : > { %v1883_v58 = vadd.f32 %v1882_v22, %v1881_v23 }
 0xdc8   : > { %v1986_v24 = vpack.c.bf16 %v1883_v58, %v1883_v58 }
 0xdca   : > { %2513 = vmatmul.msk.bf16.vlgmr.msra.gmra.mxu0 %vm767_vm0, %v1986_v24 }
 0xdd4   : > { %2060 = vrot.lane.b32.xlu1 %v3670_v49, %s3061_s11  ;;  %s2131_s11 = scalar_lea.hbm %s3792_s18, %s2526_s9 }
 0xdd5   : > { %s2135_s29 = sshll.u32 %s2131_s11, 4  ;;  %s2136_s29 = int_to_ptr.hbm [resolvable:$true] %s2135_s29 }
 0xdd6   : > { %s2969_s19 = sshra.s32 %s2136_s29, 4  ;;  %s2970_s19 = int_to_ptr.hbm [resolvable:$true] %s2969_s19 }
 0xdd7   : > { %s2971_s23 = scalar_lea.hbm %s2970_s19, 8  ;;  %p2976_p7 = scmp.lt.s32.totalorder %s2970_s19, %s3792_s18 }
 0xdd8   : > { %p2972_p1 = scmp.ne.s32.totalorder %s2970_s19, %s2971_s23  ;;  %p2977_p8 = scmp.lt.s32.totalorder %s2975_s6, %s2971_s23 }
 0xdda   : > { %p2973_p5 = pnand %p2972_p1, %p3265_p4  ;;  %p2978_p9 = por %p2977_p8, %p2976_p7 }
 0xddc   : > { %p2974_p12 = pneg %p2973_p5 }
 0xdde   : > { %p2979_p10 = pnand %p2978_p9, %p2974_p12 }
 0xe2e   : > { %v1892_v8 = vpop.xlane.xlu1 %1891 }
 0xe2f   : > { %v1893_v10 = vmul.f32 %v1892_v8, %v3416_v11 }
 0xe31   : > { %v1894_v29 = vadd.f32 1e-05, %v1893_v10 }
 0xe33   : > { %2734 = vrsqrt.f32 %v1894_v29  ;;  %vm1901_vm6 = vweird.f32 %v1894_v29 }
 0xe34   : > { %2736 = vlog2.f32 %v2081_v1 }
 0xe35   : > { %2738 = vlog2.f32 %v2084_v9 }
 0xe39   : > { %v2735_v30 = vpop.eup %2734 }
 0xe3a   : > { %v1896_v32 = vmul.f32 %v2735_v30, %v1894_v29  ;;  %vm1902_vm5 = vweird.f32 %v2735_v30  ;;  %v2737_v12 = vpop.eup %2736 }
 0xe3b   : > { %vm1903_vm7 = vmor %vm1901_vm6, %vm1902_vm5  ;;  %v2739_v63 = vpop.eup %2738  ;;  %v2083_v54 = vmul.f32 0.6931472, %v2737_v12 }
 0xe3c   : > { %v1897_v11 = vmul.f32 %v2735_v30, %v1896_v32 }
 0xe3e   : > { %v1898_v33 = vmul.f32 0.5, %v1897_v11 }
 0xe40   : > { %v1899_v34 = vsub.f32 1.5, %v1898_v33 }
 0xe42   : > { %v1900_v35 = vmul.f32 %v2735_v30, %v1899_v34 }
 0xe44   : > { %v1904_v7 = vsel %vm1903_vm7, %v2735_v30, %v1900_v35 }
 0xe45   : > { %v1905_v38 = vmul.f32 %v1904_v7, %v1888_v4  ;;  %v2086_v4 = vmul.f32 0.6931472, %v2739_v63 }
 0xe46   : > { %v2061_v60 = vpop.permute.xlu1 %2060 }
 0xe47   : > { %v1906_v40 = vmul.f32 %v1905_v38, %v1880_v21  ;;  %v2012_v41 = vpop.f32.mrf.mxu0  ;;  %v2087_v13 = vsub.f32 %v2083_v54, %v2086_v4 }
 0xe48   : > { %v2013_v42 = vadd.f32 %v2012_v41, %v1987_v31 }
 0xe49   : > { %v1907_v39 = vadd.f32 %v1906_v40, %v1882_v22 }
 0xe4a   : > { %v2016_v43 = vmax.f32 %v2013_v42, 0.0 }
 0xe4b   : > { %v1912_v44 = vpack.c.bf16 %v1907_v39, %v1907_v39 }
 0xe4c   : > { %v2022_v45 = vpack.c.bf16 %v2016_v43, %v2016_v43 }
 0xe4d   : > { %2495 = vmatmul.msk.bf16.vlgmr.msra.gmra.mxu3 %vm767_vm0, %v1912_v44 }
 0xe4e   : > { %2522 = vmatmul.msk.bf16.vlgmr.msra.gmra.mxu1 %vm767_vm0, %v2022_v45 }
 0xe4f   : > { %v2014_v46 = vpop.f32.mrf.mxu0 }
 0xecb   : > { %v2048_v52 = vpop.f32.mrf.mxu1 }
 0xecc   : > { %v2049_v53 = vadd.f32 %v2048_v52, %v2023_v51 }
 0xece   : > { %v2052_v50 = vmax.f32 %v2049_v53, 0.0 }
 0xed0   : > { %v2053_v56 = vpack.c.bf16 %v2052_v50, %v2052_v50  ;;  %v1937_v57 = vpop.f32.mrf.mxu3 }
 0xed1   : > { %v1941_v59 = vadd.f32 %v1937_v57, %v1883_v58 }
 0xed2   : > { %2523 = vmatmul.msk.bf16.vlgmr.msrb.gmra.mxu3 %vm767_vm0, %v2053_v56 }
 0xed3   : > { %v1943_v37 = vadd.f32 %v1942_v55, %v1941_v59  ;;  %v2050_v0 = vpop.f32.mrf.mxu1 }
 0xed5   : > { %v1949_v17 = vpack.c.bf16 %v1943_v37, %v1943_v37 }
 0xed7   : > { %2504 = vmatmul.msk.bf16.vlgmr.msra.gmra.mxu2 %vm767_vm0, %v1949_v17 }
 0xed8   : > { %v1939_v3 = vpop.f32.mrf.mxu3 }
 0xf55   : > { %v2075_v62 = vpop.f32.mrf.mxu3 }
 0xf56   : > { %2982 = shalt.err (!%p2979_p10)
}
 0xf57   : > { %2586 = dma.vmem_to_hbm [thread:$0]  (%p3265_p4), %s2134_s3, 128, %s2136_s29, %s2117_s13   ;;  %v2076_v61 = vadd.f32 %v2075_v62, %v2061_v60  ;;  %vm2112_vm11 = vcmask 31744  }
 0xf58   : > { %s3062_s1 = smov 4   ;;  %s3793_s20 = sld [smem:[#allocation32_spill]] }
 0xf59   : > { %v2088_v14 = vadd.f32 %v2087_v13, %v2076_v61 }
 0xf5a   : > { %v1977_v19 = vpop.f32.mrf.mxu2 }
 0xf5b   : > { %v2524_v16 = vmul.f32 -1.442695, %v2088_v14  ;;  %v1978_v28 = vadd.f32 %v3670_v49, %v1977_v19 }
 0xf5d   : > { %2740 = vpow2.f32 %v2524_v16  ;;  %v2077_v20 = vpop.f32.mrf.mxu3 }
 0xf5e   : > { %s743_s11 = scalar_lea.vmem %s3793_s20, %s3323_s14 }
 0xf62   : > { %v1979_v15 = vpop.f32.mrf.mxu2 }
 0xf63   : > { %v2741_v21 = vpop.eup %2740 }
 0xf64   : > { %v2092_v22 = vadd.f32 1.0, %v2741_v21 }
 0xf66   : > { %2742 = vrcp.f32 %v2092_v22  ;;  %v2104_v24 = vand.u32 2147483648, %v2092_v22  ;;  %v2102_v2 = vand.u32 2147483647, %v2092_v22  ;;  %vm2098_vm8 = vweird.f32 %v2092_v22 }
 0xf68   : > { %v2105_v27 = vor.u32 1.1754944e-38, %v2104_v24  ;;  %vm2103_vm10 = vcmp.eq.f32.partialorder %v2102_v2, 8.507059e+37 }
 0xf6c   : > { %v2743_v36 = vpop.eup %2742 }
 0xf6d   : > { %v2094_v23 = vmul.f32 %v2743_v36, %v2092_v22  ;;  %vm2099_vm0 = vweird.f32 %v2743_v36 }
 0xf6e   : > { %vm2100_vm9 = vmor %vm2098_vm8, %vm2099_vm0 }
 0xf6f   : > { %v2095_v58 = vsub.f32 1.0, %v2094_v23 }
 0xf71   : > { %v2096_v25 = vmul.f32 %v2743_v36, %v2095_v58 }
 0xf73   : > { %v2097_v26 = vadd.f32 %v2743_v36, %v2096_v25 }
 0xf75   : > { %v2101_v8 = vsel %vm2100_vm9, %v2743_v36, %v2097_v26 }
 0xf76   : > { %v2106_v10 = vsel %vm2103_vm10, %v2105_v27, %v2101_v8 }
 0xf77   : > { %2109 = vrot.lane.b32.xlu2 %v2106_v10, %s3062_s1 }
 0xfd1   : > { %v2110_v18 = vpop.permute.xlu2 %2109 }
 0xfd2   : > { %v2113_v29 = vsel %vm2112_vm11, %v1978_v28, %v2110_v18 }
 0xfd3   : > { %v2114_v30 = vsel %vm806_vm1, %v2113_v29, 0.0 }
 0xfd4   : > { %2115 = vst [vmem:[%s743_s11] sm:$0xff] %v2114_v30 }
 0xfd5 PF: > { %s2150_s3 = sand.u32 1, %s3021_s24   ;;  %p3794_p4 = scmp.ge.s32.totalorder %s3033_s27, 2 }
 0xfd6   : > { %s2151_s29 = scalar_lea.sflag [#allocation4], %s2150_s3 }
 0xfd7   : > { %p2612_p13 = pnand %p3794_p4, %p3269_p6 }
 0xfd9   : > { %p2613_p11 = pneg %p2612_p13 }
 0xfdb   : > { %3016 = dma.done.wait (%p2613_p11), %s2151_s29, 128  }
 0xfdc   : > { %3018 = vsyncadd (%p2613_p11), %s2151_s29, 4294967168  ;;  %p34_p0 = scmp.ge.s32.totalorder %s3239_s28, 4   ;;  %s3795_s24 = smov %s3025_s25 }
 0xfdd   : > { %s3796_s25 = smov %s3029_s26  ;;  %s3797_s26 = smov %s3250_s0 }
 0xfde   : > { %s3798_s27 = smov %s3239_s28  ;;  %36 = sbr.rel (!%p34_p0) target bundleno = 22 (0x16), region = 182 }
 0xfe3   :  { %2164 = vsyncpa [#allocation3], 1 }
 0xfe4   :  { %2166 = vsyncpa [#allocation3 + $0x1], 1 }
 0xfe5   :  { %2167 = vsyncpa [#allocation6], 1 }
 0xfe6   :  { %2168 = vsyncpa [#allocation9], 1 }
 0xfe7   :  { %2169 = vsyncpa [#allocation12], 1 }
 0xfe8   :  { %2170 = vsyncpa [#allocation4], 1 }
 0xfe9   :  { %2172 = vsyncpa [#allocation4 + $0x1], 1 }

// kernel: run.2
= control target key start
LH: loop header
LB: loop body
LE: loop exit
PB: predicated region body
PF: predicated region fallthrough
CT: control target
= control target key end

     0   :  { %s3611_s0 = inlined_call_operand.vmem [shape: f32[2,8,32], index: 0, kind: input, shape index: {}]   ;;  %s3612_s1 = inlined_call_operand.hbm [shape: f32[2,8,32], index: 1, kind: input, shape index: {}]   ;;  %s3613_s2 = inlined_call_operand.vmem [shape: bf16[2,64,32], index: 2, kind: input, shape index: {}]   ;;  %s3614_s3 = inlined_call_operand.hbm [shape: bf16[32,96], index: 3, kind: input, shape index: {}]   ;;  %s3615_s4 = inlined_call_operand.hbm [shape: bf16[32,64], index: 4, kind: input, shape index: {}]   ;;  %s3616_s5 = inlined_call_operand.vmem [shape: bf16[4,32,32], index: 5, kind: input, shape index: {}]   ;;  %s3617_s6 = inlined_call_operand.hbm [shape: bf16[32,64], index: 6, kind: input, shape index: {}]   ;;  %s3618_s7 = inlined_call_operand.hbm [shape: bf16[64,32], index: 7, kind: input, shape index: {}]   ;;  %s3619_s8 = inlined_call_operand.vmem [shape: f32[1,64], index: 8, kind: input, shape index: {}]   ;;  %s3620_s9 = inlined_call_operand.hbm [shape: f32[16,32], index: 9, kind: input, shape index: {}]   ;;  %s3621_s10 = inlined_call_operand.vmem [shape: f32[2,1,64], index: 10, kind: input, shape index: {}]   ;;  %s3622_s11 = inlined_call_operand.vmem [shape: f32[2,8,4], index: 11, kind: input, shape index: {}]   ;;  %s3623_s12 = inlined_call_operand.vmem [shape: bf16[32,8], index: 12, kind: input, shape index: {}]   ;;  %s3624_s13 = inlined_call_operand.vmem [shape: f32[1,8], index: 13, kind: input, shape index: {}]   ;;  %s3625_s14 = inlined_call_operand.hbm [shape: bf16[3,32,32], index: 14, kind: input, shape index: {}]   ;;  %s3626_s15 = inlined_call_operand.vmem [shape: f32[5,32], index: 15, kind: input, shape index: {}]   ;;  %s3627_s16 = inlined_call_operand.vmem [shape: f32[2,8,32], index: 16, kind: output, shape index: {0}]   ;;  %s3628_s17 = inlined_call_operand.vmem [shape: f32[2,8,128], index: 17, kind: output, shape index: {1}]  }
   0x1   :  { %3635 = sst [smem:[#allocation17_spill]] %s3611_s0 }
   0x2   :  { %3636 = sst [smem:[#allocation18_spill]] %s3612_s1 }
   0x3   :  { %3637 = sst [smem:[#allocation19_spill]] %s3614_s3 }
   0x4   :  { %3638 = sst [smem:[#allocation20_spill]] %s3617_s6 }
   0x5   :  { %3639 = sst [smem:[#allocation21_spill]] %s3620_s9 }
   0x6   :  { %3640 = sst [smem:[#allocation22_spill]] %s3622_s11 }
   0x7   :  { %3641 = sst [smem:[#allocation23_spill]] %s3623_s12 }
   0x8   :  { %3642 = sst [smem:[#allocation24_spill]] %s3624_s13 }
   0x9   :  { %3643 = sst [smem:[#allocation25_spill]] %s3626_s15 }
   0xa   :  { %3644 = sst [smem:[#allocation26_spill]] %s3628_s17 }
   0xb   :  { %23 = vsyncpa [#allocation3], 0 }
   0xc   :  { %25 = vsyncpa [#allocation3 + $0x1], 0 }
   0xd   :  { %26 = vsyncpa [#allocation5], 0 }
   0xe   :  { %27 = vsyncpa [#allocation8], 0 }
   0xf   :  { %28 = vsyncpa [#allocation11], 0  ;;  %s3091_s24 = smov 0   ;;  %s3093_s25 = smov 0  }
  0x10   :  { %s3095_s26 = smov 0   ;;  %s3097_s27 = smov 0  }
  0x11 LB: > { %s3645_s3 = sld [smem:[#allocation19_spill]]  ;;  %s3115_s30 = sadd.s32 4294967295, %s2971_s27   ;;  %s2971_s27 = sphi %s3097_s27, %s3665_s27   ;;  %s2967_s26 = sphi %s3095_s26, %s3664_s26   ;;  %s2963_s25 = sphi %s3093_s25, %s3663_s25   ;;  %s2959_s24 = sphi %s3091_s24, %s3662_s24  }
  0x12   : > { %p2315_p0 = scmp.ge.s32.totalorder %s2971_s27, 1  ;;  %p81_p1 = scmp.eq.s32.totalorder %s3115_s30, 0 }
  0x13   : > { %p452_p2 = scmp.lt.s32.totalorder %s2971_s27, 3  ;;  %s2973_s19 = smov [#allocation4]  }
  0x14   : > { %s465_s1 = sshll.u32 %s2973_s19, 4  ;;  %s3647_s6 = sld [smem:[#allocation20_spill]]  ;;  %s466_s1 = int_to_ptr.vmem [resolvable:$true] %s465_s1 }
  0x15   : > { %p3120_p3 = pnand %p2315_p0, %p452_p2  ;;  %s3649_s9 = sld [smem:[#allocation21_spill]] }
  0x16   : > { %s2975_s11 = smov 64   ;;  %s2976_s13 = smov 4  }
  0x17   : > { %s463_s0 = sshll.u32 %s3645_s3, 4  ;;  %p2563_p4 = pneg %p3120_p3  ;;  %s464_s0 = int_to_ptr.hbm [resolvable:$true] %s463_s0 }
  0x18   : > { %s2974_s3 = smov [#allocation7]   ;;  %s2977_s20 = smov [#allocation10]  }
  0x19   : > { %p3131_p5 = pnand %p2563_p4, %p81_p1  ;;  %s496_s17 = sshll.u32 %s2974_s3, 4  ;;  %s497_s17 = int_to_ptr.vmem [resolvable:$true] %s496_s17 }
  0x1a   : > { %s494_s22 = sshll.u32 %s3647_s6, 4  ;;  %s527_s21 = sshll.u32 %s2977_s20, 4  ;;  %s495_s22 = int_to_ptr.hbm [resolvable:$true] %s494_s22  ;;  %s528_s21 = int_to_ptr.vmem [resolvable:$true] %s527_s21 }
  0x1b   : > { %s525_s19 = sshll.u32 %s3649_s9, 4  ;;  %s477_s29 = sshll.u32 %s3615_s4, 4  ;;  %s526_s19 = int_to_ptr.hbm [resolvable:$true] %s525_s19  ;;  %s478_s29 = int_to_ptr.hbm [resolvable:$true] %s477_s29 }
  0x1c   : > { %2566 = dma.hbm_to_vmem [thread:$0]  (!%p3131_p5), %s464_s0, 256, %s466_s1, [#allocation5], %s2975_s11, %s2975_s11, %s2976_s13  }
  0x1d   : > { %2572 = dma.hbm_to_vmem [thread:$0]  (!%p3131_p5), %s495_s22, 256, %s497_s17, [#allocation8], %s2975_s11, %s2975_s11, %s2976_s13  }
  0x1e   : > { %s2978_s6 = smov 128   ;;  %s2979_s9 = smov 8  }
  0x1f   : > { %2578 = dma.hbm_to_vmem [thread:$0]  (!%p3131_p5), %s526_s19, 256, %s528_s21, [#allocation11], %s2978_s6, %s2978_s6, %s2979_s9  }
  0x20   : > { %s2980_s0 = smov [#allocation6]   ;;  %s508_s17 = sshll.u32 %s3618_s7, 4  ;;  %s509_s17 = int_to_ptr.hbm [resolvable:$true] %s508_s17 }
  0x21   : > { %s479_s1 = sshll.u32 %s2980_s0, 4  ;;  %s545_s22 = sshll.u32 %s3625_s14, 4  ;;  %s480_s1 = int_to_ptr.vmem [resolvable:$true] %s479_s1  ;;  %s546_s22 = int_to_ptr.hbm [resolvable:$true] %s545_s22 }
  0x22   : > { %2569 = dma.hbm_to_vmem [thread:$0]  (!%p3131_p5), %s478_s29, 256, %s480_s1, [#allocation5], %s2975_s11, %s2975_s11, %s2976_s13  }
  0x23   : > { %s2981_s12 = smov [#allocation9]   ;;  %s2982_s19 = smov [#allocation12]  }
  0x24   : > { %s510_s15 = sshll.u32 %s2981_s12, 4  ;;  %s547_s20 = sshll.u32 %s2982_s19, 4  ;;  %s511_s15 = int_to_ptr.vmem [resolvable:$true] %s510_s15  ;;  %s548_s20 = int_to_ptr.vmem [resolvable:$true] %s547_s20 }
  0x25   : > { %2575 = dma.hbm_to_vmem [thread:$0]  (!%p3131_p5), %s509_s17, 512, %s511_s15, [#allocation8], %s2975_s11, %s2975_s11, %s2976_s13  }
  0x26   : > { %2581 = dma.hbm_to_vmem [thread:$0]  (!%p3131_p5), %s546_s22, 768, %s548_s20, [#allocation11], %s2975_s11, %s2975_s11, %s2976_s13  }
  0x27   : > { %s3175_s21 = sadd.s32 1, %s2971_s27   ;;  %s67_s3 = sadd.s32 1, %s2967_s26 }
  0x28   : > { %s64_s28 = ssub.s32 %s2971_s27, %s3175_s21  ;;  %p74_p7 = scmp.ne.s32.totalorder %s2967_s26, %s2963_s25 }
  0x29   : > { %p65_p6 = scmp.eq.s32.totalorder %s64_s28, 0  ;;  %p75_p8 = scmp.eq.s32.totalorder %s2971_s27, 0 }
  0x2a   : > { %p80_p9 = scmp.ne.s32.totalorder %s2963_s25, %s2959_s24  ;;  %p2592_p11 = scmp.lt.s32.totalorder %s2971_s27, 2 }
  0x2b   : > { %s3186_s29 = scalar_select %p65_p6, %s2967_s26, %s67_s3  }
  0x2c   : > { %p3190_p10 = por %p81_p1, %p80_p9  ;;  %s571_s23 = sand.u32 1, %s2967_s26  }
  0x2d   : > { %s2324_s1 = sshll.u32 %s2971_s27, 3  ;;  %p76_p12 = por %p75_p8, %p74_p7 }
  0x2e   : > { %s2323_s11 = sshll.u32 %s571_s23, 3  ;;  %s3651_s6 = sld [smem:[#allocation18_spill]] }
  0x2f   : > { %s575_s12 = scalar_lea.vmem [#allocation2], %s2323_s11  ;;  %p3200_p13 = pnand %p2592_p11, %p76_p12 }
  0x30   : > { %s583_s15 = sshll.u32 %s575_s12, 4  ;;  %s572_s19 = scalar_lea.sflag [#allocation3], %s571_s23  ;;  %s584_s15 = int_to_ptr.vmem [resolvable:$true] %s583_s15 }
  0x31   : > { %p2899_p2 = pneg %p3200_p13 }
  0x34   : > { %s579_s9 = scalar_lea.hbm %s3651_s6, %s2324_s1  ;;  %s2902_s1 = scalar_lea.hbm %s3651_s6, 16 }
  0x35   : > { %s581_s22 = sshll.u32 %s579_s9, 4  ;;  %s582_s22 = int_to_ptr.hbm [resolvable:$true] %s581_s22 }
  0x36   : > { %s2895_s20 = sshra.s32 %s582_s22, 4  ;;  %s2896_s20 = int_to_ptr.hbm [resolvable:$true] %s2895_s20 }
  0x37   : > { %s2897_s27 = scalar_lea.hbm %s2896_s20, 8  ;;  %p2903_p6 = scmp.lt.s32.totalorder %s2896_s20, %s3651_s6 }
  0x38   : > { %p2898_p0 = scmp.ne.s32.totalorder %s2896_s20, %s2897_s27  ;;  %p2904_p7 = scmp.lt.s32.totalorder %s2902_s1, %s2897_s27 }
  0x3a   : > { %p2900_p4 = pnand %p2899_p2, %p2898_p0  ;;  %p2905_p8 = por %p2904_p7, %p2903_p6 }
  0x3c   : > { %p2901_p5 = pneg %p2900_p4 }
  0x3e   : > { %p2906_p9 = pnand %p2905_p8, %p2901_p5 }
  0x40   : > { %2909 = shalt.err (!%p2906_p9)
}
  0x41   : > { %2585 = dma.hbm_to_vmem [thread:$0]  (!%p3200_p13), %s582_s22, 128, %s584_s15, %s572_s19  }
  0x42   : > { %613 = sbr.rel (%p3120_p3) target bundleno = 4043 (0xfcb), region = 84  ;;  %s615_s23 = sand.u32 (!%p3120_p3), 1, %s2963_s25  }
  0x43   : > { %s2326_s17 = sshll.u32 (!%p3120_p3), %s615_s23, 3  ;;  %s616_s9 = scalar_lea.sflag (!%p3120_p3), [#allocation3], %s615_s23 }
  0x44   : > { %s619_s12 = scalar_lea.vmem (!%p3120_p3), [#allocation2], %s2326_s17 }
  0x47   : > { %2942 = dma.done.wait (%p3190_p10), %s616_s9, 128  }
  0x48   : > { %2944 = vsyncadd (%p3190_p10), %s616_s9, 4294967168 }
  0x49   : > { %2946 = dma.done.wait (%p81_p1), [#allocation5], 512  }
  0x4a   : > { %2948 = vsyncadd (%p81_p1), [#allocation5], 4294966784 }
  0x4b   : > { %2950 = dma.done.wait (%p81_p1), [#allocation8], 768  }
  0x4c   : > { %2952 = vsyncadd (%p81_p1), [#allocation8], 4294966528 }
  0x4d   : > { %2954 = dma.done.wait (%p81_p1), [#allocation11], 1024  }
  0x4e   : > { %2956 = vsyncadd (%p81_p1), [#allocation11], 4294966272  ;;  %p720_p3 = scmp.lt.s32.totalorder %s3115_s30, 1  ;;  %s3653_s15 = sld [smem:[#allocation17_spill]]  ;;  %v2508_v0 = vld [vmem:[#allocation4 + $0x8] sm:$0xff]  ;;  %v3246_v2 = vld [vmem:[%s619_s12] sm:$0xff] }
  0x4f   : > { %v3248_v3 = vld [vmem:[#allocation10] sm:$0xff]  ;;  %777 = vmatpush.bf16.msra.mxu0 %v2508_v0  ;;  %v2507_v4 = vld [vmem:[#allocation4] sm:$0xff]  ;;  %s2983_s19 = smov 32   ;;  %vm767_vm0 = vcmask 261120   ;;  %s3633_s20 = smov 72   ;;  %vm806_vm1 = vcmask 64512  }
  0x50   : > { %s3667_s30 = smov (!%p720_p3, %s3115_s30), 1  ;;  %v786_v6 = vperm.slane %v3248_v3, 1  ;;  %v784_v9 = vperm.slane %v3248_v3, 0  ;;  %s2985_s27 = smov 88   ;;  %v792_v20 = vperm.slane %v3248_v3, 2  ;;  %vm846_vm2 = vcmask 1043456  }
  0x51   : > { %s3238_s18 = sshll.u32 %s3667_s30, 3  ;;  %s2986_s28 = smov 96   ;;  %vm1047_vm3 = vcmask 130048   ;;  %vm1049_vm4 = vcmask 195584   ;;  %vm1331_vm9 = vcmask 523264  }
  0x52   : > { %788 = vrot.lane.b32.xlu0 %v786_v6, %s2983_s19  ;;  %s2987_s3 = smov 104   ;;  %s2988_s1 = smov 120  }
  0x53   : > { %778 = vmatpush.bf16.msra.mxu0 %v2507_v4  ;;  %s2989_s11 = smov 80   ;;  %s2990_s13 = smov 112  }
  0x54   : > { %s723_s24 = scalar_lea.vmem %s3653_s15, %s3238_s18  ;;  %s2991_s23 = smov 64  }
  0x55   : > { %v3244_v1 = vld [vmem:[%s723_s24] sm:$0xff]  ;;  %s2992_s17 = smov 40   ;;  %s2993_s9 = smov 56  }
  0x56   : > { %v749_v5 = vadd.f32 %v3246_v2, %v3244_v1  ;;  %s2994_s12 = smov 48   ;;  %s3631_s0 = smov 8  }
  0x57   : > { %s3632_s22 = smov 16   ;;  %s2997_s15 = smov 24  }
  0x58   : > { %v754_v7 = vpack.c.bf16 %v749_v5, %v749_v5 }
  0x5a   : > { %2347 = vmatmul.msk.bf16.vlgmr.msra.gmra.mxu0 %vm767_vm0, %v754_v7 }
  0xc4   : > { %v789_v8 = vpop.permute.xlu0 %788 }
  0xd7   : > { %v780_v10 = vpop.f32.mrf.mxu0 }
  0xd8   : > { %v791_v11 = vadd.f32 %v789_v8, %v780_v10  ;;  %v785_v12 = vadd.f32 %v784_v9, %v780_v10 }
  0xda   : > { %v799_v13 = vpack.c.bf16 %v791_v11, %v791_v11  ;;  %v798_v15 = vpack.c.bf16 %v785_v12, %v785_v12 }
  0xdc   : > { %v802_v14 = vunpack.c.l.b16 %v799_v13  ;;  %v864_v18 = vunpack.c.l.b16 %v798_v15 }
  0xde   : > { %v803_v16 = vpack.c.b16 %v802_v14, %v802_v14  ;;  %v865_v19 = vpack.c.b16 %v864_v18, %v864_v18 }
  0xdf   : > { %v782_v17 = vpop.f32.mrf.mxu0 }
  0xe0   : > { %980 = vrot.lane.b32.xlu2 %v803_v16, %s3633_s20  ;;  %868 = vrot.lane.b32.xlu1 %v803_v16, %s2985_s27 }
  0xe1   : > { %804 = vrot.lane.b32.xlu0 %v803_v16, %s2986_s28 }
  0xe8   : > { %978 = vrot.lane.b32.xlu2 %v865_v19, %s2987_s3  ;;  %866 = vrot.lane.b32.xlu1 %v865_v19, %s2988_s1 }
  0xe9   : > { %924 = vrot.lane.b32.xlu0 %v803_v16, %s2989_s11 }
  0xf0   : > { %922 = vrot.lane.b32.xlu1 %v865_v19, %s2990_s13 }
  0xf1   : > { %794 = vrot.lane.b32.xlu0 %v792_v20, %s2991_s23 }
 0x13a   : > { %v981_v21 = vpop.permute.xlu2 %980 }
 0x13b   : > { %v986_v26 = vsel %vm806_vm1, %v981_v21, 0 }
 0x142   : > { %v979_v31 = vpop.permute.xlu2 %978 }
 0x152   : > { %v869_v22 = vpop.permute.xlu1 %868 }
 0x153   : > { %v805_v23 = vpop.permute.xlu0 %804  ;;  %v874_v24 = vsel %vm806_vm1, %v869_v22, 0 }
 0x154   : > { %v811_v25 = vsel %vm806_vm1, %v805_v23, 0  ;;  %883 = vmatpush.bf16.xpose.msra.mxu3 %v874_v24 }
 0x155   : > { %820 = vmatpush.bf16.xpose.msra.mxu1 %v811_v25 }
 0x15a   : > { %v867_v27 = vpop.permute.xlu1 %866 }
 0x15b   : > { %v925_v28 = vpop.permute.xlu0 %924  ;;  %2350 = vmatmul.msk.bf16.vlgmr.msra.gmra.mxu3 %vm806_vm1, %v867_v27 }
 0x15c   : > { %995 = vmatpush.bf16.xpose.msrb.mxu3 %v986_v26  ;;  %2348 = vmatmul.msk.bf16.vlgmr.msra.gmra.mxu1 %vm806_vm1, %v798_v15  ;;  %v930_v29 = vsel %vm806_vm1, %v925_v28, 0 }
 0x15d   : > { %939 = vmatpush.bf16.xpose.msrb.mxu0 %v930_v29 }
 0x162   : > { %v923_v30 = vpop.permute.xlu1 %922 }
 0x163   : > { %v795_v40 = vpop.permute.xlu0 %794 }
 0x164   : > { %2352 = vmatmul.msk.bf16.vlgmr.msrb.gmra.mxu0 %vm806_vm1, %v923_v30  ;;  %v797_v42 = vadd.f32 %v795_v40, %v780_v10  ;;  %v2510_v40 = vld [vmem:[%s3616_s5 + $0x8] sm:$0xff] }
 0x165   : > { %1078 = vmatpush.bf16.msra.mxu0 %v2510_v40  ;;  %v2512_v40 = vld [vmem:[%s3616_s5 + $0x18] sm:$0xff] }
 0x166   : > { %v800_v44 = vpack.c.bf16 %v797_v42, %v797_v42  ;;  %v2518_v42 = vld [vmem:[#allocation6 + $0x8] sm:$0xff] }
 0x167   : > { %1217 = vmatpush.bf16.msra.mxu3 %v2518_v42 }
 0x168   : > { %v839_v46 = vunpack.c.l.b16 %v800_v44 }
 0x16a   : > { %v840_v48 = vpack.c.b16 %v839_v46, %v839_v46 }
 0x16b   : > { %2354 = vmatmul.msk.bf16.vlgmr.msrb.gmra.mxu3 %vm806_vm1, %v979_v31 }
 0x1d9   : > { %v822_v32 = vpop.f32.mrf.mxu1 }
 0x1da   : > { %v826_v33 = vsel %vm806_vm1, %v822_v32, -inf }
 0x1db   : > { %827 = vmax.xlane.f32.xlu2 %v826_v33 }
 0x1de   : > { %v885_v34 = vpop.f32.mrf.mxu3 }
 0x1df   : > { %v889_v35 = vsel %vm806_vm1, %v885_v34, -inf }
 0x1e0   : > { %890 = vmax.xlane.f32.xlu1 %v889_v35 }
 0x1e1   : > { %v824_v36 = vpop.f32.mrf.mxu1  ;;  %v941_v37 = vpop.f32.mrf.mxu0 }
 0x1e2   : > { %v945_v38 = vsel %vm806_vm1, %v941_v37, -inf }
 0x1e3   : > { %946 = vmax.xlane.f32.xlu2 %v945_v38 }
 0x1e6   : > { %v887_v39 = vpop.f32.mrf.mxu3 }
 0x1e9   : > { %v943_v41 = vpop.f32.mrf.mxu0 }
 0x1ea   : > { %v2509_v41 = vld [vmem:[%s3616_s5] sm:$0xff] }
 0x1eb   : > { %1079 = vmatpush.bf16.msra.mxu0 %v2509_v41  ;;  %v2511_v41 = vld [vmem:[%s3616_s5 + $0x10] sm:$0xff] }
 0x1ee   : > { %v997_v43 = vpop.f32.mrf.mxu3 }
 0x1ef   : > { %v1001_v45 = vsel %vm806_vm1, %v997_v43, -inf }
 0x1f0   : > { %1002 = vmax.xlane.f32.xlu0 %v1001_v45 }
 0x1f6   : > { %v999_v47 = vpop.f32.mrf.mxu3 }
 0x1f9   : > { %841 = vrot.lane.b32.xlu1 %v840_v48, %s2991_s23  ;;  %s3660_s23 = sld [smem:[#allocation22_spill]] }
 0x201   : > { %1013 = vrot.lane.b32.xlu1 %v840_v48, %s2992_s17  ;;  %s731_s17 = scalar_lea.vmem %s3621_s10, %s3667_s30 }
 0x204   : > { %901 = vrot.lane.b32.xlu0 %v840_v48, %s2993_s9 }
 0x20c   : > { %957 = vrot.lane.b32.xlu0 %v840_v48, %s2994_s12  ;;  %s2506_s12 = sshll.u32 %s3667_s30, 5  ;;  %s3654_s30 = smov 72  }
 0x20d   : > { %s3303_s20 = scalar_lea.vmem %s3613_s2, %s2506_s12 }
 0x20e   : > { %v2513_v44 = vld [vmem:[%s3303_s20] sm:$0xff] }
 0x24e   : > { %v828_v49 = vpop.xlane.xlu2 %827 }
 0x24f   : > { %v829_v50 = vsub.f32 %v822_v32, %v828_v49 }
 0x251   : > { %v830_v51 = vmul.f32 1.442695, %v829_v50 }
 0x253   : > { %2662 = vpow2.f32 %v830_v51  ;;  %v891_v52 = vpop.xlane.xlu1 %890 }
 0x254   : > { %v892_v53 = vsub.f32 %v885_v34, %v891_v52  ;;  %v2514_v52 = vld [vmem:[%s3303_s20 + $0x8] sm:$0xff] }
 0x256   : > { %v893_v54 = vmul.f32 1.442695, %v892_v53  ;;  %v947_v59 = vpop.xlane.xlu2 %946  ;;  %v2515_v53 = vld [vmem:[%s3303_s20 + $0x10] sm:$0xff] }
 0x257   : > { %v948_v62 = vsub.f32 %v941_v37, %v947_v59 }
 0x258   : > { %2664 = vpow2.f32 %v893_v54  ;;  %v1056_v54 = vperm.slane %v3248_v3, 3 }
 0x259   : > { %v2663_v55 = vpop.eup %2662  ;;  %v949_v0 = vmul.f32 1.442695, %v948_v62  ;;  %v2998_v62 = vmov 32.0  }
 0x25a   : > { %v832_v56 = vsel %vm806_vm1, %v2663_v55, 0.0 }
 0x25b   : > { %833 = vadd.xlane.f32.xlu2 %v832_v56 }
 0x25e   : > { %v2665_v57 = vpop.eup %2664 }
 0x25f   : > { %v895_v58 = vsel %vm806_vm1, %v2665_v57, 0.0 }
 0x263   : > { %896 = vadd.xlane.f32.xlu2 %v895_v58  ;;  %v1003_v60 = vpop.xlane.xlu0 %1002 }
 0x264   : > { %v1004_v61 = vsub.f32 %v997_v43, %v1003_v60  ;;  %v2517_v43 = vld [vmem:[#allocation6] sm:$0xff] }
 0x265   : > { %1218 = vmatpush.bf16.msra.mxu3 %v2517_v43 }
 0x266   : > { %v1005_v63 = vmul.f32 1.442695, %v1004_v61 }
 0x268   : > { %2666 = vpow2.f32 %v1005_v63  ;;  %2402 = vmatmul.msk.bf16.vlgmr.msra.gmra.mxu3 %vm767_vm0, %v2513_v44  ;;  %v2516_v63 = vld [vmem:[%s3303_s20 + $0x18] sm:$0xff]  ;;  %s2999_s20 = smov 124  }
 0x269   : > { %2668 = vpow2.f32 %v949_v0 }
 0x26b   : > { %v842_v4 = vpop.permute.xlu1 %841 }
 0x26c   : > { %v848_v5 = vsel %vm846_vm2, %v842_v4, 0 }
 0x26d   : > { %857 = vmatpush.bf16.msra.mxu2 %v848_v5 }
 0x26e   : > { %v2667_v6 = vpop.eup %2666 }
 0x26f   : > { %v1007_v7 = vsel %vm806_vm1, %v2667_v6, 0.0  ;;  %v2669_v8 = vpop.eup %2668 }
 0x270   : > { %1008 = vadd.xlane.f32.xlu2 %v1007_v7  ;;  %v951_v11 = vsel %vm806_vm1, %v2669_v8, 0.0 }
 0x273   : > { %v1014_v17 = vpop.permute.xlu1 %1013 }
 0x274   : > { %v1019_v20 = vsel %vm846_vm2, %v1014_v17, 0 }
 0x276   : > { %v902_v9 = vpop.permute.xlu0 %901 }
 0x277   : > { %v907_v10 = vsel %vm846_vm2, %v902_v9, 0  ;;  %v1240_v9 = vperm.slane %v3248_v3, 5 }
 0x278   : > { %916 = vmatpush.bf16.msrb.mxu2 %v907_v10  ;;  %952 = vadd.xlane.f32.xlu2 %v951_v11 }
 0x279   : > { %2403 = vmatmul.msk.bf16.gmra.mxu3 %vm767_vm0, %v2514_v52 }
 0x27e   : > { %v958_v12 = vpop.permute.xlu0 %957 }
 0x27f   : > { %v963_v13 = vsel %vm846_vm2, %v958_v12, 0 }
 0x280   : > { %972 = vmatpush.bf16.msrb.mxu1 %v963_v13 }
 0x284   : > { %1148 = vmatpush.bf16.msra.mxu1 %v2512_v40 }
 0x288   : > { %1149 = vmatpush.bf16.msra.mxu1 %v2511_v41 }
 0x289   : > { %2404 = vmatmul.msk.bf16.gmra.mxu3 %vm767_vm0, %v2515_v53 }
 0x299   : > { %2405 = vmatmul.msk.bf16.gmra.mxu3 %vm767_vm0, %v2516_v63  ;;  %v3380_v63 = vld [vmem:[#allocation10 + $0x8] sm:$0xff] }
 0x2ce   : > { %v834_v14 = vpop.xlane.xlu2 %833 }
 0x2cf   : > { %2670 = vrcp.f32 %v834_v14 }
 0x2d5   : > { %v2671_v15 = vpop.eup %2670 }
 0x2d6   : > { %v836_v16 = vmul.f32 %v2671_v15, %v2663_v55  ;;  %v897_v18 = vpop.xlane.xlu2 %896 }
 0x2d7   : > { %2672 = vrcp.f32 %v897_v18 }
 0x2d8   : > { %v837_v19 = vpack.c.bf16 %v836_v16, %v836_v16 }
 0x2da   : > { %2349 = vmatmul.msk.bf16.vlgmr.msra.gmra.mxu2 %vm806_vm1, %v837_v19 }
 0x2db   : > { %1028 = vmatpush.bf16.msra.mxu2 %v1019_v20 }
 0x2dd   : > { %v2673_v21 = vpop.eup %2672 }
 0x2de   : > { %v899_v23 = vmul.f32 %v2673_v21, %v2665_v57 }
 0x2e0   : > { %v900_v24 = vpack.c.bf16 %v899_v23, %v899_v23 }
 0x2e3   : > { %v1009_v22 = vpop.xlane.xlu2 %1008 }
 0x2e4   : > { %2674 = vrcp.f32 %v1009_v22 }
 0x2ea   : > { %2351 = vmatmul.msk.bf16.vlgmr.msrb.gmra.mxu2 %vm806_vm1, %v900_v24  ;;  %v2675_v26 = vpop.eup %2674 }
 0x2eb   : > { %v953_v25 = vpop.xlane.xlu2 %952  ;;  %v1011_v29 = vmul.f32 %v2675_v26, %v2667_v6  ;;  %v3318_v60 = vpop.f32.mrf.mxu3 }
 0x2ec   : > { %2676 = vrcp.f32 %v953_v25  ;;  %v1241_v25 = vadd.f32 %v1240_v9, %v3318_v60 }
 0x2ed   : > { %v1012_v31 = vpack.c.bf16 %v1011_v29, %v1011_v29  ;;  %2678 = vrcp.f32 %v2998_v62 }
 0x2f2   : > { %v2677_v27 = vpop.eup %2676 }
 0x2f3   : > { %v955_v28 = vmul.f32 %v2677_v27, %v2669_v8  ;;  %v3320_v61 = vpop.f32.mrf.mxu3  ;;  %v2679_v0 = vpop.eup %2678  ;;  %v1267_v27 = vpack.c.bf16 %v1241_v25, %v1241_v25 }
 0x2f4   : > { %v1090_v5 = vmul.f32 32.0, %v2679_v0  ;;  %vm1094_vm5 = vweird.f32 %v2679_v0  ;;  %v1242_v26 = vadd.f32 %v1240_v9, %v3320_v61 }
 0x2f5   : > { %v956_v30 = vpack.c.bf16 %v955_v28, %v955_v28  ;;  %v1291_v29 = vunpack.c.l.b16 %v1267_v27 }
 0x2f6   : > { %v1091_v6 = vsub.f32 1.0, %v1090_v5  ;;  %v1268_v28 = vpack.c.bf16 %v1242_v26, %v1242_v26 }
 0x2f7   : > { %2353 = vmatmul.msk.bf16.vlgmr.msrb.gmra.mxu1 %vm806_vm1, %v956_v30 }
 0x2f8   : > { %v1292_v30 = vunpack.c.l.b16 %v1268_v28 }
 0x2fa   : > { %2355 = vmatmul.msk.bf16.vlgmr.msra.gmra.mxu2 %vm806_vm1, %v1012_v31  ;;  %v3347_v31 = vpack.c.b16 %v1292_v30, %v1291_v29 }
 0x2fc   : > { %v3324_v4 = vpop.f32.mrf.mxu3 }
 0x304   : > { %v3326_v7 = vpop.f32.mrf.mxu3 }
 0x30c   : > { %v3329_v10 = vpop.f32.mrf.mxu3 }
 0x30d   : > { %v1245_v13 = vadd.f32 %v1240_v9, %v3329_v10 }
 0x30f   : > { %v1271_v16 = vpack.c.bf16 %v1245_v13, %v1245_v13 }
 0x311   : > { %v1295_v21 = vunpack.c.l.b16 %v1271_v16 }
 0x314   : > { %v3339_v18 = vpop.f32.mrf.mxu3 }
 0x315   : > { %v1246_v19 = vadd.f32 %v1240_v9, %v3339_v18 }
 0x317   : > { %v1272_v22 = vpack.c.bf16 %v1246_v19, %v1246_v19 }
 0x319   : > { %v1296_v23 = vunpack.c.l.b16 %v1272_v22 }
 0x31b   : > { %v1301_v24 = vpack.c.b16 %v1296_v23, %v1295_v21 }
 0x31c   : > { %v1235_v42 = vpop.f32.mrf.mxu3 }
 0x31d   : > { %v1247_v43 = vadd.f32 %v1240_v9, %v1235_v42  ;;  %v1313_v5 = vsel %vm806_vm1, %v1301_v24, 0 }
 0x35d   : > { %v859_v32 = vpop.f32.mrf.mxu2 }
 0x365   : > { %v861_v33 = vpop.f32.mrf.mxu2 }
 0x366   : > { %v1244_v33 = vadd.f32 %v1240_v9, %v3326_v7 }
 0x36d   : > { %v918_v34 = vpop.f32.mrf.mxu2 }
 0x36e   : > { %1035 = vrot.lane.b32.xlu2 %v918_v34, %s3631_s0 }
 0x374   : > { %v974_v35 = vpop.f32.mrf.mxu1 }
 0x375   : > { %v920_v36 = vpop.f32.mrf.mxu2  ;;  %1039 = vrot.lane.b32.xlu1 %v974_v35, %s3632_s22  ;;  %v1270_v35 = vpack.c.bf16 %v1244_v33, %v1244_v33  ;;  %s3659_s22 = sld [smem:[#allocation24_spill]] }
 0x376   : > { %v1249_v36 = vperm.slane %v3248_v3, 6 }
 0x37c   : > { %v976_v37 = vpop.f32.mrf.mxu1 }
 0x37d   : > { %v1030_v38 = vpop.f32.mrf.mxu2 }
 0x37e   : > { %1043 = vrot.lane.b32.xlu0 %v1030_v38, %s2997_s15  ;;  %v1294_v38 = vunpack.c.l.b16 %v1270_v35 }
 0x385   : > { %v1032_v39 = vpop.f32.mrf.mxu2 }
 0x3c8   : > { %v1036_v45 = vpop.permute.xlu2 %1035 }
 0x3c9   : > { %v1046_v47 = vsel %vm806_vm1, %v859_v32, %v1036_v45  ;;  %v1243_v32 = vadd.f32 %v1240_v9, %v3324_v4 }
 0x3cb   : > { %v1269_v34 = vpack.c.bf16 %v1243_v32, %v1243_v32 }
 0x3cd   : > { %v1293_v37 = vunpack.c.l.b16 %v1269_v34 }
 0x3cf   : > { %v3359_v39 = vpack.c.b16 %v1294_v38, %v1293_v37 }
 0x3d1   : > { %v1310_v16 = vsel %vm806_vm1, %v3359_v39, 0 }
 0x3e7   : > { %v1040_v46 = vpop.permute.xlu1 %1039 }
 0x3e8   : > { %v1048_v48 = vsel %vm1047_vm3, %v1046_v47, %v1040_v46  ;;  %v1273_v46 = vpack.c.bf16 %v1247_v43, %v1247_v43 }
 0x3f0   : > { %v1044_v49 = vpop.permute.xlu0 %1043 }
 0x3f1   : > { %v1050_v50 = vsel %vm1049_vm4, %v1048_v48, %v1044_v49  ;;  %v1237_v48 = vpop.f32.mrf.mxu3 }
 0x3f2   : > { %v1055_v51 = vpack.c.bf16 %v1050_v50, %v1050_v50  ;;  %v1248_v49 = vadd.f32 %v1240_v9, %v1237_v48 }
 0x3f4   : > { %2364 = vmatmul.msk.bf16.vlgmr.msra.gmra.mxu0 %vm767_vm0, %v1055_v51  ;;  %v1297_v51 = vunpack.c.l.b16 %v1273_v46  ;;  %v1274_v52 = vpack.c.bf16 %v1248_v49, %v1248_v49 }
 0x3f6   : > { %v1298_v53 = vunpack.c.l.b16 %v1274_v52 }
 0x471   : > { %v1081_v55 = vpop.f32.mrf.mxu0 }
 0x472   : > { %v1082_v56 = vadd.f32 %v1081_v55, %v1056_v54  ;;  %v3372_v54 = vpack.c.b16 %v1298_v53, %v1297_v51 }
 0x474   : > { %v1085_v57 = vadd.f32 %v1082_v56, %v3244_v1  ;;  %v1092_v1 = vmul.f32 %v2679_v0, %v1091_v6  ;;  %1403 = vrot.lane.b32.xlu2 %v3372_v54, %s2988_s1 }
 0x476   : > { %v1086_v58 = vsel %vm767_vm0, %v1085_v57, 0.0  ;;  %v1093_v8 = vadd.f32 %v2679_v0, %v1092_v1  ;;  %v1115_v1 = vperm.slane %v3380_v63, 2 }
 0x477   : > { %1087 = vadd.xlane.f32.xlu1 %v1086_v58 }
 0x478   : > { %v3331_v11 = vsel %vm1094_vm5, %v2679_v0, %v1093_v8 }
 0x479   : > { %v1083_v59 = vpop.f32.mrf.mxu0 }
 0x47c   : > { %1401 = vrot.lane.b32.xlu2 %v1301_v24, %s2988_s1 }
 0x484   : > { %1481 = vrot.lane.b32.xlu2 %v3372_v54, %s2990_s13 }
 0x48c   : > { %1399 = vrot.lane.b32.xlu2 %v3359_v39, %s2988_s1 }
 0x490   : > { %1479 = vrot.lane.b32.xlu1 %v1301_v24, %s2990_s13 }
 0x494   : > { %1477 = vrot.lane.b32.xlu2 %v3359_v39, %s2990_s13 }
 0x498   : > { %1557 = vrot.lane.b32.xlu1 %v1301_v24, %s2987_s3 }
 0x4a0   : > { %1553 = vrot.lane.b32.xlu1 %v3347_v31, %s2987_s3 }
 0x4a8   : > { %1251 = vrot.lane.b32.xlu1 %v1249_v36, %s2983_s19 }
 0x4ce   : > { %v1404_v38 = vpop.permute.xlu2 %1403 }
 0x4cf   : > { %v1418_v40 = vsel %vm806_vm1, %v1404_v38, 0 }
 0x4d0   : > { %1424 = vmatpush.bf16.xpose.msrb.mxu1 %v1418_v40 }
 0x4d6   : > { %v1402_v41 = vpop.permute.xlu2 %1401 }
 0x4ea   : > { %v1088_v12 = vpop.xlane.xlu1 %1087 }
 0x4eb   : > { %v1096_v14 = vmul.f32 %v3331_v11, %v1088_v12  ;;  %v1117_v12 = vperm.slane %v3380_v63, 3 }
 0x4ed   : > { %v3335_v15 = vsub.f32 %v1085_v57, %v1096_v14  ;;  %v1316_v57 = vsel %vm806_vm1, %v3372_v54, 0 }
 0x4ee   : > { %1322 = vmatpush.bf16.xpose.msrb.mxu2 %v1316_v57 }
 0x4ef   : > { %v1098_v17 = vmul.f32 %v3335_v15, %v3335_v15 }
 0x4f1   : > { %v1099_v20 = vsel %vm767_vm0, %v1098_v17, 0.0 }
 0x4f2   : > { %1100 = vadd.xlane.f32.xlu0 %v1099_v20 }
 0x4f6   : > { %1323 = vmatpush.bf16.xpose.msrb.mxu2 %v1313_v5 }
 0x4fe   : > { %1324 = vmatpush.bf16.xpose.msrb.mxu2 %v1310_v16 }
 0x502   : > { %v3370_v50 = vpop.permute.xlu1 %1479 }
 0x506   : > { %1397 = vrot.lane.b32.xlu0 %v3347_v31, %s2988_s1 }
 0x50a   : > { %v3378_v58 = vpop.permute.xlu1 %1557 }
 0x50b   : > { %v1571_v16 = vsel %vm806_vm1, %v3378_v58, 0  ;;  %v2659_v58 = vld [vmem:[%s731_s17] ss:$0 sm:$0xff]  ;;  %s735_s17 = scalar_lea.vmem %s3660_s23, %s3238_s18 }
 0x50e   : > { %1475 = vrot.lane.b32.xlu0 %v3347_v31, %s2990_s13 }
 0x512   : > { %v3385_v8 = vpop.permute.xlu1 %1553 }
 0x516   : > { %1555 = vrot.lane.b32.xlu0 %v3359_v39, %s2987_s3  ;;  %v1482_v39 = vpop.permute.xlu2 %1481 }
 0x517   : > { %v1496_v43 = vsel %vm806_vm1, %v1482_v39, 0 }
 0x51a   : > { %v3397_v20 = vpop.permute.xlu1 %1251 }
 0x51b   : > { %v1258_v21 = vadd.f32 %v3397_v20, %v3329_v10  ;;  %v1260_v22 = vadd.f32 %v3397_v20, %v1235_v42  ;;  %v1261_v23 = vadd.f32 %v3397_v20, %v1237_v48  ;;  %v1256_v25 = vadd.f32 %v3397_v20, %v3324_v4 }
 0x51c   : > { %v1307_v10 = vsel %vm806_vm1, %v3347_v31, 0  ;;  %v1415_v42 = vsel %vm806_vm1, %v1402_v41, 0  ;;  %v1255_v5 = vadd.f32 %v3397_v20, %v3320_v61 }
 0x51d   : > { %v1279_v26 = vpack.c.bf16 %v1258_v21, %v1258_v21  ;;  %v1277_v28 = vpack.c.bf16 %v1256_v25, %v1256_v25  ;;  %v1281_v32 = vpack.c.bf16 %v1260_v22, %v1260_v22  ;;  %v1282_v33 = vpack.c.bf16 %v1261_v23, %v1261_v23  ;;  %1325 = vmatpush.bf16.xpose.msrb.mxu2 %v1307_v10 }
 0x51e   : > { %1425 = vmatpush.bf16.xpose.msrb.mxu1 %v1415_v42  ;;  %v1565_v22 = vsel %vm806_vm1, %v3385_v8, 0 }
 0x51f   : > { %v1356_v29 = vunpack.c.l.b16 %v1279_v26  ;;  %v1354_v34 = vunpack.c.l.b16 %v1277_v28  ;;  %v1359_v31 = vunpack.c.l.b16 %v1282_v33 }
 0x525   : > { %1502 = vmatpush.bf16.xpose.msra.mxu2 %v1496_v43 }
 0x565   : > { %v1101_v44 = vpop.xlane.xlu0 %1100 }
 0x566   : > { %v1102_v45 = vmul.f32 %v1101_v44, %v3331_v11  ;;  %v1493_v44 = vsel %vm806_vm1, %v3370_v50, 0  ;;  %v1126_v50 = vperm.slane %v3248_v3, 4  ;;  %v1254_v3 = vadd.f32 %v3397_v20, %v3318_v60 }
 0x567   : > { %1503 = vmatpush.bf16.xpose.msra.mxu2 %v1493_v44 }
 0x568   : > { %v1103_v47 = vadd.f32 1e-05, %v1102_v45  ;;  %v1400_v45 = vpop.permute.xlu2 %1399 }
 0x569   : > { %v1412_v46 = vsel %vm806_vm1, %v1400_v45, 0 }
 0x56a   : > { %2680 = vrsqrt.f32 %v1103_v47  ;;  %vm1110_vm7 = vweird.f32 %v1103_v47  ;;  %1426 = vmatpush.bf16.xpose.msrb.mxu1 %v1412_v46 }
 0x570   : > { %v2681_v55 = vpop.eup %2680  ;;  %v1478_v49 = vpop.permute.xlu2 %1477 }
 0x571   : > { %v1105_v56 = vmul.f32 %v2681_v55, %v1103_v47  ;;  %vm1111_vm6 = vweird.f32 %v2681_v55  ;;  %v1490_v51 = vsel %vm806_vm1, %v1478_v49, 0 }
 0x572   : > { %vm1112_vm8 = vmor %vm1110_vm7, %vm1111_vm6  ;;  %1504 = vmatpush.bf16.xpose.msra.mxu2 %v1490_v51 }
 0x573   : > { %v1106_v59 = vmul.f32 %v2681_v55, %v1105_v56 }
 0x575   : > { %v1107_v62 = vmul.f32 0.5, %v1106_v59 }
 0x577   : > { %v1108_v0 = vsub.f32 1.5, %v1107_v62 }
 0x578   : > { %v1398_v47 = vpop.permute.xlu0 %1397 }
 0x579   : > { %v1109_v6 = vmul.f32 %v2681_v55, %v1108_v0  ;;  %v1409_v48 = vsel %vm806_vm1, %v1398_v47, 0 }
 0x57a   : > { %1427 = vmatpush.bf16.xpose.msrb.mxu1 %v1409_v48 }
 0x57b   : > { %v1113_v9 = vsel %vm1112_vm8, %v2681_v55, %v1109_v6  ;;  %v1275_v6 = vpack.c.bf16 %v1254_v3, %v1254_v3 }
 0x57c   : > { %v1114_v13 = vmul.f32 %v1113_v9, %v3335_v15  ;;  %v1259_v15 = vadd.f32 %v3397_v20, %v3339_v18 }
 0x57d   : > { %v1352_v9 = vunpack.c.l.b16 %v1275_v6 }
 0x57e   : > { %v1116_v14 = vmul.f32 %v1115_v1, %v1114_v13  ;;  %v1280_v27 = vpack.c.bf16 %v1259_v15, %v1259_v15  ;;  %v1276_v1 = vpack.c.bf16 %v1255_v5, %v1255_v5 }
 0x580   : > { %v3391_v17 = vadd.f32 %v1117_v12, %v1116_v14  ;;  %v1357_v30 = vunpack.c.l.b16 %v1280_v27  ;;  %v1476_v52 = vpop.permute.xlu0 %1475  ;;  %v1353_v12 = vunpack.c.l.b16 %v1276_v1 }
 0x581   : > { %v1487_v53 = vsel %vm806_vm1, %v1476_v52, 0 }
 0x582   : > { %v1119_v19 = vadd.f32 %v3391_v17, %v3246_v2  ;;  %v1257_v2 = vadd.f32 %v3397_v20, %v3326_v7  ;;  %v3412_v36 = vpack.c.b16 %v1357_v30, %v1356_v29  ;;  %v1358_v7 = vunpack.c.l.b16 %v1281_v32  ;;  %1505 = vmatpush.bf16.xpose.msra.mxu2 %v1487_v53 }
 0x583   : > { %v3460_v13 = vpack.c.b16 %v1353_v12, %v1352_v9 }
 0x584   : > { %v1125_v24 = vpack.c.bf16 %v1119_v19, %v1119_v19  ;;  %v1278_v18 = vpack.c.bf16 %v1257_v2, %v1257_v2  ;;  %1368 = vrot.lane.b32.xlu1 %v3412_v36, %s2986_s28  ;;  %v3422_v37 = vpack.c.b16 %v1359_v31, %v1358_v7 }
 0x586   : > { %2377 = vmatmul.msk.bf16.vlgmr.msra.gmra.mxu1 %vm767_vm0, %v1125_v24  ;;  %v1355_v35 = vunpack.c.l.b16 %v1278_v18 }
 0x588   : > { %v3416_v4 = vpack.c.b16 %v1355_v35, %v1354_v34  ;;  %v1556_v19 = vpop.permute.xlu0 %1555 }
 0x589   : > { %v1568_v21 = vsel %vm806_vm1, %v1556_v19, 0 }
 0x58a   : > { %1366 = vrot.lane.b32.xlu0 %v3416_v4, %s2986_s28 }
 0x58c   : > { %1451 = vrot.lane.b32.xlu1 %v3422_v37, %s2985_s27 }
 0x594   : > { %1447 = vrot.lane.b32.xlu1 %v3416_v4, %s2985_s27 }
 0x59c   : > { %1529 = vrot.lane.b32.xlu1 %v3422_v37, %s2989_s11 }
 0x5a4   : > { %1527 = vrot.lane.b32.xlu1 %v3412_v36, %s2989_s11 }
 0x5f6   : > { %v1369_v23 = vpop.permute.xlu1 %1368 }
 0x5fc   : > { %v1367_v2 = vpop.permute.xlu0 %1366 }
 0x5fe   : > { %v1452_v8 = vpop.permute.xlu1 %1451 }
 0x603   : > { %v1151_v55 = vpop.f32.mrf.mxu1 }
 0x604   : > { %v1152_v56 = vadd.f32 %v1151_v55, %v1126_v50 }
 0x606   : > { %v1266_v57 = vpack.c.bf16 %v1152_v56, %v1152_v56  ;;  %v1448_v18 = vpop.permute.xlu1 %1447 }
 0x608   : > { %v1393_v59 = vunpack.c.l.b16 %v1266_v57  ;;  %2406 = vmatmul.msk.bf16.vlgmr.msrb.gmra.mxu2 %vm806_vm1, %v1266_v57 }
 0x60a   : > { %v1394_v62 = vpack.c.b16 %v1393_v59, %v1393_v59 }
 0x60b   : > { %v1153_v0 = vpop.f32.mrf.mxu1 }
 0x60c   : > { %1395 = vrot.lane.b32.xlu2 %v1394_v62, %s2988_s1  ;;  %s3656_s1 = smov 16  }
 0x60e   : > { %v1530_v51 = vpop.permute.xlu1 %1529 }
 0x614   : > { %1559 = vrot.lane.b32.xlu2 %v3372_v54, %s2987_s3 }
 0x616   : > { %v1528_v55 = vpop.permute.xlu1 %1527 }
 0x61c   : > { %1473 = vrot.lane.b32.xlu2 %v1394_v62, %s2990_s13  ;;  %s3658_s13 = sld [smem:[#allocation23_spill]] }
 0x624   : > { %1551 = vrot.lane.b32.xlu2 %v1394_v62, %s2987_s3 }
 0x62c   : > { %1370 = vrot.lane.b32.xlu2 %v3422_v37, %s2986_s28 }
 0x634   : > { %1364 = vrot.lane.b32.xlu2 %v3460_v13, %s2986_s28  ;;  %s739_s28 = scalar_lea.vmem %s3627_s16, %s3238_s18 }
 0x63c   : > { %1449 = vrot.lane.b32.xlu2 %v3412_v36, %s2985_s27 }
 0x666   : > { %v1396_v54 = vpop.permute.xlu2 %1395 }
 0x667   : > { %2408 = vmatmul.msk.bf16.vlgmr.msrb.gmra.mxu1 %vm806_vm1, %v1396_v54 }
 0x66e   : > { %v1560_v60 = vpop.permute.xlu2 %1559 }
 0x66f   : > { %v1574_v61 = vsel %vm806_vm1, %v1560_v60, 0 }
 0x670   : > { %1580 = vmatpush.bf16.xpose.msra.mxu1 %v1574_v61 }
 0x676   : > { %v1474_v14 = vpop.permute.xlu2 %1473 }
 0x677   : > { %2410 = vmatmul.msk.bf16.vlgmr.msra.gmra.mxu2 %vm806_vm1, %v1474_v14 }
 0x678   : > { %1581 = vmatpush.bf16.xpose.msra.mxu1 %v1571_v16 }
 0x67e   : > { %v1552_v20 = vpop.permute.xlu2 %1551 }
 0x680   : > { %1582 = vmatpush.bf16.xpose.msra.mxu1 %v1568_v21 }
 0x686   : > { %v1371_v15 = vpop.permute.xlu2 %1370 }
 0x687   : > { %1383 = vmatpush.bf16.msrb.mxu0 %v1371_v15 }
 0x688   : > { %1583 = vmatpush.bf16.xpose.msra.mxu1 %v1565_v22 }
 0x68b   : > { %v1327_v24 = vpop.f32.mrf.mxu2  ;;  %1384 = vmatpush.bf16.msrb.mxu0 %v1369_v23 }
 0x68c   : > { %v1328_v25 = vadd.f32 %v2659_v58, %v1327_v24 }
 0x68e   : > { %v1365_v26 = vpop.permute.xlu2 %1364  ;;  %v1332_v27 = vsel %vm1331_vm9, %v1328_v25, -inf }
 0x68f   : > { %1385 = vmatpush.bf16.msrb.mxu0 %v1367_v2  ;;  %2412 = vmatmul.msk.bf16.vlgmr.msra.gmra.mxu1 %vm806_vm1, %v1552_v20 }
 0x690   : > { %1333 = vmax.xlane.f32.xlu0 %v1332_v27 }
 0x693   : > { %v1329_v10 = vpop.f32.mrf.mxu2  ;;  %1386 = vmatpush.bf16.msrb.mxu0 %v1365_v26 }
 0x696   : > { %v1450_v28 = vpop.permute.xlu2 %1449 }
 0x697   : > { %1464 = vmatpush.bf16.msra.mxu0 %v1452_v8 }
 0x69b   : > { %1465 = vmatpush.bf16.msra.mxu0 %v1450_v28 }
 0x69f   : > { %1466 = vmatpush.bf16.msra.mxu0 %v1448_v18 }
 0x6e4   : > { %v1429_v29 = vpop.f32.mrf.mxu1 }
 0x6e5   : > { %v1430_v30 = vadd.f32 %v2659_v58, %v1429_v29 }
 0x6e7   : > { %v1433_v32 = vsel %vm1331_vm9, %v1430_v30, -inf }
 0x6e8   : > { %1434 = vmax.xlane.f32.xlu2 %v1433_v32 }
 0x6ec   : > { %v1431_v33 = vpop.f32.mrf.mxu1 }
 0x6fa   : > { %v1507_v34 = vpop.f32.mrf.mxu2 }
 0x6fb   : > { %v1508_v35 = vadd.f32 %v2659_v58, %v1507_v34 }
 0x6fd   : > { %v1511_v7 = vsel %vm1331_vm9, %v1508_v35, -inf }
 0x6fe   : > { %1512 = vmax.xlane.f32.xlu1 %v1511_v7  ;;  %v2522_v7 = vld [vmem:[%s3616_s5 + $0x38] sm:$0xff] }
 0x6ff   : > { %1734 = vmatpush.bf16.msrb.mxu2 %v2522_v7 }
 0x700   : > { %1445 = vrot.lane.b32.xlu2 %v3460_v13, %s2985_s27  ;;  %s3655_s27 = smov 8  }
 0x702   : > { %v1509_v31 = vpop.f32.mrf.mxu2 }
 0x703   : > { %v1334_v38 = vpop.xlane.xlu0 %1333 }
 0x704   : > { %v1335_v40 = vsub.f32 %v1328_v25, %v1334_v38 }
 0x706   : > { %v1336_v41 = vmul.f32 1.442695, %v1335_v40 }
 0x708   : > { %2682 = vpow2.f32 %v1336_v41 }
 0x70c   : > { %v1585_v42 = vpop.f32.mrf.mxu1 }
 0x70d   : > { %v1586_v44 = vadd.f32 %v2659_v58, %v1585_v42 }
 0x70e   : > { %v2683_v39 = vpop.eup %2682 }
 0x70f   : > { %v1338_v43 = vsel %vm1331_vm9, %v2683_v39, 0.0  ;;  %v1589_v46 = vsel %vm1331_vm9, %v1586_v44, -inf }
 0x710   : > { %1339 = vadd.xlane.f32.xlu0 %v1338_v43 }
 0x714   : > { %v1587_v45 = vpop.f32.mrf.mxu1 }
 0x715   : > { %v2714_v45 = vld [vmem:[#allocation10] sm:$0xff] }
 0x717   : > { %1525 = vrot.lane.b32.xlu1 %v3416_v4, %s2989_s11 }
 0x718   : > { %1590 = vmax.xlane.f32.xlu0 %v1589_v46  ;;  %v1650_v46 = vperm.slane %v2714_v45, 7 }
 0x71f   : > { %1523 = vrot.lane.b32.xlu1 %v3460_v13, %s2989_s11 }
 0x72c   : > { %1607 = vrot.lane.b32.xlu0 %v3422_v37, %s3654_s30 }
 0x75b   : > { %v1435_v47 = vpop.xlane.xlu2 %1434 }
 0x75c   : > { %v1436_v48 = vsub.f32 %v1430_v30, %v1435_v47  ;;  %v2520_v30 = vld [vmem:[%s3616_s5 + $0x28] sm:$0xff] }
 0x75d   : > { %1672 = vmatpush.bf16.msrb.mxu3 %v2520_v30 }
 0x75e   : > { %v1437_v49 = vmul.f32 1.442695, %v1436_v48 }
 0x760   : > { %2684 = vpow2.f32 %v1437_v49 }
 0x763   : > { %v1446_v52 = vpop.permute.xlu2 %1445 }
 0x764   : > { %1467 = vmatpush.bf16.msra.mxu0 %v1446_v52 }
 0x766   : > { %v2685_v53 = vpop.eup %2684 }
 0x767   : > { %v1439_v50 = vsel %vm1331_vm9, %v2685_v53, 0.0 }
 0x768   : > { %1440 = vadd.xlane.f32.xlu0 %v1439_v50 }
 0x771   : > { %v1513_v56 = vpop.xlane.xlu1 %1512 }
 0x772   : > { %v1514_v57 = vsub.f32 %v1508_v35, %v1513_v56  ;;  %v2519_v35 = vld [vmem:[%s3616_s5 + $0x20] sm:$0xff] }
 0x773   : > { %1673 = vmatpush.bf16.msrb.mxu3 %v2519_v35 }
 0x774   : > { %v1515_v59 = vmul.f32 1.442695, %v1514_v57 }
 0x776   : > { %2686 = vpow2.f32 %v1515_v59 }
 0x77c   : > { %v2687_v62 = vpop.eup %2686  ;;  %1603 = vrot.lane.b32.xlu0 %v3416_v4, %s3654_s30 }
 0x77d   : > { %v1517_v37 = vsel %vm1331_vm9, %v2687_v62, 0.0 }
 0x77e   : > { %1518 = vadd.xlane.f32.xlu2 %v1517_v37 }
 0x783   : > { %v1340_v0 = vpop.xlane.xlu0 %1339 }
 0x784   : > { %2688 = vrcp.f32 %v1340_v0  ;;  %1601 = vrot.lane.b32.xlu0 %v3460_v13, %s3654_s30  ;;  %v2524_v0 = vld [vmem:[#allocation7 + $0x8] sm:$0xff] }
 0x789   : > { %v1526_v54 = vpop.permute.xlu1 %1525 }
 0x78a   : > { %v2689_v3 = vpop.eup %2688 }
 0x78b   : > { %v1342_v5 = vmul.f32 %v2689_v3, %v2683_v39  ;;  %v1591_v6 = vpop.xlane.xlu0 %1590  ;;  %v2528_v3 = vld [vmem:[#allocation9 + $0x18] sm:$0xff] }
 0x78c   : > { %v1592_v1 = vsub.f32 %v1586_v44, %v1591_v6  ;;  %v2521_v44 = vld [vmem:[%s3616_s5 + $0x30] sm:$0xff]  ;;  %1820 = vmatpush.bf16.msrb.mxu1 %v2528_v3  ;;  %v2534_v3 = vld [vmem:[#allocation12 + $0x18] sm:$0xff] }
 0x78d   : > { %v1343_v9 = vpack.c.bf16 %v1342_v5, %v1342_v5  ;;  %1735 = vmatpush.bf16.msrb.mxu2 %v2521_v44 }
 0x78e   : > { %v1593_v12 = vmul.f32 1.442695, %v1592_v1  ;;  %v2527_v1 = vld [vmem:[#allocation9 + $0x10] sm:$0xff] }
 0x78f   : > { %2407 = vmatmul.msk.bf16.vlgmr.msrb.gmra.mxu0 %vm1331_vm9, %v1343_v9 }
 0x790   : > { %2690 = vpow2.f32 %v1593_v12  ;;  %1542 = vmatpush.bf16.msrb.mxu0 %v1530_v51  ;;  %1821 = vmatpush.bf16.msrb.mxu1 %v2527_v1  ;;  %v2526_v12 = vld [vmem:[#allocation9 + $0x8] sm:$0xff] }
 0x791   : > { %v1524_v13 = vpop.permute.xlu1 %1523 }
 0x794   : > { %1543 = vmatpush.bf16.msrb.mxu0 %v1528_v55  ;;  %1822 = vmatpush.bf16.msrb.mxu1 %v2526_v12 }
 0x796   : > { %v2691_v4 = vpop.eup %2690  ;;  %1605 = vrot.lane.b32.xlu2 %v3412_v36, %s3654_s30 }
 0x797   : > { %v1595_v60 = vsel %vm1331_vm9, %v2691_v4, 0.0 }
 0x798   : > { %1544 = vmatpush.bf16.msrb.mxu0 %v1526_v54  ;;  %1596 = vadd.xlane.f32.xlu1 %v1595_v60 }
 0x79c   : > { %1545 = vmatpush.bf16.msrb.mxu0 %v1524_v13 }
 0x79e   : > { %v1608_v61 = vpop.permute.xlu0 %1607 }
 0x7db   : > { %v1441_v14 = vpop.xlane.xlu0 %1440 }
 0x7dc   : > { %2692 = vrcp.f32 %v1441_v14 }
 0x7e2   : > { %v2693_v16 = vpop.eup %2692 }
 0x7e3   : > { %v1443_v19 = vmul.f32 %v2693_v16, %v2685_v53  ;;  %v1702_v16 = vperm.slane %v3380_v63, 4 }
 0x7e5   : > { %v1444_v20 = vpack.c.bf16 %v1443_v19, %v1443_v19 }
 0x7e7   : > { %2409 = vmatmul.msk.bf16.vlgmr.msra.gmra.mxu0 %vm1331_vm9, %v1444_v20  ;;  %v1704_v20 = vperm.slane %v3380_v63, 5 }
 0x7e8   : > { %1620 = vmatpush.bf16.msra.mxu0 %v1608_v61 }
 0x7ee   : > { %v1604_v15 = vpop.permute.xlu0 %1603 }
 0x7f1   : > { %v1519_v21 = vpop.xlane.xlu2 %1518 }
 0x7f2   : > { %2694 = vrcp.f32 %v1519_v21 }
 0x7f6   : > { %v1602_v24 = vpop.permute.xlu0 %1601 }
 0x7f8   : > { %v2695_v22 = vpop.eup %2694 }
 0x7f9   : > { %v1521_v36 = vmul.f32 %v2695_v22, %v2687_v62  ;;  %v1606_v23 = vpop.permute.xlu2 %1605 }
 0x7fa   : > { %1621 = vmatpush.bf16.msra.mxu0 %v1606_v23  ;;  %v2525_v23 = vld [vmem:[#allocation9] sm:$0xff] }
 0x7fb   : > { %v1522_v58 = vpack.c.bf16 %v1521_v36, %v1521_v36  ;;  %1823 = vmatpush.bf16.msrb.mxu1 %v2525_v23 }
 0x7fd   : > { %2411 = vmatmul.msk.bf16.vlgmr.msrb.gmra.mxu0 %vm1331_vm9, %v1522_v58  ;;  %v2660_v58 = vld [vmem:[%s3619_s8] ss:$0 sm:$0xff] }
 0x7fe   : > { %1622 = vmatpush.bf16.msra.mxu0 %v1604_v15 }
 0x802   : > { %1623 = vmatpush.bf16.msra.mxu0 %v1602_v24 }
 0x806   : > { %1771 = vmatpush.bf16.msrb.mxu0 %v2524_v0 }
 0x80b   : > { %v1597_v25 = vpop.xlane.xlu1 %1596 }
 0x80c   : > { %2696 = vrcp.f32 %v1597_v25  ;;  %v1388_v2 = vpop.f32.mrf.mxu0 }
 0x812   : > { %v2697_v26 = vpop.eup %2696 }
 0x813   : > { %v1599_v27 = vmul.f32 %v2697_v26, %v2691_v4 }
 0x814   : > { %v1390_v8 = vpop.f32.mrf.mxu0 }
 0x815   : > { %v1600_v10 = vpack.c.bf16 %v1599_v27, %v1599_v27  ;;  %v1788_v8 = vperm.slane %v3380_v63, 1 }
 0x817   : > { %2413 = vmatmul.msk.bf16.vlgmr.msra.gmra.mxu0 %vm1331_vm9, %v1600_v10 }
 0x864   : > { %v1469_v28 = vpop.f32.mrf.mxu0 }
 0x865   : > { %1630 = vrot.lane.b32.xlu0 %v1469_v28, %s3655_s27  ;;  %s3657_s27 = sld [smem:[#allocation25_spill]] }
 0x86c   : > { %v1471_v18 = vpop.f32.mrf.mxu0 }
 0x87a   : > { %v1547_v29 = vpop.f32.mrf.mxu0 }
 0x87b   : > { %1634 = vrot.lane.b32.xlu2 %v1547_v29, %s3656_s1 }
 0x882   : > { %v1549_v32 = vpop.f32.mrf.mxu0 }
 0x894   : > { %v1625_v33 = vpop.f32.mrf.mxu0 }
 0x895   : > { %1638 = vrot.lane.b32.xlu0 %v1625_v33, %s2997_s15 }
 0x89c   : > { %v1627_v34 = vpop.f32.mrf.mxu0 }
 0x8d5   : > { %v1635_v40 = vpop.permute.xlu2 %1634 }
 0x8d7   : > { %v1631_v31 = vpop.permute.xlu0 %1630 }
 0x8d8   : > { %v1641_v38 = vsel %vm806_vm1, %v1388_v2, %v1631_v31 }
 0x8d9   : > { %v1642_v41 = vsel %vm1047_vm3, %v1641_v38, %v1635_v40 }
 0x907   : > { %v1639_v42 = vpop.permute.xlu0 %1638 }
 0x908   : > { %v1643_v39 = vsel %vm1049_vm4, %v1642_v41, %v1639_v42 }
 0x909   : > { %v1649_v43 = vpack.c.bf16 %v1643_v39, %v1643_v39 }
 0x90b   : > { %2426 = vmatmul.msk.bf16.vlgmr.msrb.gmra.mxu3 %vm767_vm0, %v1649_v43 }
 0x98e   : > { %v1675_v47 = vpop.f32.mrf.mxu3 }
 0x98f   : > { %v1676_v48 = vadd.f32 %v1675_v47, %v1650_v46  ;;  %v1852_v46 = vperm.slane %v3380_v63, 6 }
 0x991   : > { %v1711_v49 = vpack.c.bf16 %v1676_v48, %v1676_v48  ;;  %v1679_v51 = vadd.f32 %v1676_v48, %v3391_v17  ;;  %v2523_v17 = vld [vmem:[#allocation7] sm:$0xff] }
 0x992   : > { %1772 = vmatpush.bf16.msrb.mxu0 %v2523_v17 }
 0x993   : > { %2439 = vmatmul.msk.bf16.vlgmr.msrb.gmra.mxu2 %vm767_vm0, %v1711_v49  ;;  %v1680_v52 = vsel %vm767_vm0, %v1679_v51, 0.0  ;;  %v1854_v49 = vperm.slane %v3380_v63, 7 }
 0x994   : > { %1681 = vadd.xlane.f32.xlu1 %v1680_v52 }
 0x996   : > { %v1677_v53 = vpop.f32.mrf.mxu3  ;;  %2009 = vmatpush.bf16.msra.mxu0 %v2534_v3 }
 0xa07   : > { %v1682_v50 = vpop.xlane.xlu1 %1681 }
 0xa08   : > { %v1683_v55 = vmul.f32 %v1682_v50, %v3331_v11 }
 0xa0a   : > { %v1684_v56 = vsub.f32 %v1679_v51, %v1683_v55 }
 0xa0c   : > { %v1685_v57 = vmul.f32 %v1684_v56, %v1684_v56 }
 0xa0e   : > { %v1686_v59 = vsel %vm767_vm0, %v1685_v57, 0.0 }
 0xa0f   : > { %1687 = vadd.xlane.f32.xlu2 %v1686_v59  ;;  %v1712_v59 = vperm.slane %v3380_v63, 0 }
 0xa16   : > { %v3530_v62 = vpop.f32.mrf.mxu2 }
 0xa17   : > { %v1738_v0 = vadd.f32 %v3530_v62, %v1712_v59 }
 0xa19   : > { %v1884_v17 = vsel %vm767_vm0, %v1738_v0, 0.0 }
 0xa1e   : > { %v1739_v37 = vpop.f32.mrf.mxu2 }
 0xa82   : > { %v1688_v5 = vpop.xlane.xlu2 %1687 }
 0xa83   : > { %v1689_v6 = vmul.f32 %v1688_v5, %v3331_v11  ;;  %v2533_v5 = vld [vmem:[#allocation12 + $0x10] sm:$0xff] }
 0xa84   : > { %2010 = vmatpush.bf16.msra.mxu0 %v2533_v5  ;;  %v2079_v5 = vld [vmem:[%s735_s17] sm:$0xff] }
 0xa85   : > { %v1690_v9 = vadd.f32 1e-05, %v1689_v6 }
 0xa87   : > { %2698 = vrsqrt.f32 %v1690_v9  ;;  %vm1697_vm11 = vweird.f32 %v1690_v9 }
 0xa8d   : > { %v2699_v54 = vpop.eup %2698 }
 0xa8e   : > { %v1692_v4 = vmul.f32 %v2699_v54, %v1690_v9  ;;  %vm1698_vm10 = vweird.f32 %v2699_v54 }
 0xa8f   : > { %vm1699_vm12 = vmor %vm1697_vm11, %vm1698_vm10  ;;  %vm2112_vm11 = vcmask 31744  }
 0xa90   : > { %v1693_v60 = vmul.f32 %v2699_v54, %v1692_v4 }
 0xa92   : > { %v1694_v13 = vmul.f32 0.5, %v1693_v60 }
 0xa94   : > { %v1695_v61 = vsub.f32 1.5, %v1694_v13 }
 0xa96   : > { %v1696_v14 = vmul.f32 %v2699_v54, %v1695_v61 }
 0xa98   : > { %v1700_v19 = vsel %vm1699_vm12, %v2699_v54, %v1696_v14 }
 0xa99   : > { %v1701_v21 = vmul.f32 %v1700_v19, %v1684_v56 }
 0xa9b   : > { %v1703_v15 = vmul.f32 %v1702_v16, %v1701_v21  ;;  %v3564_v16 = vld [vmem:[%s3657_s27] sm:$0x1f]  ;;  %s3661_s27 = sld [smem:[#allocation26_spill]] }
 0xa9c   : > { %v1880_v21 = vperm.slane %v3564_v16, 1 }
 0xa9d   : > { %v1705_v22 = vadd.f32 %v1704_v20, %v1703_v15 }
 0xa9f   : > { %v1745_v36 = vpack.c.bf16 %v1705_v22, %v1705_v22 }
 0xaa1   : > { %2448 = vmatmul.msk.bf16.vlgmr.msrb.gmra.mxu0 %vm767_vm0, %v1745_v36  ;;  %s743_s1 = scalar_lea.vmem %s3661_s27, %s3238_s18 }
 0xb1e   : > { %v1774_v24 = vpop.f32.mrf.mxu0 }
 0xb1f   : > { %v1775_v25 = vadd.f32 %v2660_v58, %v1774_v24 }
 0xb21   : > { %v1778_v2 = vmax.f32 %v1775_v25, 0.0  ;;  %v2530_v25 = vld [vmem:[#allocation12 + $0x8] sm:$0xff] }
 0xb22   : > { %1934 = vmatpush.bf16.msra.mxu3 %v2530_v25 }
 0xb23   : > { %v1787_v26 = vpack.c.bf16 %v1778_v2, %v1778_v2  ;;  %v2536_v2 = vld [vmem:[#allocation12 + $0x28] sm:$0xff] }
 0xb24   : > { %2045 = vmatpush.bf16.msra.mxu1 %v2536_v2 }
 0xb25   : > { %2465 = vmatmul.msk.bf16.vlgmr.msrb.gmra.mxu1 %vm1331_vm9, %v1787_v26  ;;  %v2535_v26 = vld [vmem:[#allocation12 + $0x20] sm:$0xff] }
 0xb26   : > { %v1776_v27 = vpop.f32.mrf.mxu0 }
 0xb27   : > { %v2529_v27 = vld [vmem:[#allocation12] sm:$0xff] }
 0xb28   : > { %1935 = vmatpush.bf16.msra.mxu3 %v2529_v27  ;;  %2046 = vmatpush.bf16.msra.mxu1 %v2535_v26 }
 0xba2   : > { %v1825_v10 = vpop.f32.mrf.mxu1 }
 0xba3   : > { %v1826_v28 = vadd.f32 %v1825_v10, %v1788_v8 }
 0xba5   : > { %v1829_v18 = vadd.f32 %v1826_v28, %v1705_v22  ;;  %v1882_v22 = vperm.slane %v3564_v16, 2  ;;  %v2531_v28 = vld [vmem:[%s3658_s13] sm:$0xff] }
 0xba7   : > { %v1830_v29 = vsel %vm767_vm0, %v1829_v18, 0.0 }
 0xba8   : > { %1831 = vadd.xlane.f32.xlu0 %v1830_v29 }
 0xbaa   : > { %v1827_v30 = vpop.f32.mrf.mxu1 }
 0xbbc   : > { %2054 = vrot.lane.b32.xlu0 %v2531_v28, %s2999_s20 }
 0xc1b   : > { %v1832_v32 = vpop.xlane.xlu0 %1831 }
 0xc1c   : > { %v1833_v33 = vmul.f32 %v1832_v32, %v3331_v11 }
 0xc1e   : > { %v1834_v34 = vsub.f32 %v1829_v18, %v1833_v33  ;;  %v2532_v18 = vld [vmem:[%s3658_s13 + $0x8] sm:$0xff] }
 0xc1f   : > { %2056 = vrot.lane.b32.xlu2 %v2532_v18, %s2999_s20  ;;  %1974 = vmatpush.bf16.msra.mxu2 %v2532_v18 }
 0xc20   : > { %v1835_v35 = vmul.f32 %v1834_v34, %v1834_v34 }
 0xc22   : > { %v1836_v7 = vsel %vm767_vm0, %v1835_v35, 0.0 }
 0xc23   : > { %1837 = vadd.xlane.f32.xlu1 %v1836_v7  ;;  %1975 = vmatpush.bf16.msra.mxu2 %v2531_v28 }
 0xc96   : > { %v1838_v31 = vpop.xlane.xlu1 %1837 }
 0xc97   : > { %v1839_v38 = vmul.f32 %v1838_v31, %v3331_v11  ;;  %v1987_v31 = vperm.slane %v3564_v16, 3 }
 0xc99   : > { %v1840_v40 = vadd.f32 1e-05, %v1839_v38 }
 0xc9b   : > { %2700 = vrsqrt.f32 %v1840_v40  ;;  %vm1847_vm14 = vweird.f32 %v1840_v40 }
 0xca1   : > { %v2701_v41 = vpop.eup %2700 }
 0xca2   : > { %v1842_v42 = vmul.f32 %v2701_v41, %v1840_v40  ;;  %vm1848_vm13 = vweird.f32 %v2701_v41 }
 0xca3   : > { %vm1849_vm15 = vmor %vm1847_vm14, %vm1848_vm13 }
 0xca4   : > { %v1843_v39 = vmul.f32 %v2701_v41, %v1842_v42 }
 0xca6   : > { %v1844_v43 = vmul.f32 0.5, %v1843_v39 }
 0xca8   : > { %v1845_v44 = vsub.f32 1.5, %v1844_v43 }
 0xcaa   : > { %v1846_v45 = vmul.f32 %v2701_v41, %v1845_v44 }
 0xcac   : > { %v1850_v47 = vsel %vm1849_vm15, %v2701_v41, %v1846_v45 }
 0xcad   : > { %v1851_v48 = vmul.f32 %v1850_v47, %v1834_v34  ;;  %v2057_v47 = vpop.permute.xlu2 %2056 }
 0xcae   : > { %2072 = vmatpush.bf16.msrb.mxu3 %v2057_v47 }
 0xcaf   : > { %v1853_v51 = vmul.f32 %v1852_v46, %v1851_v48  ;;  %v2055_v48 = vpop.permute.xlu0 %2054 }
 0xcb1   : > { %v1855_v52 = vadd.f32 %v1854_v49, %v1853_v51  ;;  %v2661_v49 = vld [vmem:[%s3659_s22] ss:$0 sm:$0xff]  ;;  %v2023_v51 = vperm.slane %v3564_v16, 4 }
 0xcb2   : > { %2073 = vmatpush.bf16.msrb.mxu3 %v2055_v48 }
 0xcb3   : > { %v1858_v53 = vsel %vm767_vm0, %v1855_v52, 0.0  ;;  %1856 = vst.msk [vmem:[%s739_s28] sm:$0xff] %vm767_vm0, %v1855_v52  ;;  %s3000_s28 = smov 4  }
 0xcb4   : > { %1859 = vadd.xlane.f32.xlu1 %v1858_v53 }
 0xd27   : > { %v1860_v50 = vpop.xlane.xlu1 %1859 }
 0xd28   : > { %v1861_v55 = vmul.f32 %v1860_v50, %v3331_v11 }
 0xd2a   : > { %v1862_v56 = vsub.f32 %v1855_v52, %v1861_v55  ;;  %v1942_v55 = vperm.slane %v3564_v16, 0 }
 0xd2c   : > { %v1863_v57 = vmul.f32 %v1862_v56, %v1862_v56 }
 0xd2e   : > { %v1864_v37 = vsel %vm767_vm0, %v1863_v57, 0.0 }
 0xd2f   : > { %1865 = vadd.xlane.f32.xlu1 %v1864_v37 }
 0xd37   : > { %1885 = vadd.xlane.f32.xlu1 %v1884_v17 }
 0xda2   : > { %v1866_v6 = vpop.xlane.xlu1 %1865 }
 0xda3   : > { %v1867_v1 = vmul.f32 %v1866_v6, %v3331_v11  ;;  %v2080_v6 = vmax.f32 %v2079_v5, 1e-05 }
 0xda5   : > { %v1868_v9 = vadd.f32 1e-05, %v1867_v1  ;;  %v2081_v1 = vmin.f32 %v2080_v6, 0.99999 }
 0xda7   : > { %2702 = vrsqrt.f32 %v1868_v9  ;;  %vm1875_vm3 = vweird.f32 %v1868_v9 }
 0xdaa   : > { %v1886_v12 = vpop.xlane.xlu1 %1885 }
 0xdab   : > { %v1887_v63 = vmul.f32 %v1886_v12, %v3331_v11 }
 0xdad   : > { %v2703_v54 = vpop.eup %2702  ;;  %v1888_v4 = vsub.f32 %v1738_v0, %v1887_v63 }
 0xdae   : > { %v1870_v60 = vmul.f32 %v2703_v54, %v1868_v9  ;;  %vm1876_vm2 = vweird.f32 %v2703_v54  ;;  %v2084_v9 = vsub.f32 1.0, %v2081_v1 }
 0xdaf   : > { %v1889_v13 = vmul.f32 %v1888_v4, %v1888_v4  ;;  %vm1877_vm4 = vmor %vm1875_vm3, %vm1876_vm2 }
 0xdb0   : > { %v1871_v62 = vmul.f32 %v2703_v54, %v1870_v60 }
 0xdb1   : > { %v1890_v61 = vsel %vm767_vm0, %v1889_v13, 0.0 }
 0xdb2   : > { %v1872_v14 = vmul.f32 0.5, %v1871_v62  ;;  %1891 = vadd.xlane.f32.xlu1 %v1890_v61 }
 0xdb4   : > { %v1873_v19 = vsub.f32 1.5, %v1872_v14 }
 0xdb6   : > { %v1874_v20 = vmul.f32 %v2703_v54, %v1873_v19 }
 0xdb8   : > { %v1878_v15 = vsel %vm1877_vm4, %v2703_v54, %v1874_v20 }
 0xdb9   : > { %v1879_v36 = vmul.f32 %v1878_v15, %v1862_v56 }
 0xdbb   : > { %v1881_v23 = vmul.f32 %v1880_v21, %v1879_v36 }
 0xdbd   : > { %v1883_v58 = vadd.f32 %v1882_v22, %v1881_v23 }
 0xdbf   : > { %v1986_v24 = vpack.c.bf16 %v1883_v58, %v1883_v58 }
 0xdc1   : > { %2492 = vmatmul.msk.bf16.vlgmr.msra.gmra.mxu0 %vm767_vm0, %v1986_v24 }
 0xdcb   : > { %2060 = vrot.lane.b32.xlu1 %v2661_v49, %s2999_s20 }
 0xe25   : > { %v1892_v8 = vpop.xlane.xlu1 %1891 }
 0xe26   : > { %v1893_v10 = vmul.f32 %v1892_v8, %v3331_v11 }
 0xe28   : > { %v1894_v29 = vadd.f32 1e-05, %v1893_v10 }
 0xe2a   : > { %2704 = vrsqrt.f32 %v1894_v29  ;;  %vm1901_vm6 = vweird.f32 %v1894_v29 }
 0xe2b   : > { %2706 = vlog2.f32 %v2081_v1 }
 0xe2c   : > { %2708 = vlog2.f32 %v2084_v9 }
 0xe30   : > { %v2705_v30 = vpop.eup %2704 }
 0xe31   : > { %v1896_v32 = vmul.f32 %v2705_v30, %v1894_v29  ;;  %vm1902_vm5 = vweird.f32 %v2705_v30  ;;  %v2707_v12 = vpop.eup %2706 }
 0xe32   : > { %vm1903_vm7 = vmor %vm1901_vm6, %vm1902_vm5  ;;  %v2709_v63 = vpop.eup %2708  ;;  %v2083_v54 = vmul.f32 0.6931472, %v2707_v12 }
 0xe33   : > { %v1897_v11 = vmul.f32 %v2705_v30, %v1896_v32 }
 0xe35   : > { %v1898_v33 = vmul.f32 0.5, %v1897_v11 }
 0xe37   : > { %v1899_v34 = vsub.f32 1.5, %v1898_v33 }
 0xe39   : > { %v1900_v35 = vmul.f32 %v2705_v30, %v1899_v34 }
 0xe3b   : > { %v1904_v7 = vsel %vm1903_vm7, %v2705_v30, %v1900_v35 }
 0xe3c   : > { %v1905_v38 = vmul.f32 %v1904_v7, %v1888_v4  ;;  %v2086_v4 = vmul.f32 0.6931472, %v2709_v63 }
 0xe3d   : > { %v2061_v60 = vpop.permute.xlu1 %2060 }
 0xe3e   : > { %v1906_v40 = vmul.f32 %v1905_v38, %v1880_v21  ;;  %v2012_v41 = vpop.f32.mrf.mxu0  ;;  %v2087_v13 = vsub.f32 %v2083_v54, %v2086_v4 }
 0xe3f   : > { %v2013_v42 = vadd.f32 %v2012_v41, %v1987_v31 }
 0xe40   : > { %v1907_v39 = vadd.f32 %v1906_v40, %v1882_v22 }
 0xe41   : > { %v2016_v43 = vmax.f32 %v2013_v42, 0.0 }
 0xe42   : > { %v1912_v44 = vpack.c.bf16 %v1907_v39, %v1907_v39 }
 0xe43   : > { %v2022_v45 = vpack.c.bf16 %v2016_v43, %v2016_v43 }
 0xe44   : > { %2474 = vmatmul.msk.bf16.vlgmr.msra.gmra.mxu3 %vm767_vm0, %v1912_v44 }
 0xe45   : > { %2501 = vmatmul.msk.bf16.vlgmr.msra.gmra.mxu1 %vm767_vm0, %v2022_v45 }
 0xe46   : > { %v2014_v46 = vpop.f32.mrf.mxu0 }
 0xec2   : > { %v2048_v52 = vpop.f32.mrf.mxu1 }
 0xec3   : > { %v2049_v53 = vadd.f32 %v2048_v52, %v2023_v51 }
 0xec5   : > { %v2052_v50 = vmax.f32 %v2049_v53, 0.0 }
 0xec7   : > { %v2053_v56 = vpack.c.bf16 %v2052_v50, %v2052_v50  ;;  %v1937_v57 = vpop.f32.mrf.mxu3 }
 0xec8   : > { %v1941_v59 = vadd.f32 %v1937_v57, %v1883_v58 }
 0xec9   : > { %2502 = vmatmul.msk.bf16.vlgmr.msrb.gmra.mxu3 %vm767_vm0, %v2053_v56 }
 0xeca   : > { %v1943_v37 = vadd.f32 %v1942_v55, %v1941_v59  ;;  %v2050_v0 = vpop.f32.mrf.mxu1 }
 0xecc   : > { %v1949_v17 = vpack.c.bf16 %v1943_v37, %v1943_v37 }
 0xece   : > { %2483 = vmatmul.msk.bf16.vlgmr.msra.gmra.mxu2 %vm767_vm0, %v1949_v17 }
 0xecf   : > { %v1939_v3 = vpop.f32.mrf.mxu3 }
 0xf4c   : > { %v2075_v62 = vpop.f32.mrf.mxu3 }
 0xf4d   : > { %v2076_v61 = vadd.f32 %v2075_v62, %v2061_v60 }
 0xf4f   : > { %v2088_v14 = vadd.f32 %v2087_v13, %v2076_v61 }
 0xf51   : > { %v2503_v16 = vmul.f32 -1.442695, %v2088_v14  ;;  %v1977_v19 = vpop.f32.mrf.mxu2 }
 0xf52   : > { %v1978_v28 = vadd.f32 %v2661_v49, %v1977_v19 }
 0xf53   : > { %2710 = vpow2.f32 %v2503_v16 }
 0xf54   : > { %v2077_v20 = vpop.f32.mrf.mxu3 }
 0xf59   : > { %v2711_v21 = vpop.eup %2710  ;;  %v1979_v15 = vpop.f32.mrf.mxu2 }
 0xf5a   : > { %v2092_v22 = vadd.f32 1.0, %v2711_v21 }
 0xf5c   : > { %2712 = vrcp.f32 %v2092_v22  ;;  %v2104_v24 = vand.u32 2147483648, %v2092_v22  ;;  %v2102_v2 = vand.u32 2147483647, %v2092_v22  ;;  %vm2098_vm8 = vweird.f32 %v2092_v22 }
 0xf5e   : > { %v2105_v27 = vor.u32 1.1754944e-38, %v2104_v24  ;;  %vm2103_vm10 = vcmp.eq.f32.partialorder %v2102_v2, 8.507059e+37 }
 0xf62   : > { %v2713_v36 = vpop.eup %2712 }
 0xf63   : > { %v2094_v23 = vmul.f32 %v2713_v36, %v2092_v22  ;;  %vm2099_vm0 = vweird.f32 %v2713_v36 }
 0xf64   : > { %vm2100_vm9 = vmor %vm2098_vm8, %vm2099_vm0 }
 0xf65   : > { %v2095_v58 = vsub.f32 1.0, %v2094_v23 }
 0xf67   : > { %v2096_v25 = vmul.f32 %v2713_v36, %v2095_v58 }
 0xf69   : > { %v2097_v26 = vadd.f32 %v2713_v36, %v2096_v25 }
 0xf6b   : > { %v2101_v8 = vsel %vm2100_vm9, %v2713_v36, %v2097_v26 }
 0xf6c   : > { %v2106_v10 = vsel %vm2103_vm10, %v2105_v27, %v2101_v8 }
 0xf6d   : > { %2109 = vrot.lane.b32.xlu2 %v2106_v10, %s3000_s28 }
 0xfc7   : > { %v2110_v18 = vpop.permute.xlu2 %2109 }
 0xfc8   : > { %v2113_v29 = vsel %vm2112_vm11, %v1978_v28, %v2110_v18 }
 0xfc9   : > { %v2114_v30 = vsel %vm806_vm1, %v2113_v29, 0.0 }
 0xfca   : > { %2115 = vst [vmem:[%s743_s1] sm:$0xff] %v2114_v30 }
 0xfcb PF: > { %p31_p1 = scmp.ge.s32.totalorder %s3175_s21, 4   ;;  %s3662_s24 = smov %s2963_s25 }
 0xfcc   : > { %s3663_s25 = smov %s2967_s26  ;;  %s3664_s26 = smov %s3186_s29 }
 0xfcd   : > { %s3665_s27 = smov %s3175_s21  ;;  %33 = sbr.rel (!%p31_p1) target bundleno = 17 (0x11), region = 177 }
 0xfd2   :  { %2149 = vsyncpa [#allocation3], 1 }
 0xfd3   :  { %2151 = vsyncpa [#allocation3 + $0x1], 1 }
 0xfd4   :  { %2152 = vsyncpa [#allocation5], 1 }
 0xfd5   :  { %2153 = vsyncpa [#allocation8], 1 }
 0xfd6   :  { %2154 = vsyncpa [#allocation11], 1 }

</bundles_post_ra>
